<compile_context>
chip_gen: v7x
topology: tpu7x:2x2x1
jax: 0.10.0
libtpu: 0.0.40
codegen_flags: <defaults>
</compile_context>

<pallas_src>
import math

import jax
import jax.numpy as jnp
from jax.experimental import pallas as pl
from jax.experimental.pallas import tpu as pltpu


_LANES = 128                        # vreg lane width
_TILE_ROWS = 4096                   # 4096*128*4B = 2 MiB per buffer
_MIN_PALLAS_ELEMENTS = 1 << 20      # below ~1M elements, fused XLA wins


def _corner_mse_kernel(pred_ref, target_ref, out_ref):
    # Elementwise squared error on a lane-dense (TILE_ROWS, 128) tile.
    # Compute in f32 (matters for half-precision inputs), cast to out dtype.
    d = pred_ref[...].astype(jnp.float32) - target_ref[...].astype(jnp.float32)
    out_ref[...] = (d * d).astype(out_ref.dtype)


def _corner_mse_pallas_flat(pred_2d, target_2d):
    rows = pred_2d.shape[0]
    spec = pl.BlockSpec((_TILE_ROWS, _LANES), lambda i: (i, 0))
    return pl.pallas_call(
        _corner_mse_kernel,
        out_shape=jax.ShapeDtypeStruct((rows, _LANES), pred_2d.dtype),
        grid=(pl.cdiv(rows, _TILE_ROWS),),
        in_specs=[spec, spec],
        out_specs=spec,
        compiler_params=pltpu.CompilerParams(
            dimension_semantics=("parallel",)),
    )(pred_2d, target_2d)


def _corner_mse_jax(pred_corners, target_corners, dtype):
    d = (pred_corners.astype(jnp.float32)
         - target_corners.astype(jnp.float32))
    return (d * d).astype(dtype)


def corner_bounding_box_loss(pred_corners, target_corners,
                             min_pallas_elements=_MIN_PALLAS_ELEMENTS):
    """Element-wise MSE loss between predicted and target corners.

    Args:
        pred_corners:   (batch, 8, 3) array.
        target_corners: (batch, 8, 3) array.

    Returns:
        (batch, 8, 3) array of squared errors (same dtype as inputs).
    """
    assert pred_corners.shape == target_corners.shape, (
        'Shape mismatch between predicted and target corners')

    shape = pred_corners.shape
    dtype = pred_corners.dtype
    n = math.prod(shape)

    # Fall back to the fused pure-JAX expression when:
    #  * the tensor is small (launch + DMA latency dominates), or
    #  * the element count is not lane-aligned (avoids host-side padding that
    #    would roughly double the HBM traffic of this memory-bound op).
    if n < min_pallas_elements or (n % _LANES) != 0:
        return _corner_mse_jax(pred_corners, target_corners, dtype)

    # Lane-dense view: contiguous row-major reshape to (rows, 128) is free.
    rows = n // _LANES
    out2d = _corner_mse_pallas_flat(pred_corners.reshape(rows, _LANES),
                                    target_corners.reshape(rows, _LANES))
    return out2d.reshape(shape)


def corner_bounding_box_loss_ref(pred_corners, target_corners):
    # Pure-JAX reference for validation.
    return (pred_corners - target_corners) ** 2


if __name__ == "__main__":
    key = jax.random.PRNGKey(0)
    k1, k2, k3, k4, k5, k6 = jax.random.split(key, 6)

    # 1) Small case (the module's typical shape): fused pure-JAX fast path.
    batch_small = 2
    pred_s = jax.random.normal(k1, (batch_small, 8, 3), dtype=jnp.float32)
    tgt_s = jax.random.normal(k2, (batch_small, 8, 3), dtype=jnp.float32)
    loss_s = jax.block_until_ready(corner_bounding_box_loss(pred_s, tgt_s))
    ref_s = corner_bounding_box_loss_ref(pred_s, tgt_s)
    assert loss_s.shape == (batch_small, 8, 3), loss_s.shape
    assert jnp.allclose(loss_s, ref_s, atol=1e-6, rtol=1e-6), (
        "small-case mismatch vs reference")

    # 2) Forced Pallas path on a modest, lane-aligned batch (B % 16 == 0):
    #    2048*24 = 49,152 elements -> 384 lane-dense rows, single grid step.
    batch_mid = 2048
    pred_m = jax.random.normal(k3, (batch_mid, 8, 3), dtype=jnp.float32)
    tgt_m = jax.random.normal(k4, (batch_mid, 8, 3), dtype=jnp.float32)
    loss_m = jax.block_until_ready(
        corner_bounding_box_loss(pred_m, tgt_m, min_pallas_elements=0))
    ref_m = corner_bounding_box_loss_ref(pred_m, tgt_m)
    assert loss_m.shape == (batch_mid, 8, 3), loss_m.shape
    assert jnp.allclose(loss_m, ref_m, atol=1e-6, rtol=1e-6), (
        "mid-case mismatch vs reference")

    # 3) Large case: naturally exceeds the 1M-element threshold and runs a
    #    multi-step Pallas grid (49152*24 = 1,179,648 elems -> 9216 rows,
    #    3 grid steps of (4096, 128)).
    batch_large = 49152
    pred_l = jax.random.normal(k5, (batch_large, 8, 3), dtype=jnp.float32)
    tgt_l = jax.random.normal(k6, (batch_large, 8, 3), dtype=jnp.float32)
    loss_l = jax.block_until_ready(corner_bounding_box_loss(pred_l, tgt_l))
    ref_l = corner_bounding_box_loss_ref(pred_l, tgt_l)
    assert loss_l.shape == (batch_large, 8, 3), loss_l.shape
    assert jnp.allclose(loss_l, ref_l, atol=1e-6, rtol=1e-6), (
        "large-case mismatch vs reference")

    print("KERNEL_OK")
</pallas_src>

<mosaic_0001>
module attributes {stable_mosaic.version = 11 : i64} {
  func.func @_corner_mse_kernel(%arg0: i32, %arg1: memref<4096x128xf32, #tpu.memory_space<vmem>>, %arg2: memref<4096x128xf32, #tpu.memory_space<vmem>>, %arg3: memref<4096x128xf32, #tpu.memory_space<vmem>>) attributes {dimension_semantics = [#tpu.dimension_semantics<parallel>], iteration_bounds = array<i64: 1>, scalar_prefetch = 0 : i64, scratch_operands = 0 : i64, tpu.core_type = #tpu.core_type<tc>, window_params = [{transform_indices = @transform_0, window_bounds = array<i64: 4096, 128>}, {transform_indices = @transform_1, window_bounds = array<i64: 4096, 128>}, {transform_indices = @transform_2, window_bounds = array<i64: 4096, 128>}]} {
    %c0 = arith.constant 0 : index
    %c0_0 = arith.constant 0 : index
    %0 = vector.load %arg1[%c0, %c0_0] : memref<4096x128xf32, #tpu.memory_space<vmem>>, vector<4096x128xf32>
    %c0_1 = arith.constant 0 : index
    %c0_2 = arith.constant 0 : index
    %1 = vector.load %arg2[%c0_1, %c0_2] : memref<4096x128xf32, #tpu.memory_space<vmem>>, vector<4096x128xf32>
    %2 = arith.subf %0, %1 : vector<4096x128xf32>
    %3 = arith.mulf %2, %2 : vector<4096x128xf32>
    %c0_3 = arith.constant 0 : index
    %c0_4 = arith.constant 0 : index
    %4 = vector.load %arg3[%c0_3, %c0_4] : memref<4096x128xf32, #tpu.memory_space<vmem>>, vector<4096x128xf32>
    tpu.vector_store %arg3[%c0_3, %c0_4], %3 {strides = array<i32>} : memref<4096x128xf32, #tpu.memory_space<vmem>>, vector<4096x128xf32>,
    return
  }
  func.func @transform_0(%arg0: i32) -> (i32, i32) {
    %c0_i32 = arith.constant 0 : i32
    %c0_i32_0 = arith.constant 0 : i32
    return %arg0, %c0_i32 : i32, i32
  }
  func.func @transform_1(%arg0: i32) -> (i32, i32) {
    %c0_i32 = arith.constant 0 : i32
    %c0_i32_0 = arith.constant 0 : i32
    return %arg0, %c0_i32 : i32, i32
  }
  func.func @transform_2(%arg0: i32) -> (i32, i32) {
    %c0_i32 = arith.constant 0 : i32
    %c0_i32_0 = arith.constant 0 : i32
    return %arg0, %c0_i32 : i32, i32
  }
}

</mosaic_0001>

<bundles_post_ra>
// kernel: tpu_custom_call.1
= control target key start
LH: loop header
LB: loop body
LE: loop exit
PB: predicated region body
PF: predicated region fallthrough
CT: control target
= control target key end

     0   :  { %7 = vsyncpa [#allocation3], 0  ;;  %s2760_s0 = inlined_call_operand.hbm [shape: f32[384,128], index: 0, kind: input, shape index: {}]   ;;  %s2761_s1 = inlined_call_operand.hbm [shape: f32[384,128], index: 1, kind: input, shape index: {}]   ;;  %s2762_s2 = inlined_call_operand.hbm [shape: f32[384,128], index: 2, kind: output, shape index: {}]  }
   0x1   :  { %8 = vsyncpa [#allocation6], 0 }
   0x2   :  { %9 = vsyncpa [#allocation4], 0 }
   0x3   :  { %14 = vsyncadd [#allocation3], 59392  ;;  %s2695_s9 = smov [#allocation2]   ;;  %s2623_s13 = scalar_lea.hbm %s2760_s0, 6144 }
   0x4   :  { %s15_s10 = sshll.u32 %s2695_s9, 4  ;;  %p2624_p0 = scmp.ne.s32.totalorder %s2760_s0, %s2623_s13  ;;  %s16_s10 = int_to_ptr.vmem [resolvable:$true] %s15_s10 }
   0x5   :  { %p2627_p1 = scmp.lt.u32.totalorder %s2623_s13, %s2760_s0 }
   0x7   :  { %p2629_p2 = pnand %p2627_p1, %p2624_p0 }
   0x9   :  { %2632 = shalt.err (!%p2629_p2)
}
   0xa   :  { %s2633_s18 = scalar_lea.vmem %s16_s10, 6144  ;;  %s2637_s19 = scalar_lea.vmem %s16_s10, 65536 }
   0xb   :  { %p2634_p3 = scmp.ne.s32.totalorder %s16_s10, %s2633_s18  ;;  %p2638_p4 = scmp.lt.s32.totalorder %s16_s10, %s16_s10 }
   0xc   :  { %p2639_p5 = scmp.lt.s32.totalorder %s2637_s19, %s2633_s18 }
   0xe   :  { %p2640_p6 = por %p2639_p5, %p2638_p4 }
  0x10   :  { %p2641_p7 = pnand %p2640_p6, %p2634_p3 }
  0x12   :  { %2644 = shalt.err (!%p2641_p7)
}
  0x13   :  { %s2696_s20 = smov 128   ;;  %s2697_s21 = smov 8  }
  0x14   :  { %21 = dma.hbm_to_vmem [thread:$0]  %s2760_s0, 6144, %s16_s10, [#allocation3], %s2696_s20, %s2696_s20, %s2697_s21  }
  0x15   :  { %26 = vsyncadd [#allocation6], 59392  ;;  %s2698_s24 = smov [#allocation5]   ;;  %s2645_s28 = scalar_lea.hbm %s2761_s1, 6144 }
  0x16   :  { %s27_s25 = sshll.u32 %s2698_s24, 4  ;;  %p2646_p8 = scmp.ne.s32.totalorder %s2761_s1, %s2645_s28  ;;  %s28_s25 = int_to_ptr.vmem [resolvable:$true] %s27_s25 }
  0x17   :  { %p2649_p9 = scmp.lt.u32.totalorder %s2645_s28, %s2761_s1 }
  0x19   :  { %p2651_p10 = pnand %p2649_p9, %p2646_p8 }
  0x1b   :  { %2654 = shalt.err (!%p2651_p10)
}
  0x1c   :  { %s2655_s5 = scalar_lea.vmem %s28_s25, 6144  ;;  %s2659_s0 = scalar_lea.vmem %s28_s25, 65536 }
  0x1d   :  { %p2656_p11 = scmp.ne.s32.totalorder %s28_s25, %s2655_s5  ;;  %p2660_p12 = scmp.lt.s32.totalorder %s28_s25, %s28_s25 }
  0x1e   :  { %p2661_p13 = scmp.lt.s32.totalorder %s2659_s0, %s2655_s5 }
  0x20   :  { %p2662_p0 = por %p2661_p13, %p2660_p12 }
  0x22   :  { %p2663_p1 = pnand %p2662_p0, %p2656_p11 }
  0x24   :  { %2666 = shalt.err (!%p2663_p1)
}
  0x25   :  { %33 = dma.hbm_to_vmem [thread:$0]  %s2761_s1, 6144, %s28_s25, [#allocation6], %s2696_s20, %s2696_s20, %s2697_s21  }
  0x26   :  { %2689 = dma.done.wait [#allocation3], 65536  }
  0x27   :  { %2690 = vsyncadd [#allocation3], 4294901760 }
  0x28   :  { %2691 = dma.done.wait [#allocation6], 65536  }
  0x29   :  { %2692 = vsyncadd [#allocation6], 4294901760  ;;  %v40_v0 = vld [vmem:[#allocation2] sm:$0xff]  ;;  %v41_v2 = vld [vmem:[#allocation2 + $0x8] sm:$0xff] }
  0x2a   :  { %v552_v1 = vld [vmem:[#allocation5] sm:$0xff]  ;;  %v553_v4 = vld [vmem:[#allocation5 + $0x8] sm:$0xff]  ;;  %v42_v5 = vld [vmem:[#allocation2 + $0x10] sm:$0xff] }
  0x2b   :  { %v1064_v3 = vsub.f32 %v40_v0, %v552_v1  ;;  %v554_v6 = vld [vmem:[#allocation5 + $0x10] sm:$0xff]  ;;  %v1065_v7 = vsub.f32 %v41_v2, %v553_v4  ;;  %v43_v9 = vld [vmem:[#allocation2 + $0x18] sm:$0xff]  ;;  %v44_v11 = vld [vmem:[#allocation2 + $0x20] sm:$0xff] }
  0x2c   :  { %v1066_v8 = vsub.f32 %v42_v5, %v554_v6  ;;  %v555_v10 = vld [vmem:[#allocation5 + $0x18] sm:$0xff]  ;;  %v556_v14 = vld [vmem:[#allocation5 + $0x20] sm:$0xff]  ;;  %v45_v15 = vld [vmem:[#allocation2 + $0x28] sm:$0xff] }
  0x2d   :  { %v1576_v12 = vmul.f32 %v1064_v3, %v1064_v3  ;;  %v1067_v13 = vsub.f32 %v43_v9, %v555_v10  ;;  %v557_v16 = vld [vmem:[#allocation5 + $0x28] sm:$0xff]  ;;  %v1577_v17 = vmul.f32 %v1065_v7, %v1065_v7  ;;  %v1068_v19 = vsub.f32 %v44_v11, %v556_v14  ;;  %v46_v21 = vld [vmem:[#allocation2 + $0x30] sm:$0xff]  ;;  %v47_v23 = vld [vmem:[#allocation2 + $0x38] sm:$0xff] }
  0x2e   :  { %v1578_v18 = vmul.f32 %v1066_v8, %v1066_v8  ;;  %v1069_v20 = vsub.f32 %v45_v15, %v557_v16  ;;  %v558_v22 = vld [vmem:[#allocation5 + $0x30] sm:$0xff]  ;;  %v559_v26 = vld [vmem:[#allocation5 + $0x38] sm:$0xff]  ;;  %v48_v27 = vld [vmem:[#allocation2 + $0x40] sm:$0xff] }
  0x2f   :  { %2088 = vst [vmem:[#allocation7] sm:$0xff] %v1576_v12  ;;  %v1579_v24 = vmul.f32 %v1067_v13, %v1067_v13  ;;  %v1070_v25 = vsub.f32 %v46_v21, %v558_v22  ;;  %v560_v28 = vld [vmem:[#allocation5 + $0x40] sm:$0xff]  ;;  %2089 = vst [vmem:[#allocation7 + $0x8] sm:$0xff] %v1577_v17  ;;  %v1580_v29 = vmul.f32 %v1068_v19, %v1068_v19  ;;  %v49_v33 = vld [vmem:[#allocation2 + $0x48] sm:$0xff] }
  0x30   :  { %2090 = vst [vmem:[#allocation7 + $0x10] sm:$0xff] %v1578_v18  ;;  %v1581_v30 = vmul.f32 %v1069_v20, %v1069_v20  ;;  %v1071_v31 = vsub.f32 %v47_v23, %v559_v26  ;;  %v1072_v32 = vsub.f32 %v48_v27, %v560_v28  ;;  %v561_v34 = vld [vmem:[#allocation5 + $0x48] sm:$0xff]  ;;  %v50_v35 = vld [vmem:[#allocation2 + $0x50] sm:$0xff]  ;;  %v51_v39 = vld [vmem:[#allocation2 + $0x58] sm:$0xff] }
  0x31   :  { %2091 = vst [vmem:[#allocation7 + $0x18] sm:$0xff] %v1579_v24  ;;  %v1582_v36 = vmul.f32 %v1070_v25, %v1070_v25  ;;  %v1073_v37 = vsub.f32 %v49_v33, %v561_v34  ;;  %v562_v38 = vld [vmem:[#allocation5 + $0x50] sm:$0xff]  ;;  %v563_v40 = vld [vmem:[#allocation5 + $0x58] sm:$0xff]  ;;  %2092 = vst [vmem:[#allocation7 + $0x20] sm:$0xff] %v1580_v29 }
  0x32   :  { %2093 = vst [vmem:[#allocation7 + $0x28] sm:$0xff] %v1581_v30  ;;  %v1583_v41 = vmul.f32 %v1071_v31, %v1071_v31  ;;  %v1584_v42 = vmul.f32 %v1072_v32, %v1072_v32  ;;  %v1074_v43 = vsub.f32 %v50_v35, %v562_v38  ;;  %v1075_v44 = vsub.f32 %v51_v39, %v563_v40  ;;  %v52_v45 = vld [vmem:[#allocation2 + $0x60] sm:$0xff]  ;;  %v53_v47 = vld [vmem:[#allocation2 + $0x68] sm:$0xff]  ;;  %v54_v51 = vld [vmem:[#allocation2 + $0x70] sm:$0xff] }
  0x33   :  { %v564_v46 = vld [vmem:[#allocation5 + $0x60] sm:$0xff]  ;;  %2094 = vst [vmem:[#allocation7 + $0x30] sm:$0xff] %v1582_v36  ;;  %v1585_v48 = vmul.f32 %v1073_v37, %v1073_v37  ;;  %v565_v50 = vld [vmem:[#allocation5 + $0x68] sm:$0xff]  ;;  %v566_v52 = vld [vmem:[#allocation5 + $0x70] sm:$0xff] }
  0x34   :  { %v1076_v49 = vsub.f32 %v52_v45, %v564_v46  ;;  %2095 = vst [vmem:[#allocation7 + $0x38] sm:$0xff] %v1583_v41  ;;  %2096 = vst [vmem:[#allocation7 + $0x40] sm:$0xff] %v1584_v42  ;;  %v1586_v53 = vmul.f32 %v1074_v43, %v1074_v43  ;;  %v1587_v54 = vmul.f32 %v1075_v44, %v1075_v44  ;;  %v55_v57 = vld [vmem:[#allocation2 + $0x78] sm:$0xff]  ;;  %v56_v59 = vld [vmem:[#allocation2 + $0x80] sm:$0xff] }
  0x35   :  { %v1077_v55 = vsub.f32 %v53_v47, %v565_v50  ;;  %v1078_v56 = vsub.f32 %v54_v51, %v566_v52  ;;  %v567_v58 = vld [vmem:[#allocation5 + $0x78] sm:$0xff]  ;;  %2097 = vst [vmem:[#allocation7 + $0x48] sm:$0xff] %v1585_v48  ;;  %v568_v62 = vld [vmem:[#allocation5 + $0x80] sm:$0xff]  ;;  %v57_v63 = vld [vmem:[#allocation2 + $0x88] sm:$0xff] }
  0x36   :  { %v1588_v60 = vmul.f32 %v1076_v49, %v1076_v49  ;;  %v1079_v61 = vsub.f32 %v55_v57, %v567_v58  ;;  %v569_v0 = vld [vmem:[#allocation5 + $0x88] sm:$0xff]  ;;  %2098 = vst [vmem:[#allocation7 + $0x50] sm:$0xff] %v1586_v53  ;;  %2099 = vst [vmem:[#allocation7 + $0x58] sm:$0xff] %v1587_v54  ;;  %v1080_v3 = vsub.f32 %v56_v59, %v568_v62  ;;  %v58_v5 = vld [vmem:[#allocation2 + $0x90] sm:$0xff] }
  0x37   :  { %v1589_v1 = vmul.f32 %v1077_v55, %v1077_v55  ;;  %v1590_v2 = vmul.f32 %v1078_v56, %v1078_v56  ;;  %v1081_v4 = vsub.f32 %v57_v63, %v569_v0  ;;  %v570_v6 = vld [vmem:[#allocation5 + $0x90] sm:$0xff]  ;;  %v59_v7 = vld [vmem:[#allocation2 + $0x98] sm:$0xff]  ;;  %v60_v11 = vld [vmem:[#allocation2 + $0xa0] sm:$0xff] }
  0x38   :  { %2100 = vst [vmem:[#allocation7 + $0x60] sm:$0xff] %v1588_v60  ;;  %v1591_v8 = vmul.f32 %v1079_v61, %v1079_v61  ;;  %v1082_v9 = vsub.f32 %v58_v5, %v570_v6  ;;  %v571_v10 = vld [vmem:[#allocation5 + $0x98] sm:$0xff]  ;;  %v572_v12 = vld [vmem:[#allocation5 + $0xa0] sm:$0xff]  ;;  %v1592_v13 = vmul.f32 %v1080_v3, %v1080_v3  ;;  %v61_v17 = vld [vmem:[#allocation2 + $0xa8] sm:$0xff] }
  0x39   :  { %2101 = vst [vmem:[#allocation7 + $0x68] sm:$0xff] %v1589_v1  ;;  %2102 = vst [vmem:[#allocation7 + $0x70] sm:$0xff] %v1590_v2  ;;  %v1593_v14 = vmul.f32 %v1081_v4, %v1081_v4  ;;  %v1083_v15 = vsub.f32 %v59_v7, %v571_v10  ;;  %v1084_v16 = vsub.f32 %v60_v11, %v572_v12  ;;  %v573_v18 = vld [vmem:[#allocation5 + $0xa8] sm:$0xff]  ;;  %v62_v19 = vld [vmem:[#allocation2 + $0xb0] sm:$0xff] }
  0x3a   :  { %2103 = vst [vmem:[#allocation7 + $0x78] sm:$0xff] %v1591_v8  ;;  %v1594_v20 = vmul.f32 %v1082_v9, %v1082_v9  ;;  %v1085_v21 = vsub.f32 %v61_v17, %v573_v18  ;;  %v574_v22 = vld [vmem:[#allocation5 + $0xb0] sm:$0xff]  ;;  %v63_v23 = vld [vmem:[#allocation2 + $0xb8] sm:$0xff]  ;;  %2104 = vst [vmem:[#allocation7 + $0x80] sm:$0xff] %v1592_v13 }
  0x3b   :  { %v575_v24 = vld [vmem:[#allocation5 + $0xb8] sm:$0xff]  ;;  %2105 = vst [vmem:[#allocation7 + $0x88] sm:$0xff] %v1593_v14  ;;  %v1595_v25 = vmul.f32 %v1083_v15, %v1083_v15  ;;  %v1596_v26 = vmul.f32 %v1084_v16, %v1084_v16  ;;  %v1086_v27 = vsub.f32 %v62_v19, %v574_v22  ;;  %v64_v29 = vld [vmem:[#allocation2 + $0xc0] sm:$0xff]  ;;  %v65_v31 = vld [vmem:[#allocation2 + $0xc8] sm:$0xff] }
  0x3c   :  { %v1087_v28 = vsub.f32 %v63_v23, %v575_v24  ;;  %v576_v30 = vld [vmem:[#allocation5 + $0xc0] sm:$0xff]  ;;  %2106 = vst [vmem:[#allocation7 + $0x90] sm:$0xff] %v1594_v20  ;;  %v1597_v32 = vmul.f32 %v1085_v21, %v1085_v21  ;;  %v577_v34 = vld [vmem:[#allocation5 + $0xc8] sm:$0xff]  ;;  %v66_v35 = vld [vmem:[#allocation2 + $0xd0] sm:$0xff] }
  0x3d   :  { %v1088_v33 = vsub.f32 %v64_v29, %v576_v30  ;;  %v578_v36 = vld [vmem:[#allocation5 + $0xd0] sm:$0xff]  ;;  %2107 = vst [vmem:[#allocation7 + $0x98] sm:$0xff] %v1595_v25  ;;  %2108 = vst [vmem:[#allocation7 + $0xa0] sm:$0xff] %v1596_v26  ;;  %v1598_v37 = vmul.f32 %v1086_v27, %v1086_v27  ;;  %v1089_v39 = vsub.f32 %v65_v31, %v577_v34  ;;  %v67_v41 = vld [vmem:[#allocation2 + $0xd8] sm:$0xff] }
  0x3e   :  { %v1599_v38 = vmul.f32 %v1087_v28, %v1087_v28  ;;  %v1090_v40 = vsub.f32 %v66_v35, %v578_v36  ;;  %v579_v42 = vld [vmem:[#allocation5 + $0xd8] sm:$0xff]  ;;  %v68_v43 = vld [vmem:[#allocation2 + $0xe0] sm:$0xff]  ;;  %2109 = vst [vmem:[#allocation7 + $0xa8] sm:$0xff] %v1597_v32  ;;  %v69_v47 = vld [vmem:[#allocation2 + $0xe8] sm:$0xff] }
  0x3f   :  { %v1600_v44 = vmul.f32 %v1088_v33, %v1088_v33  ;;  %v1091_v45 = vsub.f32 %v67_v41, %v579_v42  ;;  %v580_v46 = vld [vmem:[#allocation5 + $0xe0] sm:$0xff]  ;;  %v581_v48 = vld [vmem:[#allocation5 + $0xe8] sm:$0xff]  ;;  %2110 = vst [vmem:[#allocation7 + $0xb0] sm:$0xff] %v1598_v37  ;;  %v1601_v49 = vmul.f32 %v1089_v39, %v1089_v39  ;;  %v70_v53 = vld [vmem:[#allocation2 + $0xf0] sm:$0xff] }
  0x40   :  { %2111 = vst [vmem:[#allocation7 + $0xb8] sm:$0xff] %v1599_v38  ;;  %v1602_v50 = vmul.f32 %v1090_v40, %v1090_v40  ;;  %v1092_v51 = vsub.f32 %v68_v43, %v580_v46  ;;  %v1093_v52 = vsub.f32 %v69_v47, %v581_v48  ;;  %v582_v54 = vld [vmem:[#allocation5 + $0xf0] sm:$0xff]  ;;  %v71_v55 = vld [vmem:[#allocation2 + $0xf8] sm:$0xff]  ;;  %v72_v59 = vld [vmem:[#allocation2 + $0x100] sm:$0xff] }
  0x41   :  { %2112 = vst [vmem:[#allocation7 + $0xc0] sm:$0xff] %v1600_v44  ;;  %v1603_v56 = vmul.f32 %v1091_v45, %v1091_v45  ;;  %v1094_v57 = vsub.f32 %v70_v53, %v582_v54  ;;  %v583_v58 = vld [vmem:[#allocation5 + $0xf8] sm:$0xff]  ;;  %v584_v60 = vld [vmem:[#allocation5 + $0x100] sm:$0xff]  ;;  %2113 = vst [vmem:[#allocation7 + $0xc8] sm:$0xff] %v1601_v49 }
  0x42   :  { %2114 = vst [vmem:[#allocation7 + $0xd0] sm:$0xff] %v1602_v50  ;;  %v1604_v61 = vmul.f32 %v1092_v51, %v1092_v51  ;;  %v1605_v62 = vmul.f32 %v1093_v52, %v1093_v52  ;;  %v1095_v63 = vsub.f32 %v71_v55, %v583_v58  ;;  %v1096_v0 = vsub.f32 %v72_v59, %v584_v60  ;;  %v73_v1 = vld [vmem:[#allocation2 + $0x108] sm:$0xff]  ;;  %v74_v3 = vld [vmem:[#allocation2 + $0x110] sm:$0xff]  ;;  %v75_v7 = vld [vmem:[#allocation2 + $0x118] sm:$0xff] }
  0x43   :  { %v585_v2 = vld [vmem:[#allocation5 + $0x108] sm:$0xff]  ;;  %2115 = vst [vmem:[#allocation7 + $0xd8] sm:$0xff] %v1603_v56  ;;  %v1606_v4 = vmul.f32 %v1094_v57, %v1094_v57  ;;  %v586_v6 = vld [vmem:[#allocation5 + $0x110] sm:$0xff]  ;;  %v587_v8 = vld [vmem:[#allocation5 + $0x118] sm:$0xff] }
  0x44   :  { %v1097_v5 = vsub.f32 %v73_v1, %v585_v2  ;;  %2116 = vst [vmem:[#allocation7 + $0xe0] sm:$0xff] %v1604_v61  ;;  %2117 = vst [vmem:[#allocation7 + $0xe8] sm:$0xff] %v1605_v62  ;;  %v1607_v9 = vmul.f32 %v1095_v63, %v1095_v63  ;;  %v1608_v10 = vmul.f32 %v1096_v0, %v1096_v0  ;;  %v76_v13 = vld [vmem:[#allocation2 + $0x120] sm:$0xff]  ;;  %v77_v15 = vld [vmem:[#allocation2 + $0x128] sm:$0xff] }
  0x45   :  { %v1098_v11 = vsub.f32 %v74_v3, %v586_v6  ;;  %v1099_v12 = vsub.f32 %v75_v7, %v587_v8  ;;  %v588_v14 = vld [vmem:[#allocation5 + $0x120] sm:$0xff]  ;;  %2118 = vst [vmem:[#allocation7 + $0xf0] sm:$0xff] %v1606_v4  ;;  %v589_v18 = vld [vmem:[#allocation5 + $0x128] sm:$0xff]  ;;  %v78_v19 = vld [vmem:[#allocation2 + $0x130] sm:$0xff] }
  0x46   :  { %v1609_v16 = vmul.f32 %v1097_v5, %v1097_v5  ;;  %v1100_v17 = vsub.f32 %v76_v13, %v588_v14  ;;  %v590_v20 = vld [vmem:[#allocation5 + $0x130] sm:$0xff]  ;;  %2119 = vst [vmem:[#allocation7 + $0xf8] sm:$0xff] %v1607_v9  ;;  %2120 = vst [vmem:[#allocation7 + $0x100] sm:$0xff] %v1608_v10  ;;  %v1101_v23 = vsub.f32 %v77_v15, %v589_v18  ;;  %v79_v25 = vld [vmem:[#allocation2 + $0x138] sm:$0xff] }
  0x47   :  { %v1610_v21 = vmul.f32 %v1098_v11, %v1098_v11  ;;  %v1611_v22 = vmul.f32 %v1099_v12, %v1099_v12  ;;  %v1102_v24 = vsub.f32 %v78_v19, %v590_v20  ;;  %v591_v26 = vld [vmem:[#allocation5 + $0x138] sm:$0xff]  ;;  %v80_v27 = vld [vmem:[#allocation2 + $0x140] sm:$0xff]  ;;  %v81_v31 = vld [vmem:[#allocation2 + $0x148] sm:$0xff] }
  0x48   :  { %2121 = vst [vmem:[#allocation7 + $0x108] sm:$0xff] %v1609_v16  ;;  %v1612_v28 = vmul.f32 %v1100_v17, %v1100_v17  ;;  %v1103_v29 = vsub.f32 %v79_v25, %v591_v26  ;;  %v592_v30 = vld [vmem:[#allocation5 + $0x140] sm:$0xff]  ;;  %v593_v32 = vld [vmem:[#allocation5 + $0x148] sm:$0xff]  ;;  %v1613_v33 = vmul.f32 %v1101_v23, %v1101_v23  ;;  %v82_v37 = vld [vmem:[#allocation2 + $0x150] sm:$0xff] }
  0x49   :  { %2122 = vst [vmem:[#allocation7 + $0x110] sm:$0xff] %v1610_v21  ;;  %2123 = vst [vmem:[#allocation7 + $0x118] sm:$0xff] %v1611_v22  ;;  %v1614_v34 = vmul.f32 %v1102_v24, %v1102_v24  ;;  %v1104_v35 = vsub.f32 %v80_v27, %v592_v30  ;;  %v1105_v36 = vsub.f32 %v81_v31, %v593_v32  ;;  %v594_v38 = vld [vmem:[#allocation5 + $0x150] sm:$0xff]  ;;  %v83_v39 = vld [vmem:[#allocation2 + $0x158] sm:$0xff] }
  0x4a   :  { %2124 = vst [vmem:[#allocation7 + $0x120] sm:$0xff] %v1612_v28  ;;  %v1615_v40 = vmul.f32 %v1103_v29, %v1103_v29  ;;  %v1106_v41 = vsub.f32 %v82_v37, %v594_v38  ;;  %v595_v42 = vld [vmem:[#allocation5 + $0x158] sm:$0xff]  ;;  %v84_v43 = vld [vmem:[#allocation2 + $0x160] sm:$0xff]  ;;  %2125 = vst [vmem:[#allocation7 + $0x128] sm:$0xff] %v1613_v33 }
  0x4b   :  { %v596_v44 = vld [vmem:[#allocation5 + $0x160] sm:$0xff]  ;;  %2126 = vst [vmem:[#allocation7 + $0x130] sm:$0xff] %v1614_v34  ;;  %v1616_v45 = vmul.f32 %v1104_v35, %v1104_v35  ;;  %v1617_v46 = vmul.f32 %v1105_v36, %v1105_v36  ;;  %v1107_v47 = vsub.f32 %v83_v39, %v595_v42  ;;  %v85_v49 = vld [vmem:[#allocation2 + $0x168] sm:$0xff]  ;;  %v86_v51 = vld [vmem:[#allocation2 + $0x170] sm:$0xff] }
  0x4c   :  { %v1108_v48 = vsub.f32 %v84_v43, %v596_v44  ;;  %v597_v50 = vld [vmem:[#allocation5 + $0x168] sm:$0xff]  ;;  %2127 = vst [vmem:[#allocation7 + $0x138] sm:$0xff] %v1615_v40  ;;  %v1618_v52 = vmul.f32 %v1106_v41, %v1106_v41  ;;  %v598_v54 = vld [vmem:[#allocation5 + $0x170] sm:$0xff]  ;;  %v87_v55 = vld [vmem:[#allocation2 + $0x178] sm:$0xff] }
  0x4d   :  { %v1109_v53 = vsub.f32 %v85_v49, %v597_v50  ;;  %v599_v56 = vld [vmem:[#allocation5 + $0x178] sm:$0xff]  ;;  %2128 = vst [vmem:[#allocation7 + $0x140] sm:$0xff] %v1616_v45  ;;  %2129 = vst [vmem:[#allocation7 + $0x148] sm:$0xff] %v1617_v46  ;;  %v1619_v57 = vmul.f32 %v1107_v47, %v1107_v47  ;;  %v1110_v59 = vsub.f32 %v86_v51, %v598_v54  ;;  %v88_v61 = vld [vmem:[#allocation2 + $0x180] sm:$0xff] }
  0x4e   :  { %v1620_v58 = vmul.f32 %v1108_v48, %v1108_v48  ;;  %v1111_v60 = vsub.f32 %v87_v55, %v599_v56  ;;  %v600_v62 = vld [vmem:[#allocation5 + $0x180] sm:$0xff]  ;;  %v89_v63 = vld [vmem:[#allocation2 + $0x188] sm:$0xff]  ;;  %2130 = vst [vmem:[#allocation7 + $0x150] sm:$0xff] %v1618_v52  ;;  %v90_v3 = vld [vmem:[#allocation2 + $0x190] sm:$0xff] }
  0x4f   :  { %v1621_v0 = vmul.f32 %v1109_v53, %v1109_v53  ;;  %v1112_v1 = vsub.f32 %v88_v61, %v600_v62  ;;  %v601_v2 = vld [vmem:[#allocation5 + $0x188] sm:$0xff]  ;;  %v602_v4 = vld [vmem:[#allocation5 + $0x190] sm:$0xff]  ;;  %2131 = vst [vmem:[#allocation7 + $0x158] sm:$0xff] %v1619_v57  ;;  %v1622_v5 = vmul.f32 %v1110_v59, %v1110_v59  ;;  %v91_v9 = vld [vmem:[#allocation2 + $0x198] sm:$0xff] }
  0x50   :  { %2132 = vst [vmem:[#allocation7 + $0x160] sm:$0xff] %v1620_v58  ;;  %v1623_v6 = vmul.f32 %v1111_v60, %v1111_v60  ;;  %v1113_v7 = vsub.f32 %v89_v63, %v601_v2  ;;  %v1114_v8 = vsub.f32 %v90_v3, %v602_v4  ;;  %v603_v10 = vld [vmem:[#allocation5 + $0x198] sm:$0xff]  ;;  %v92_v11 = vld [vmem:[#allocation2 + $0x1a0] sm:$0xff]  ;;  %v93_v15 = vld [vmem:[#allocation2 + $0x1a8] sm:$0xff] }
  0x51   :  { %2133 = vst [vmem:[#allocation7 + $0x168] sm:$0xff] %v1621_v0  ;;  %v1624_v12 = vmul.f32 %v1112_v1, %v1112_v1  ;;  %v1115_v13 = vsub.f32 %v91_v9, %v603_v10  ;;  %v604_v14 = vld [vmem:[#allocation5 + $0x1a0] sm:$0xff]  ;;  %v605_v16 = vld [vmem:[#allocation5 + $0x1a8] sm:$0xff]  ;;  %2134 = vst [vmem:[#allocation7 + $0x170] sm:$0xff] %v1622_v5 }
  0x52   :  { %2135 = vst [vmem:[#allocation7 + $0x178] sm:$0xff] %v1623_v6  ;;  %v1625_v17 = vmul.f32 %v1113_v7, %v1113_v7  ;;  %v1626_v18 = vmul.f32 %v1114_v8, %v1114_v8  ;;  %v1116_v19 = vsub.f32 %v92_v11, %v604_v14  ;;  %v1117_v20 = vsub.f32 %v93_v15, %v605_v16  ;;  %v94_v21 = vld [vmem:[#allocation2 + $0x1b0] sm:$0xff]  ;;  %v95_v23 = vld [vmem:[#allocation2 + $0x1b8] sm:$0xff]  ;;  %v96_v27 = vld [vmem:[#allocation2 + $0x1c0] sm:$0xff] }
  0x53   :  { %v606_v22 = vld [vmem:[#allocation5 + $0x1b0] sm:$0xff]  ;;  %2136 = vst [vmem:[#allocation7 + $0x180] sm:$0xff] %v1624_v12  ;;  %v1627_v24 = vmul.f32 %v1115_v13, %v1115_v13  ;;  %v607_v26 = vld [vmem:[#allocation5 + $0x1b8] sm:$0xff]  ;;  %v608_v28 = vld [vmem:[#allocation5 + $0x1c0] sm:$0xff] }
  0x54   :  { %v1118_v25 = vsub.f32 %v94_v21, %v606_v22  ;;  %2137 = vst [vmem:[#allocation7 + $0x188] sm:$0xff] %v1625_v17  ;;  %2138 = vst [vmem:[#allocation7 + $0x190] sm:$0xff] %v1626_v18  ;;  %v1628_v29 = vmul.f32 %v1116_v19, %v1116_v19  ;;  %v1629_v30 = vmul.f32 %v1117_v20, %v1117_v20  ;;  %v97_v33 = vld [vmem:[#allocation2 + $0x1c8] sm:$0xff]  ;;  %v98_v35 = vld [vmem:[#allocation2 + $0x1d0] sm:$0xff] }
  0x55   :  { %v1119_v31 = vsub.f32 %v95_v23, %v607_v26  ;;  %v1120_v32 = vsub.f32 %v96_v27, %v608_v28  ;;  %v609_v34 = vld [vmem:[#allocation5 + $0x1c8] sm:$0xff]  ;;  %2139 = vst [vmem:[#allocation7 + $0x198] sm:$0xff] %v1627_v24  ;;  %v610_v38 = vld [vmem:[#allocation5 + $0x1d0] sm:$0xff]  ;;  %v99_v39 = vld [vmem:[#allocation2 + $0x1d8] sm:$0xff] }
  0x56   :  { %v1630_v36 = vmul.f32 %v1118_v25, %v1118_v25  ;;  %v1121_v37 = vsub.f32 %v97_v33, %v609_v34  ;;  %v611_v40 = vld [vmem:[#allocation5 + $0x1d8] sm:$0xff]  ;;  %2140 = vst [vmem:[#allocation7 + $0x1a0] sm:$0xff] %v1628_v29  ;;  %2141 = vst [vmem:[#allocation7 + $0x1a8] sm:$0xff] %v1629_v30  ;;  %v1122_v43 = vsub.f32 %v98_v35, %v610_v38  ;;  %v100_v45 = vld [vmem:[#allocation2 + $0x1e0] sm:$0xff] }
  0x57   :  { %v1631_v41 = vmul.f32 %v1119_v31, %v1119_v31  ;;  %v1632_v42 = vmul.f32 %v1120_v32, %v1120_v32  ;;  %v1123_v44 = vsub.f32 %v99_v39, %v611_v40  ;;  %v612_v46 = vld [vmem:[#allocation5 + $0x1e0] sm:$0xff]  ;;  %v101_v47 = vld [vmem:[#allocation2 + $0x1e8] sm:$0xff]  ;;  %v102_v51 = vld [vmem:[#allocation2 + $0x1f0] sm:$0xff] }
  0x58   :  { %2142 = vst [vmem:[#allocation7 + $0x1b0] sm:$0xff] %v1630_v36  ;;  %v1633_v48 = vmul.f32 %v1121_v37, %v1121_v37  ;;  %v1124_v49 = vsub.f32 %v100_v45, %v612_v46  ;;  %v613_v50 = vld [vmem:[#allocation5 + $0x1e8] sm:$0xff]  ;;  %v614_v52 = vld [vmem:[#allocation5 + $0x1f0] sm:$0xff]  ;;  %v1634_v53 = vmul.f32 %v1122_v43, %v1122_v43  ;;  %v103_v57 = vld [vmem:[#allocation2 + $0x1f8] sm:$0xff] }
  0x59   :  { %2143 = vst [vmem:[#allocation7 + $0x1b8] sm:$0xff] %v1631_v41  ;;  %2144 = vst [vmem:[#allocation7 + $0x1c0] sm:$0xff] %v1632_v42  ;;  %v1635_v54 = vmul.f32 %v1123_v44, %v1123_v44  ;;  %v1125_v55 = vsub.f32 %v101_v47, %v613_v50  ;;  %v1126_v56 = vsub.f32 %v102_v51, %v614_v52  ;;  %v615_v58 = vld [vmem:[#allocation5 + $0x1f8] sm:$0xff]  ;;  %v104_v59 = vld [vmem:[#allocation2 + $0x200] sm:$0xff] }
  0x5a   :  { %2145 = vst [vmem:[#allocation7 + $0x1c8] sm:$0xff] %v1633_v48  ;;  %v1636_v60 = vmul.f32 %v1124_v49, %v1124_v49  ;;  %v1127_v61 = vsub.f32 %v103_v57, %v615_v58  ;;  %v616_v62 = vld [vmem:[#allocation5 + $0x200] sm:$0xff]  ;;  %v105_v63 = vld [vmem:[#allocation2 + $0x208] sm:$0xff]  ;;  %2146 = vst [vmem:[#allocation7 + $0x1d0] sm:$0xff] %v1634_v53 }
  0x5b   :  { %v617_v0 = vld [vmem:[#allocation5 + $0x208] sm:$0xff]  ;;  %2147 = vst [vmem:[#allocation7 + $0x1d8] sm:$0xff] %v1635_v54  ;;  %v1637_v1 = vmul.f32 %v1125_v55, %v1125_v55  ;;  %v1638_v2 = vmul.f32 %v1126_v56, %v1126_v56  ;;  %v1128_v3 = vsub.f32 %v104_v59, %v616_v62  ;;  %v106_v5 = vld [vmem:[#allocation2 + $0x210] sm:$0xff]  ;;  %v107_v7 = vld [vmem:[#allocation2 + $0x218] sm:$0xff] }
  0x5c   :  { %v1129_v4 = vsub.f32 %v105_v63, %v617_v0  ;;  %v618_v6 = vld [vmem:[#allocation5 + $0x210] sm:$0xff]  ;;  %2148 = vst [vmem:[#allocation7 + $0x1e0] sm:$0xff] %v1636_v60  ;;  %v1639_v8 = vmul.f32 %v1127_v61, %v1127_v61  ;;  %v619_v10 = vld [vmem:[#allocation5 + $0x218] sm:$0xff]  ;;  %v108_v11 = vld [vmem:[#allocation2 + $0x220] sm:$0xff] }
  0x5d   :  { %v1130_v9 = vsub.f32 %v106_v5, %v618_v6  ;;  %v620_v12 = vld [vmem:[#allocation5 + $0x220] sm:$0xff]  ;;  %2149 = vst [vmem:[#allocation7 + $0x1e8] sm:$0xff] %v1637_v1  ;;  %2150 = vst [vmem:[#allocation7 + $0x1f0] sm:$0xff] %v1638_v2  ;;  %v1640_v13 = vmul.f32 %v1128_v3, %v1128_v3  ;;  %v1131_v15 = vsub.f32 %v107_v7, %v619_v10  ;;  %v109_v17 = vld [vmem:[#allocation2 + $0x228] sm:$0xff] }
  0x5e   :  { %v1641_v14 = vmul.f32 %v1129_v4, %v1129_v4  ;;  %v1132_v16 = vsub.f32 %v108_v11, %v620_v12  ;;  %v621_v18 = vld [vmem:[#allocation5 + $0x228] sm:$0xff]  ;;  %v110_v19 = vld [vmem:[#allocation2 + $0x230] sm:$0xff]  ;;  %2151 = vst [vmem:[#allocation7 + $0x1f8] sm:$0xff] %v1639_v8  ;;  %v111_v23 = vld [vmem:[#allocation2 + $0x238] sm:$0xff] }
  0x5f   :  { %v1642_v20 = vmul.f32 %v1130_v9, %v1130_v9  ;;  %v1133_v21 = vsub.f32 %v109_v17, %v621_v18  ;;  %v622_v22 = vld [vmem:[#allocation5 + $0x230] sm:$0xff]  ;;  %v623_v24 = vld [vmem:[#allocation5 + $0x238] sm:$0xff]  ;;  %2152 = vst [vmem:[#allocation7 + $0x200] sm:$0xff] %v1640_v13  ;;  %v1643_v25 = vmul.f32 %v1131_v15, %v1131_v15  ;;  %v112_v29 = vld [vmem:[#allocation2 + $0x240] sm:$0xff] }
  0x60   :  { %2153 = vst [vmem:[#allocation7 + $0x208] sm:$0xff] %v1641_v14  ;;  %v1644_v26 = vmul.f32 %v1132_v16, %v1132_v16  ;;  %v1134_v27 = vsub.f32 %v110_v19, %v622_v22  ;;  %v1135_v28 = vsub.f32 %v111_v23, %v623_v24  ;;  %v624_v30 = vld [vmem:[#allocation5 + $0x240] sm:$0xff]  ;;  %v113_v31 = vld [vmem:[#allocation2 + $0x248] sm:$0xff]  ;;  %v114_v35 = vld [vmem:[#allocation2 + $0x250] sm:$0xff] }
  0x61   :  { %2154 = vst [vmem:[#allocation7 + $0x210] sm:$0xff] %v1642_v20  ;;  %v1645_v32 = vmul.f32 %v1133_v21, %v1133_v21  ;;  %v1136_v33 = vsub.f32 %v112_v29, %v624_v30  ;;  %v625_v34 = vld [vmem:[#allocation5 + $0x248] sm:$0xff]  ;;  %v626_v36 = vld [vmem:[#allocation5 + $0x250] sm:$0xff]  ;;  %2155 = vst [vmem:[#allocation7 + $0x218] sm:$0xff] %v1643_v25 }
  0x62   :  { %2156 = vst [vmem:[#allocation7 + $0x220] sm:$0xff] %v1644_v26  ;;  %v1646_v37 = vmul.f32 %v1134_v27, %v1134_v27  ;;  %v1647_v38 = vmul.f32 %v1135_v28, %v1135_v28  ;;  %v1137_v39 = vsub.f32 %v113_v31, %v625_v34  ;;  %v1138_v40 = vsub.f32 %v114_v35, %v626_v36  ;;  %v115_v41 = vld [vmem:[#allocation2 + $0x258] sm:$0xff]  ;;  %v116_v43 = vld [vmem:[#allocation2 + $0x260] sm:$0xff]  ;;  %v117_v47 = vld [vmem:[#allocation2 + $0x268] sm:$0xff] }
  0x63   :  { %v627_v42 = vld [vmem:[#allocation5 + $0x258] sm:$0xff]  ;;  %2157 = vst [vmem:[#allocation7 + $0x228] sm:$0xff] %v1645_v32  ;;  %v1648_v44 = vmul.f32 %v1136_v33, %v1136_v33  ;;  %v628_v46 = vld [vmem:[#allocation5 + $0x260] sm:$0xff]  ;;  %v629_v48 = vld [vmem:[#allocation5 + $0x268] sm:$0xff] }
  0x64   :  { %v1139_v45 = vsub.f32 %v115_v41, %v627_v42  ;;  %2158 = vst [vmem:[#allocation7 + $0x230] sm:$0xff] %v1646_v37  ;;  %2159 = vst [vmem:[#allocation7 + $0x238] sm:$0xff] %v1647_v38  ;;  %v1649_v49 = vmul.f32 %v1137_v39, %v1137_v39  ;;  %v1650_v50 = vmul.f32 %v1138_v40, %v1138_v40  ;;  %v118_v53 = vld [vmem:[#allocation2 + $0x270] sm:$0xff]  ;;  %v119_v55 = vld [vmem:[#allocation2 + $0x278] sm:$0xff] }
  0x65   :  { %v1140_v51 = vsub.f32 %v116_v43, %v628_v46  ;;  %v1141_v52 = vsub.f32 %v117_v47, %v629_v48  ;;  %v630_v54 = vld [vmem:[#allocation5 + $0x270] sm:$0xff]  ;;  %2160 = vst [vmem:[#allocation7 + $0x240] sm:$0xff] %v1648_v44  ;;  %v631_v58 = vld [vmem:[#allocation5 + $0x278] sm:$0xff]  ;;  %v120_v59 = vld [vmem:[#allocation2 + $0x280] sm:$0xff] }
  0x66   :  { %v1651_v56 = vmul.f32 %v1139_v45, %v1139_v45  ;;  %v1142_v57 = vsub.f32 %v118_v53, %v630_v54  ;;  %v632_v60 = vld [vmem:[#allocation5 + $0x280] sm:$0xff]  ;;  %2161 = vst [vmem:[#allocation7 + $0x248] sm:$0xff] %v1649_v49  ;;  %2162 = vst [vmem:[#allocation7 + $0x250] sm:$0xff] %v1650_v50  ;;  %v1143_v63 = vsub.f32 %v119_v55, %v631_v58  ;;  %v121_v1 = vld [vmem:[#allocation2 + $0x288] sm:$0xff] }
  0x67   :  { %v1652_v61 = vmul.f32 %v1140_v51, %v1140_v51  ;;  %v1653_v62 = vmul.f32 %v1141_v52, %v1141_v52  ;;  %v1144_v0 = vsub.f32 %v120_v59, %v632_v60  ;;  %v633_v2 = vld [vmem:[#allocation5 + $0x288] sm:$0xff]  ;;  %v122_v3 = vld [vmem:[#allocation2 + $0x290] sm:$0xff]  ;;  %v123_v7 = vld [vmem:[#allocation2 + $0x298] sm:$0xff] }
  0x68   :  { %2163 = vst [vmem:[#allocation7 + $0x258] sm:$0xff] %v1651_v56  ;;  %v1654_v4 = vmul.f32 %v1142_v57, %v1142_v57  ;;  %v1145_v5 = vsub.f32 %v121_v1, %v633_v2  ;;  %v634_v6 = vld [vmem:[#allocation5 + $0x290] sm:$0xff]  ;;  %v635_v8 = vld [vmem:[#allocation5 + $0x298] sm:$0xff]  ;;  %v1655_v9 = vmul.f32 %v1143_v63, %v1143_v63  ;;  %v124_v13 = vld [vmem:[#allocation2 + $0x2a0] sm:$0xff] }
  0x69   :  { %2164 = vst [vmem:[#allocation7 + $0x260] sm:$0xff] %v1652_v61  ;;  %2165 = vst [vmem:[#allocation7 + $0x268] sm:$0xff] %v1653_v62  ;;  %v1656_v10 = vmul.f32 %v1144_v0, %v1144_v0  ;;  %v1146_v11 = vsub.f32 %v122_v3, %v634_v6  ;;  %v1147_v12 = vsub.f32 %v123_v7, %v635_v8  ;;  %v636_v14 = vld [vmem:[#allocation5 + $0x2a0] sm:$0xff]  ;;  %v125_v15 = vld [vmem:[#allocation2 + $0x2a8] sm:$0xff] }
  0x6a   :  { %2166 = vst [vmem:[#allocation7 + $0x270] sm:$0xff] %v1654_v4  ;;  %v1657_v16 = vmul.f32 %v1145_v5, %v1145_v5  ;;  %v1148_v17 = vsub.f32 %v124_v13, %v636_v14  ;;  %v637_v18 = vld [vmem:[#allocation5 + $0x2a8] sm:$0xff]  ;;  %v126_v19 = vld [vmem:[#allocation2 + $0x2b0] sm:$0xff]  ;;  %2167 = vst [vmem:[#allocation7 + $0x278] sm:$0xff] %v1655_v9 }
  0x6b   :  { %v638_v20 = vld [vmem:[#allocation5 + $0x2b0] sm:$0xff]  ;;  %2168 = vst [vmem:[#allocation7 + $0x280] sm:$0xff] %v1656_v10  ;;  %v1658_v21 = vmul.f32 %v1146_v11, %v1146_v11  ;;  %v1659_v22 = vmul.f32 %v1147_v12, %v1147_v12  ;;  %v1149_v23 = vsub.f32 %v125_v15, %v637_v18  ;;  %v127_v25 = vld [vmem:[#allocation2 + $0x2b8] sm:$0xff]  ;;  %v128_v27 = vld [vmem:[#allocation2 + $0x2c0] sm:$0xff] }
  0x6c   :  { %v1150_v24 = vsub.f32 %v126_v19, %v638_v20  ;;  %v639_v26 = vld [vmem:[#allocation5 + $0x2b8] sm:$0xff]  ;;  %2169 = vst [vmem:[#allocation7 + $0x288] sm:$0xff] %v1657_v16  ;;  %v1660_v28 = vmul.f32 %v1148_v17, %v1148_v17  ;;  %v640_v30 = vld [vmem:[#allocation5 + $0x2c0] sm:$0xff]  ;;  %v129_v31 = vld [vmem:[#allocation2 + $0x2c8] sm:$0xff] }
  0x6d   :  { %v1151_v29 = vsub.f32 %v127_v25, %v639_v26  ;;  %v641_v32 = vld [vmem:[#allocation5 + $0x2c8] sm:$0xff]  ;;  %2170 = vst [vmem:[#allocation7 + $0x290] sm:$0xff] %v1658_v21  ;;  %2171 = vst [vmem:[#allocation7 + $0x298] sm:$0xff] %v1659_v22  ;;  %v1661_v33 = vmul.f32 %v1149_v23, %v1149_v23  ;;  %v1152_v35 = vsub.f32 %v128_v27, %v640_v30  ;;  %v130_v37 = vld [vmem:[#allocation2 + $0x2d0] sm:$0xff] }
  0x6e   :  { %v1662_v34 = vmul.f32 %v1150_v24, %v1150_v24  ;;  %v1153_v36 = vsub.f32 %v129_v31, %v641_v32  ;;  %v642_v38 = vld [vmem:[#allocation5 + $0x2d0] sm:$0xff]  ;;  %v131_v39 = vld [vmem:[#allocation2 + $0x2d8] sm:$0xff]  ;;  %2172 = vst [vmem:[#allocation7 + $0x2a0] sm:$0xff] %v1660_v28  ;;  %v132_v43 = vld [vmem:[#allocation2 + $0x2e0] sm:$0xff] }
  0x6f   :  { %v1663_v40 = vmul.f32 %v1151_v29, %v1151_v29  ;;  %v1154_v41 = vsub.f32 %v130_v37, %v642_v38  ;;  %v643_v42 = vld [vmem:[#allocation5 + $0x2d8] sm:$0xff]  ;;  %v644_v44 = vld [vmem:[#allocation5 + $0x2e0] sm:$0xff]  ;;  %2173 = vst [vmem:[#allocation7 + $0x2a8] sm:$0xff] %v1661_v33  ;;  %v1664_v45 = vmul.f32 %v1152_v35, %v1152_v35  ;;  %v133_v49 = vld [vmem:[#allocation2 + $0x2e8] sm:$0xff] }
  0x70   :  { %2174 = vst [vmem:[#allocation7 + $0x2b0] sm:$0xff] %v1662_v34  ;;  %v1665_v46 = vmul.f32 %v1153_v36, %v1153_v36  ;;  %v1155_v47 = vsub.f32 %v131_v39, %v643_v42  ;;  %v1156_v48 = vsub.f32 %v132_v43, %v644_v44  ;;  %v645_v50 = vld [vmem:[#allocation5 + $0x2e8] sm:$0xff]  ;;  %v134_v51 = vld [vmem:[#allocation2 + $0x2f0] sm:$0xff]  ;;  %v135_v55 = vld [vmem:[#allocation2 + $0x2f8] sm:$0xff] }
  0x71   :  { %2175 = vst [vmem:[#allocation7 + $0x2b8] sm:$0xff] %v1663_v40  ;;  %v1666_v52 = vmul.f32 %v1154_v41, %v1154_v41  ;;  %v1157_v53 = vsub.f32 %v133_v49, %v645_v50  ;;  %v646_v54 = vld [vmem:[#allocation5 + $0x2f0] sm:$0xff]  ;;  %v647_v56 = vld [vmem:[#allocation5 + $0x2f8] sm:$0xff]  ;;  %2176 = vst [vmem:[#allocation7 + $0x2c0] sm:$0xff] %v1664_v45 }
  0x72   :  { %2177 = vst [vmem:[#allocation7 + $0x2c8] sm:$0xff] %v1665_v46  ;;  %v1667_v57 = vmul.f32 %v1155_v47, %v1155_v47  ;;  %v1668_v58 = vmul.f32 %v1156_v48, %v1156_v48  ;;  %v1158_v59 = vsub.f32 %v134_v51, %v646_v54  ;;  %v1159_v60 = vsub.f32 %v135_v55, %v647_v56  ;;  %v136_v61 = vld [vmem:[#allocation2 + $0x300] sm:$0xff]  ;;  %v137_v63 = vld [vmem:[#allocation2 + $0x308] sm:$0xff]  ;;  %v138_v3 = vld [vmem:[#allocation2 + $0x310] sm:$0xff] }
  0x73   :  { %v648_v62 = vld [vmem:[#allocation5 + $0x300] sm:$0xff]  ;;  %2178 = vst [vmem:[#allocation7 + $0x2d0] sm:$0xff] %v1666_v52  ;;  %v1669_v0 = vmul.f32 %v1157_v53, %v1157_v53  ;;  %v649_v2 = vld [vmem:[#allocation5 + $0x308] sm:$0xff]  ;;  %v650_v4 = vld [vmem:[#allocation5 + $0x310] sm:$0xff] }
  0x74   :  { %v1160_v1 = vsub.f32 %v136_v61, %v648_v62  ;;  %2179 = vst [vmem:[#allocation7 + $0x2d8] sm:$0xff] %v1667_v57  ;;  %2180 = vst [vmem:[#allocation7 + $0x2e0] sm:$0xff] %v1668_v58  ;;  %v1670_v5 = vmul.f32 %v1158_v59, %v1158_v59  ;;  %v1671_v6 = vmul.f32 %v1159_v60, %v1159_v60  ;;  %v139_v9 = vld [vmem:[#allocation2 + $0x318] sm:$0xff]  ;;  %v140_v11 = vld [vmem:[#allocation2 + $0x320] sm:$0xff] }
  0x75   :  { %v1161_v7 = vsub.f32 %v137_v63, %v649_v2  ;;  %v1162_v8 = vsub.f32 %v138_v3, %v650_v4  ;;  %v651_v10 = vld [vmem:[#allocation5 + $0x318] sm:$0xff]  ;;  %2181 = vst [vmem:[#allocation7 + $0x2e8] sm:$0xff] %v1669_v0  ;;  %v652_v14 = vld [vmem:[#allocation5 + $0x320] sm:$0xff]  ;;  %v141_v15 = vld [vmem:[#allocation2 + $0x328] sm:$0xff] }
  0x76   :  { %v1672_v12 = vmul.f32 %v1160_v1, %v1160_v1  ;;  %v1163_v13 = vsub.f32 %v139_v9, %v651_v10  ;;  %v653_v16 = vld [vmem:[#allocation5 + $0x328] sm:$0xff]  ;;  %2182 = vst [vmem:[#allocation7 + $0x2f0] sm:$0xff] %v1670_v5  ;;  %2183 = vst [vmem:[#allocation7 + $0x2f8] sm:$0xff] %v1671_v6  ;;  %v1164_v19 = vsub.f32 %v140_v11, %v652_v14  ;;  %v142_v21 = vld [vmem:[#allocation2 + $0x330] sm:$0xff] }
  0x77   :  { %v1673_v17 = vmul.f32 %v1161_v7, %v1161_v7  ;;  %v1674_v18 = vmul.f32 %v1162_v8, %v1162_v8  ;;  %v1165_v20 = vsub.f32 %v141_v15, %v653_v16  ;;  %v654_v22 = vld [vmem:[#allocation5 + $0x330] sm:$0xff]  ;;  %v143_v23 = vld [vmem:[#allocation2 + $0x338] sm:$0xff]  ;;  %v144_v27 = vld [vmem:[#allocation2 + $0x340] sm:$0xff] }
  0x78   :  { %2184 = vst [vmem:[#allocation7 + $0x300] sm:$0xff] %v1672_v12  ;;  %v1675_v24 = vmul.f32 %v1163_v13, %v1163_v13  ;;  %v1166_v25 = vsub.f32 %v142_v21, %v654_v22  ;;  %v655_v26 = vld [vmem:[#allocation5 + $0x338] sm:$0xff]  ;;  %v656_v28 = vld [vmem:[#allocation5 + $0x340] sm:$0xff]  ;;  %v1676_v29 = vmul.f32 %v1164_v19, %v1164_v19  ;;  %v145_v33 = vld [vmem:[#allocation2 + $0x348] sm:$0xff] }
  0x79   :  { %2185 = vst [vmem:[#allocation7 + $0x308] sm:$0xff] %v1673_v17  ;;  %2186 = vst [vmem:[#allocation7 + $0x310] sm:$0xff] %v1674_v18  ;;  %v1677_v30 = vmul.f32 %v1165_v20, %v1165_v20  ;;  %v1167_v31 = vsub.f32 %v143_v23, %v655_v26  ;;  %v1168_v32 = vsub.f32 %v144_v27, %v656_v28  ;;  %v657_v34 = vld [vmem:[#allocation5 + $0x348] sm:$0xff]  ;;  %v146_v35 = vld [vmem:[#allocation2 + $0x350] sm:$0xff] }
  0x7a   :  { %2187 = vst [vmem:[#allocation7 + $0x318] sm:$0xff] %v1675_v24  ;;  %v1678_v36 = vmul.f32 %v1166_v25, %v1166_v25  ;;  %v1169_v37 = vsub.f32 %v145_v33, %v657_v34  ;;  %v658_v38 = vld [vmem:[#allocation5 + $0x350] sm:$0xff]  ;;  %v147_v39 = vld [vmem:[#allocation2 + $0x358] sm:$0xff]  ;;  %2188 = vst [vmem:[#allocation7 + $0x320] sm:$0xff] %v1676_v29 }
  0x7b   :  { %v659_v40 = vld [vmem:[#allocation5 + $0x358] sm:$0xff]  ;;  %2189 = vst [vmem:[#allocation7 + $0x328] sm:$0xff] %v1677_v30  ;;  %v1679_v41 = vmul.f32 %v1167_v31, %v1167_v31  ;;  %v1680_v42 = vmul.f32 %v1168_v32, %v1168_v32  ;;  %v1170_v43 = vsub.f32 %v146_v35, %v658_v38  ;;  %v148_v45 = vld [vmem:[#allocation2 + $0x360] sm:$0xff]  ;;  %v149_v47 = vld [vmem:[#allocation2 + $0x368] sm:$0xff] }
  0x7c   :  { %v1171_v44 = vsub.f32 %v147_v39, %v659_v40  ;;  %v660_v46 = vld [vmem:[#allocation5 + $0x360] sm:$0xff]  ;;  %2190 = vst [vmem:[#allocation7 + $0x330] sm:$0xff] %v1678_v36  ;;  %v1681_v48 = vmul.f32 %v1169_v37, %v1169_v37  ;;  %v661_v50 = vld [vmem:[#allocation5 + $0x368] sm:$0xff]  ;;  %v150_v51 = vld [vmem:[#allocation2 + $0x370] sm:$0xff] }
  0x7d   :  { %v1172_v49 = vsub.f32 %v148_v45, %v660_v46  ;;  %v662_v52 = vld [vmem:[#allocation5 + $0x370] sm:$0xff]  ;;  %2191 = vst [vmem:[#allocation7 + $0x338] sm:$0xff] %v1679_v41  ;;  %2192 = vst [vmem:[#allocation7 + $0x340] sm:$0xff] %v1680_v42  ;;  %v1682_v53 = vmul.f32 %v1170_v43, %v1170_v43  ;;  %v1173_v55 = vsub.f32 %v149_v47, %v661_v50  ;;  %v151_v57 = vld [vmem:[#allocation2 + $0x378] sm:$0xff] }
  0x7e   :  { %v1683_v54 = vmul.f32 %v1171_v44, %v1171_v44  ;;  %v1174_v56 = vsub.f32 %v150_v51, %v662_v52  ;;  %v663_v58 = vld [vmem:[#allocation5 + $0x378] sm:$0xff]  ;;  %v152_v59 = vld [vmem:[#allocation2 + $0x380] sm:$0xff]  ;;  %2193 = vst [vmem:[#allocation7 + $0x348] sm:$0xff] %v1681_v48  ;;  %v153_v63 = vld [vmem:[#allocation2 + $0x388] sm:$0xff] }
  0x7f   :  { %v1684_v60 = vmul.f32 %v1172_v49, %v1172_v49  ;;  %v1175_v61 = vsub.f32 %v151_v57, %v663_v58  ;;  %v664_v62 = vld [vmem:[#allocation5 + $0x380] sm:$0xff]  ;;  %v665_v0 = vld [vmem:[#allocation5 + $0x388] sm:$0xff]  ;;  %2194 = vst [vmem:[#allocation7 + $0x350] sm:$0xff] %v1682_v53  ;;  %v1685_v1 = vmul.f32 %v1173_v55, %v1173_v55  ;;  %v154_v5 = vld [vmem:[#allocation2 + $0x390] sm:$0xff] }
  0x80   :  { %2195 = vst [vmem:[#allocation7 + $0x358] sm:$0xff] %v1683_v54  ;;  %v1686_v2 = vmul.f32 %v1174_v56, %v1174_v56  ;;  %v1176_v3 = vsub.f32 %v152_v59, %v664_v62  ;;  %v1177_v4 = vsub.f32 %v153_v63, %v665_v0  ;;  %v666_v6 = vld [vmem:[#allocation5 + $0x390] sm:$0xff]  ;;  %v155_v7 = vld [vmem:[#allocation2 + $0x398] sm:$0xff]  ;;  %v156_v11 = vld [vmem:[#allocation2 + $0x3a0] sm:$0xff] }
  0x81   :  { %2196 = vst [vmem:[#allocation7 + $0x360] sm:$0xff] %v1684_v60  ;;  %v1687_v8 = vmul.f32 %v1175_v61, %v1175_v61  ;;  %v1178_v9 = vsub.f32 %v154_v5, %v666_v6  ;;  %v667_v10 = vld [vmem:[#allocation5 + $0x398] sm:$0xff]  ;;  %v668_v12 = vld [vmem:[#allocation5 + $0x3a0] sm:$0xff]  ;;  %2197 = vst [vmem:[#allocation7 + $0x368] sm:$0xff] %v1685_v1 }
  0x82   :  { %2198 = vst [vmem:[#allocation7 + $0x370] sm:$0xff] %v1686_v2  ;;  %v1688_v13 = vmul.f32 %v1176_v3, %v1176_v3  ;;  %v1689_v14 = vmul.f32 %v1177_v4, %v1177_v4  ;;  %v1179_v15 = vsub.f32 %v155_v7, %v667_v10  ;;  %v1180_v16 = vsub.f32 %v156_v11, %v668_v12  ;;  %v157_v17 = vld [vmem:[#allocation2 + $0x3a8] sm:$0xff]  ;;  %v158_v19 = vld [vmem:[#allocation2 + $0x3b0] sm:$0xff]  ;;  %v159_v23 = vld [vmem:[#allocation2 + $0x3b8] sm:$0xff] }
  0x83   :  { %v669_v18 = vld [vmem:[#allocation5 + $0x3a8] sm:$0xff]  ;;  %2199 = vst [vmem:[#allocation7 + $0x378] sm:$0xff] %v1687_v8  ;;  %v1690_v20 = vmul.f32 %v1178_v9, %v1178_v9  ;;  %v670_v22 = vld [vmem:[#allocation5 + $0x3b0] sm:$0xff]  ;;  %v671_v24 = vld [vmem:[#allocation5 + $0x3b8] sm:$0xff] }
  0x84   :  { %v1181_v21 = vsub.f32 %v157_v17, %v669_v18  ;;  %2200 = vst [vmem:[#allocation7 + $0x380] sm:$0xff] %v1688_v13  ;;  %2201 = vst [vmem:[#allocation7 + $0x388] sm:$0xff] %v1689_v14  ;;  %v1691_v25 = vmul.f32 %v1179_v15, %v1179_v15  ;;  %v1692_v26 = vmul.f32 %v1180_v16, %v1180_v16  ;;  %v160_v29 = vld [vmem:[#allocation2 + $0x3c0] sm:$0xff]  ;;  %v161_v31 = vld [vmem:[#allocation2 + $0x3c8] sm:$0xff] }
  0x85   :  { %v1182_v27 = vsub.f32 %v158_v19, %v670_v22  ;;  %v1183_v28 = vsub.f32 %v159_v23, %v671_v24  ;;  %v672_v30 = vld [vmem:[#allocation5 + $0x3c0] sm:$0xff]  ;;  %2202 = vst [vmem:[#allocation7 + $0x390] sm:$0xff] %v1690_v20  ;;  %v673_v34 = vld [vmem:[#allocation5 + $0x3c8] sm:$0xff]  ;;  %v162_v35 = vld [vmem:[#allocation2 + $0x3d0] sm:$0xff] }
  0x86   :  { %v1693_v32 = vmul.f32 %v1181_v21, %v1181_v21  ;;  %v1184_v33 = vsub.f32 %v160_v29, %v672_v30  ;;  %v674_v36 = vld [vmem:[#allocation5 + $0x3d0] sm:$0xff]  ;;  %2203 = vst [vmem:[#allocation7 + $0x398] sm:$0xff] %v1691_v25  ;;  %2204 = vst [vmem:[#allocation7 + $0x3a0] sm:$0xff] %v1692_v26  ;;  %v1185_v39 = vsub.f32 %v161_v31, %v673_v34  ;;  %v163_v41 = vld [vmem:[#allocation2 + $0x3d8] sm:$0xff] }
  0x87   :  { %v1694_v37 = vmul.f32 %v1182_v27, %v1182_v27  ;;  %v1695_v38 = vmul.f32 %v1183_v28, %v1183_v28  ;;  %v1186_v40 = vsub.f32 %v162_v35, %v674_v36  ;;  %v675_v42 = vld [vmem:[#allocation5 + $0x3d8] sm:$0xff]  ;;  %v164_v43 = vld [vmem:[#allocation2 + $0x3e0] sm:$0xff]  ;;  %v165_v47 = vld [vmem:[#allocation2 + $0x3e8] sm:$0xff] }
  0x88   :  { %2205 = vst [vmem:[#allocation7 + $0x3a8] sm:$0xff] %v1693_v32  ;;  %v1696_v44 = vmul.f32 %v1184_v33, %v1184_v33  ;;  %v1187_v45 = vsub.f32 %v163_v41, %v675_v42  ;;  %v676_v46 = vld [vmem:[#allocation5 + $0x3e0] sm:$0xff]  ;;  %v677_v48 = vld [vmem:[#allocation5 + $0x3e8] sm:$0xff]  ;;  %v1697_v49 = vmul.f32 %v1185_v39, %v1185_v39  ;;  %v166_v53 = vld [vmem:[#allocation2 + $0x3f0] sm:$0xff] }
  0x89   :  { %2206 = vst [vmem:[#allocation7 + $0x3b0] sm:$0xff] %v1694_v37  ;;  %2207 = vst [vmem:[#allocation7 + $0x3b8] sm:$0xff] %v1695_v38  ;;  %v1698_v50 = vmul.f32 %v1186_v40, %v1186_v40  ;;  %v1188_v51 = vsub.f32 %v164_v43, %v676_v46  ;;  %v1189_v52 = vsub.f32 %v165_v47, %v677_v48  ;;  %v678_v54 = vld [vmem:[#allocation5 + $0x3f0] sm:$0xff]  ;;  %v167_v55 = vld [vmem:[#allocation2 + $0x3f8] sm:$0xff] }
  0x8a   :  { %2208 = vst [vmem:[#allocation7 + $0x3c0] sm:$0xff] %v1696_v44  ;;  %v1699_v56 = vmul.f32 %v1187_v45, %v1187_v45  ;;  %v1190_v57 = vsub.f32 %v166_v53, %v678_v54  ;;  %v679_v58 = vld [vmem:[#allocation5 + $0x3f8] sm:$0xff]  ;;  %v168_v59 = vld [vmem:[#allocation2 + $0x400] sm:$0xff]  ;;  %2209 = vst [vmem:[#allocation7 + $0x3c8] sm:$0xff] %v1697_v49 }
  0x8b   :  { %v680_v60 = vld [vmem:[#allocation5 + $0x400] sm:$0xff]  ;;  %2210 = vst [vmem:[#allocation7 + $0x3d0] sm:$0xff] %v1698_v50  ;;  %v1700_v61 = vmul.f32 %v1188_v51, %v1188_v51  ;;  %v1701_v62 = vmul.f32 %v1189_v52, %v1189_v52  ;;  %v1191_v63 = vsub.f32 %v167_v55, %v679_v58  ;;  %v169_v1 = vld [vmem:[#allocation2 + $0x408] sm:$0xff]  ;;  %v170_v3 = vld [vmem:[#allocation2 + $0x410] sm:$0xff] }
  0x8c   :  { %v1192_v0 = vsub.f32 %v168_v59, %v680_v60  ;;  %v681_v2 = vld [vmem:[#allocation5 + $0x408] sm:$0xff]  ;;  %2211 = vst [vmem:[#allocation7 + $0x3d8] sm:$0xff] %v1699_v56  ;;  %v1702_v4 = vmul.f32 %v1190_v57, %v1190_v57  ;;  %v682_v6 = vld [vmem:[#allocation5 + $0x410] sm:$0xff]  ;;  %v171_v7 = vld [vmem:[#allocation2 + $0x418] sm:$0xff] }
  0x8d   :  { %v1193_v5 = vsub.f32 %v169_v1, %v681_v2  ;;  %v683_v8 = vld [vmem:[#allocation5 + $0x418] sm:$0xff]  ;;  %2212 = vst [vmem:[#allocation7 + $0x3e0] sm:$0xff] %v1700_v61  ;;  %2213 = vst [vmem:[#allocation7 + $0x3e8] sm:$0xff] %v1701_v62  ;;  %v1703_v9 = vmul.f32 %v1191_v63, %v1191_v63  ;;  %v1194_v11 = vsub.f32 %v170_v3, %v682_v6  ;;  %v172_v13 = vld [vmem:[#allocation2 + $0x420] sm:$0xff] }
  0x8e   :  { %v1704_v10 = vmul.f32 %v1192_v0, %v1192_v0  ;;  %v1195_v12 = vsub.f32 %v171_v7, %v683_v8  ;;  %v684_v14 = vld [vmem:[#allocation5 + $0x420] sm:$0xff]  ;;  %v173_v15 = vld [vmem:[#allocation2 + $0x428] sm:$0xff]  ;;  %2214 = vst [vmem:[#allocation7 + $0x3f0] sm:$0xff] %v1702_v4  ;;  %v174_v19 = vld [vmem:[#allocation2 + $0x430] sm:$0xff] }
  0x8f   :  { %v1705_v16 = vmul.f32 %v1193_v5, %v1193_v5  ;;  %v1196_v17 = vsub.f32 %v172_v13, %v684_v14  ;;  %v685_v18 = vld [vmem:[#allocation5 + $0x428] sm:$0xff]  ;;  %v686_v20 = vld [vmem:[#allocation5 + $0x430] sm:$0xff]  ;;  %2215 = vst [vmem:[#allocation7 + $0x3f8] sm:$0xff] %v1703_v9  ;;  %v1706_v21 = vmul.f32 %v1194_v11, %v1194_v11  ;;  %v175_v25 = vld [vmem:[#allocation2 + $0x438] sm:$0xff] }
  0x90   :  { %2216 = vst [vmem:[#allocation7 + $0x400] sm:$0xff] %v1704_v10  ;;  %v1707_v22 = vmul.f32 %v1195_v12, %v1195_v12  ;;  %v1197_v23 = vsub.f32 %v173_v15, %v685_v18  ;;  %v1198_v24 = vsub.f32 %v174_v19, %v686_v20  ;;  %v687_v26 = vld [vmem:[#allocation5 + $0x438] sm:$0xff]  ;;  %v176_v27 = vld [vmem:[#allocation2 + $0x440] sm:$0xff]  ;;  %v177_v31 = vld [vmem:[#allocation2 + $0x448] sm:$0xff] }
  0x91   :  { %2217 = vst [vmem:[#allocation7 + $0x408] sm:$0xff] %v1705_v16  ;;  %v1708_v28 = vmul.f32 %v1196_v17, %v1196_v17  ;;  %v1199_v29 = vsub.f32 %v175_v25, %v687_v26  ;;  %v688_v30 = vld [vmem:[#allocation5 + $0x440] sm:$0xff]  ;;  %v689_v32 = vld [vmem:[#allocation5 + $0x448] sm:$0xff]  ;;  %2218 = vst [vmem:[#allocation7 + $0x410] sm:$0xff] %v1706_v21 }
  0x92   :  { %2219 = vst [vmem:[#allocation7 + $0x418] sm:$0xff] %v1707_v22  ;;  %v1709_v33 = vmul.f32 %v1197_v23, %v1197_v23  ;;  %v1710_v34 = vmul.f32 %v1198_v24, %v1198_v24  ;;  %v1200_v35 = vsub.f32 %v176_v27, %v688_v30  ;;  %v1201_v36 = vsub.f32 %v177_v31, %v689_v32  ;;  %v178_v37 = vld [vmem:[#allocation2 + $0x450] sm:$0xff]  ;;  %v179_v39 = vld [vmem:[#allocation2 + $0x458] sm:$0xff]  ;;  %v180_v43 = vld [vmem:[#allocation2 + $0x460] sm:$0xff] }
  0x93   :  { %v690_v38 = vld [vmem:[#allocation5 + $0x450] sm:$0xff]  ;;  %2220 = vst [vmem:[#allocation7 + $0x420] sm:$0xff] %v1708_v28  ;;  %v1711_v40 = vmul.f32 %v1199_v29, %v1199_v29  ;;  %v691_v42 = vld [vmem:[#allocation5 + $0x458] sm:$0xff]  ;;  %v692_v44 = vld [vmem:[#allocation5 + $0x460] sm:$0xff] }
  0x94   :  { %v1202_v41 = vsub.f32 %v178_v37, %v690_v38  ;;  %2221 = vst [vmem:[#allocation7 + $0x428] sm:$0xff] %v1709_v33  ;;  %2222 = vst [vmem:[#allocation7 + $0x430] sm:$0xff] %v1710_v34  ;;  %v1712_v45 = vmul.f32 %v1200_v35, %v1200_v35  ;;  %v1713_v46 = vmul.f32 %v1201_v36, %v1201_v36  ;;  %v181_v49 = vld [vmem:[#allocation2 + $0x468] sm:$0xff]  ;;  %v182_v51 = vld [vmem:[#allocation2 + $0x470] sm:$0xff] }
  0x95   :  { %v1203_v47 = vsub.f32 %v179_v39, %v691_v42  ;;  %v1204_v48 = vsub.f32 %v180_v43, %v692_v44  ;;  %v693_v50 = vld [vmem:[#allocation5 + $0x468] sm:$0xff]  ;;  %2223 = vst [vmem:[#allocation7 + $0x438] sm:$0xff] %v1711_v40  ;;  %v694_v54 = vld [vmem:[#allocation5 + $0x470] sm:$0xff]  ;;  %v183_v55 = vld [vmem:[#allocation2 + $0x478] sm:$0xff] }
  0x96   :  { %v1714_v52 = vmul.f32 %v1202_v41, %v1202_v41  ;;  %v1205_v53 = vsub.f32 %v181_v49, %v693_v50  ;;  %v695_v56 = vld [vmem:[#allocation5 + $0x478] sm:$0xff]  ;;  %2224 = vst [vmem:[#allocation7 + $0x440] sm:$0xff] %v1712_v45  ;;  %2225 = vst [vmem:[#allocation7 + $0x448] sm:$0xff] %v1713_v46  ;;  %v1206_v59 = vsub.f32 %v182_v51, %v694_v54  ;;  %v184_v61 = vld [vmem:[#allocation2 + $0x480] sm:$0xff] }
  0x97   :  { %v1715_v57 = vmul.f32 %v1203_v47, %v1203_v47  ;;  %v1716_v58 = vmul.f32 %v1204_v48, %v1204_v48  ;;  %v1207_v60 = vsub.f32 %v183_v55, %v695_v56  ;;  %v696_v62 = vld [vmem:[#allocation5 + $0x480] sm:$0xff]  ;;  %v185_v63 = vld [vmem:[#allocation2 + $0x488] sm:$0xff]  ;;  %v186_v3 = vld [vmem:[#allocation2 + $0x490] sm:$0xff] }
  0x98   :  { %2226 = vst [vmem:[#allocation7 + $0x450] sm:$0xff] %v1714_v52  ;;  %v1717_v0 = vmul.f32 %v1205_v53, %v1205_v53  ;;  %v1208_v1 = vsub.f32 %v184_v61, %v696_v62  ;;  %v697_v2 = vld [vmem:[#allocation5 + $0x488] sm:$0xff]  ;;  %v698_v4 = vld [vmem:[#allocation5 + $0x490] sm:$0xff]  ;;  %v1718_v5 = vmul.f32 %v1206_v59, %v1206_v59  ;;  %v187_v9 = vld [vmem:[#allocation2 + $0x498] sm:$0xff] }
  0x99   :  { %2227 = vst [vmem:[#allocation7 + $0x458] sm:$0xff] %v1715_v57  ;;  %2228 = vst [vmem:[#allocation7 + $0x460] sm:$0xff] %v1716_v58  ;;  %v1719_v6 = vmul.f32 %v1207_v60, %v1207_v60  ;;  %v1209_v7 = vsub.f32 %v185_v63, %v697_v2  ;;  %v1210_v8 = vsub.f32 %v186_v3, %v698_v4  ;;  %v699_v10 = vld [vmem:[#allocation5 + $0x498] sm:$0xff]  ;;  %v188_v11 = vld [vmem:[#allocation2 + $0x4a0] sm:$0xff] }
  0x9a   :  { %2229 = vst [vmem:[#allocation7 + $0x468] sm:$0xff] %v1717_v0  ;;  %v1720_v12 = vmul.f32 %v1208_v1, %v1208_v1  ;;  %v1211_v13 = vsub.f32 %v187_v9, %v699_v10  ;;  %v700_v14 = vld [vmem:[#allocation5 + $0x4a0] sm:$0xff]  ;;  %v189_v15 = vld [vmem:[#allocation2 + $0x4a8] sm:$0xff]  ;;  %2230 = vst [vmem:[#allocation7 + $0x470] sm:$0xff] %v1718_v5 }
  0x9b   :  { %v701_v16 = vld [vmem:[#allocation5 + $0x4a8] sm:$0xff]  ;;  %2231 = vst [vmem:[#allocation7 + $0x478] sm:$0xff] %v1719_v6  ;;  %v1721_v17 = vmul.f32 %v1209_v7, %v1209_v7  ;;  %v1722_v18 = vmul.f32 %v1210_v8, %v1210_v8  ;;  %v1212_v19 = vsub.f32 %v188_v11, %v700_v14  ;;  %v190_v21 = vld [vmem:[#allocation2 + $0x4b0] sm:$0xff]  ;;  %v191_v23 = vld [vmem:[#allocation2 + $0x4b8] sm:$0xff] }
  0x9c   :  { %v1213_v20 = vsub.f32 %v189_v15, %v701_v16  ;;  %v702_v22 = vld [vmem:[#allocation5 + $0x4b0] sm:$0xff]  ;;  %2232 = vst [vmem:[#allocation7 + $0x480] sm:$0xff] %v1720_v12  ;;  %v1723_v24 = vmul.f32 %v1211_v13, %v1211_v13  ;;  %v703_v26 = vld [vmem:[#allocation5 + $0x4b8] sm:$0xff]  ;;  %v192_v27 = vld [vmem:[#allocation2 + $0x4c0] sm:$0xff] }
  0x9d   :  { %v1214_v25 = vsub.f32 %v190_v21, %v702_v22  ;;  %v704_v28 = vld [vmem:[#allocation5 + $0x4c0] sm:$0xff]  ;;  %2233 = vst [vmem:[#allocation7 + $0x488] sm:$0xff] %v1721_v17  ;;  %2234 = vst [vmem:[#allocation7 + $0x490] sm:$0xff] %v1722_v18  ;;  %v1724_v29 = vmul.f32 %v1212_v19, %v1212_v19  ;;  %v1215_v31 = vsub.f32 %v191_v23, %v703_v26  ;;  %v193_v33 = vld [vmem:[#allocation2 + $0x4c8] sm:$0xff] }
  0x9e   :  { %v1725_v30 = vmul.f32 %v1213_v20, %v1213_v20  ;;  %v1216_v32 = vsub.f32 %v192_v27, %v704_v28  ;;  %v705_v34 = vld [vmem:[#allocation5 + $0x4c8] sm:$0xff]  ;;  %v194_v35 = vld [vmem:[#allocation2 + $0x4d0] sm:$0xff]  ;;  %2235 = vst [vmem:[#allocation7 + $0x498] sm:$0xff] %v1723_v24  ;;  %v195_v39 = vld [vmem:[#allocation2 + $0x4d8] sm:$0xff] }
  0x9f   :  { %v1726_v36 = vmul.f32 %v1214_v25, %v1214_v25  ;;  %v1217_v37 = vsub.f32 %v193_v33, %v705_v34  ;;  %v706_v38 = vld [vmem:[#allocation5 + $0x4d0] sm:$0xff]  ;;  %v707_v40 = vld [vmem:[#allocation5 + $0x4d8] sm:$0xff]  ;;  %2236 = vst [vmem:[#allocation7 + $0x4a0] sm:$0xff] %v1724_v29  ;;  %v1727_v41 = vmul.f32 %v1215_v31, %v1215_v31  ;;  %v196_v45 = vld [vmem:[#allocation2 + $0x4e0] sm:$0xff] }
  0xa0   :  { %2237 = vst [vmem:[#allocation7 + $0x4a8] sm:$0xff] %v1725_v30  ;;  %v1728_v42 = vmul.f32 %v1216_v32, %v1216_v32  ;;  %v1218_v43 = vsub.f32 %v194_v35, %v706_v38  ;;  %v1219_v44 = vsub.f32 %v195_v39, %v707_v40  ;;  %v708_v46 = vld [vmem:[#allocation5 + $0x4e0] sm:$0xff]  ;;  %v197_v47 = vld [vmem:[#allocation2 + $0x4e8] sm:$0xff]  ;;  %v198_v51 = vld [vmem:[#allocation2 + $0x4f0] sm:$0xff] }
  0xa1   :  { %2238 = vst [vmem:[#allocation7 + $0x4b0] sm:$0xff] %v1726_v36  ;;  %v1729_v48 = vmul.f32 %v1217_v37, %v1217_v37  ;;  %v1220_v49 = vsub.f32 %v196_v45, %v708_v46  ;;  %v709_v50 = vld [vmem:[#allocation5 + $0x4e8] sm:$0xff]  ;;  %v710_v52 = vld [vmem:[#allocation5 + $0x4f0] sm:$0xff]  ;;  %2239 = vst [vmem:[#allocation7 + $0x4b8] sm:$0xff] %v1727_v41 }
  0xa2   :  { %2240 = vst [vmem:[#allocation7 + $0x4c0] sm:$0xff] %v1728_v42  ;;  %v1730_v53 = vmul.f32 %v1218_v43, %v1218_v43  ;;  %v1731_v54 = vmul.f32 %v1219_v44, %v1219_v44  ;;  %v1221_v55 = vsub.f32 %v197_v47, %v709_v50  ;;  %v1222_v56 = vsub.f32 %v198_v51, %v710_v52  ;;  %v199_v57 = vld [vmem:[#allocation2 + $0x4f8] sm:$0xff]  ;;  %v200_v59 = vld [vmem:[#allocation2 + $0x500] sm:$0xff]  ;;  %v201_v63 = vld [vmem:[#allocation2 + $0x508] sm:$0xff] }
  0xa3   :  { %v711_v58 = vld [vmem:[#allocation5 + $0x4f8] sm:$0xff]  ;;  %2241 = vst [vmem:[#allocation7 + $0x4c8] sm:$0xff] %v1729_v48  ;;  %v1732_v60 = vmul.f32 %v1220_v49, %v1220_v49  ;;  %v712_v62 = vld [vmem:[#allocation5 + $0x500] sm:$0xff]  ;;  %v713_v0 = vld [vmem:[#allocation5 + $0x508] sm:$0xff] }
  0xa4   :  { %v1223_v61 = vsub.f32 %v199_v57, %v711_v58  ;;  %2242 = vst [vmem:[#allocation7 + $0x4d0] sm:$0xff] %v1730_v53  ;;  %2243 = vst [vmem:[#allocation7 + $0x4d8] sm:$0xff] %v1731_v54  ;;  %v1733_v1 = vmul.f32 %v1221_v55, %v1221_v55  ;;  %v1734_v2 = vmul.f32 %v1222_v56, %v1222_v56  ;;  %v202_v5 = vld [vmem:[#allocation2 + $0x510] sm:$0xff]  ;;  %v203_v7 = vld [vmem:[#allocation2 + $0x518] sm:$0xff] }
  0xa5   :  { %v1224_v3 = vsub.f32 %v200_v59, %v712_v62  ;;  %v1225_v4 = vsub.f32 %v201_v63, %v713_v0  ;;  %v714_v6 = vld [vmem:[#allocation5 + $0x510] sm:$0xff]  ;;  %2244 = vst [vmem:[#allocation7 + $0x4e0] sm:$0xff] %v1732_v60  ;;  %v715_v10 = vld [vmem:[#allocation5 + $0x518] sm:$0xff]  ;;  %v204_v11 = vld [vmem:[#allocation2 + $0x520] sm:$0xff] }
  0xa6   :  { %v1735_v8 = vmul.f32 %v1223_v61, %v1223_v61  ;;  %v1226_v9 = vsub.f32 %v202_v5, %v714_v6  ;;  %v716_v12 = vld [vmem:[#allocation5 + $0x520] sm:$0xff]  ;;  %2245 = vst [vmem:[#allocation7 + $0x4e8] sm:$0xff] %v1733_v1  ;;  %2246 = vst [vmem:[#allocation7 + $0x4f0] sm:$0xff] %v1734_v2  ;;  %v1227_v15 = vsub.f32 %v203_v7, %v715_v10  ;;  %v205_v17 = vld [vmem:[#allocation2 + $0x528] sm:$0xff] }
  0xa7   :  { %v1736_v13 = vmul.f32 %v1224_v3, %v1224_v3  ;;  %v1737_v14 = vmul.f32 %v1225_v4, %v1225_v4  ;;  %v1228_v16 = vsub.f32 %v204_v11, %v716_v12  ;;  %v717_v18 = vld [vmem:[#allocation5 + $0x528] sm:$0xff]  ;;  %v206_v19 = vld [vmem:[#allocation2 + $0x530] sm:$0xff]  ;;  %v207_v23 = vld [vmem:[#allocation2 + $0x538] sm:$0xff] }
  0xa8   :  { %2247 = vst [vmem:[#allocation7 + $0x4f8] sm:$0xff] %v1735_v8  ;;  %v1738_v20 = vmul.f32 %v1226_v9, %v1226_v9  ;;  %v1229_v21 = vsub.f32 %v205_v17, %v717_v18  ;;  %v718_v22 = vld [vmem:[#allocation5 + $0x530] sm:$0xff]  ;;  %v719_v24 = vld [vmem:[#allocation5 + $0x538] sm:$0xff]  ;;  %v1739_v25 = vmul.f32 %v1227_v15, %v1227_v15  ;;  %v208_v29 = vld [vmem:[#allocation2 + $0x540] sm:$0xff] }
  0xa9   :  { %2248 = vst [vmem:[#allocation7 + $0x500] sm:$0xff] %v1736_v13  ;;  %2249 = vst [vmem:[#allocation7 + $0x508] sm:$0xff] %v1737_v14  ;;  %v1740_v26 = vmul.f32 %v1228_v16, %v1228_v16  ;;  %v1230_v27 = vsub.f32 %v206_v19, %v718_v22  ;;  %v1231_v28 = vsub.f32 %v207_v23, %v719_v24  ;;  %v720_v30 = vld [vmem:[#allocation5 + $0x540] sm:$0xff]  ;;  %v209_v31 = vld [vmem:[#allocation2 + $0x548] sm:$0xff] }
  0xaa   :  { %2250 = vst [vmem:[#allocation7 + $0x510] sm:$0xff] %v1738_v20  ;;  %v1741_v32 = vmul.f32 %v1229_v21, %v1229_v21  ;;  %v1232_v33 = vsub.f32 %v208_v29, %v720_v30  ;;  %v721_v34 = vld [vmem:[#allocation5 + $0x548] sm:$0xff]  ;;  %v210_v35 = vld [vmem:[#allocation2 + $0x550] sm:$0xff]  ;;  %2251 = vst [vmem:[#allocation7 + $0x518] sm:$0xff] %v1739_v25 }
  0xab   :  { %v722_v36 = vld [vmem:[#allocation5 + $0x550] sm:$0xff]  ;;  %2252 = vst [vmem:[#allocation7 + $0x520] sm:$0xff] %v1740_v26  ;;  %v1742_v37 = vmul.f32 %v1230_v27, %v1230_v27  ;;  %v1743_v38 = vmul.f32 %v1231_v28, %v1231_v28  ;;  %v1233_v39 = vsub.f32 %v209_v31, %v721_v34  ;;  %v211_v41 = vld [vmem:[#allocation2 + $0x558] sm:$0xff]  ;;  %v212_v43 = vld [vmem:[#allocation2 + $0x560] sm:$0xff] }
  0xac   :  { %v1234_v40 = vsub.f32 %v210_v35, %v722_v36  ;;  %v723_v42 = vld [vmem:[#allocation5 + $0x558] sm:$0xff]  ;;  %2253 = vst [vmem:[#allocation7 + $0x528] sm:$0xff] %v1741_v32  ;;  %v1744_v44 = vmul.f32 %v1232_v33, %v1232_v33  ;;  %v724_v46 = vld [vmem:[#allocation5 + $0x560] sm:$0xff]  ;;  %v213_v47 = vld [vmem:[#allocation2 + $0x568] sm:$0xff] }
  0xad   :  { %v1235_v45 = vsub.f32 %v211_v41, %v723_v42  ;;  %v725_v48 = vld [vmem:[#allocation5 + $0x568] sm:$0xff]  ;;  %2254 = vst [vmem:[#allocation7 + $0x530] sm:$0xff] %v1742_v37  ;;  %2255 = vst [vmem:[#allocation7 + $0x538] sm:$0xff] %v1743_v38  ;;  %v1745_v49 = vmul.f32 %v1233_v39, %v1233_v39  ;;  %v1236_v51 = vsub.f32 %v212_v43, %v724_v46  ;;  %v214_v53 = vld [vmem:[#allocation2 + $0x570] sm:$0xff] }
  0xae   :  { %v1746_v50 = vmul.f32 %v1234_v40, %v1234_v40  ;;  %v1237_v52 = vsub.f32 %v213_v47, %v725_v48  ;;  %v726_v54 = vld [vmem:[#allocation5 + $0x570] sm:$0xff]  ;;  %v215_v55 = vld [vmem:[#allocation2 + $0x578] sm:$0xff]  ;;  %2256 = vst [vmem:[#allocation7 + $0x540] sm:$0xff] %v1744_v44  ;;  %v216_v59 = vld [vmem:[#allocation2 + $0x580] sm:$0xff] }
  0xaf   :  { %v1747_v56 = vmul.f32 %v1235_v45, %v1235_v45  ;;  %v1238_v57 = vsub.f32 %v214_v53, %v726_v54  ;;  %v727_v58 = vld [vmem:[#allocation5 + $0x578] sm:$0xff]  ;;  %v728_v60 = vld [vmem:[#allocation5 + $0x580] sm:$0xff]  ;;  %2257 = vst [vmem:[#allocation7 + $0x548] sm:$0xff] %v1745_v49  ;;  %v1748_v61 = vmul.f32 %v1236_v51, %v1236_v51  ;;  %v217_v1 = vld [vmem:[#allocation2 + $0x588] sm:$0xff] }
  0xb0   :  { %2258 = vst [vmem:[#allocation7 + $0x550] sm:$0xff] %v1746_v50  ;;  %v1749_v62 = vmul.f32 %v1237_v52, %v1237_v52  ;;  %v1239_v63 = vsub.f32 %v215_v55, %v727_v58  ;;  %v1240_v0 = vsub.f32 %v216_v59, %v728_v60  ;;  %v729_v2 = vld [vmem:[#allocation5 + $0x588] sm:$0xff]  ;;  %v218_v3 = vld [vmem:[#allocation2 + $0x590] sm:$0xff]  ;;  %v219_v7 = vld [vmem:[#allocation2 + $0x598] sm:$0xff] }
  0xb1   :  { %2259 = vst [vmem:[#allocation7 + $0x558] sm:$0xff] %v1747_v56  ;;  %v1750_v4 = vmul.f32 %v1238_v57, %v1238_v57  ;;  %v1241_v5 = vsub.f32 %v217_v1, %v729_v2  ;;  %v730_v6 = vld [vmem:[#allocation5 + $0x590] sm:$0xff]  ;;  %v731_v8 = vld [vmem:[#allocation5 + $0x598] sm:$0xff]  ;;  %2260 = vst [vmem:[#allocation7 + $0x560] sm:$0xff] %v1748_v61 }
  0xb2   :  { %2261 = vst [vmem:[#allocation7 + $0x568] sm:$0xff] %v1749_v62  ;;  %v1751_v9 = vmul.f32 %v1239_v63, %v1239_v63  ;;  %v1752_v10 = vmul.f32 %v1240_v0, %v1240_v0  ;;  %v1242_v11 = vsub.f32 %v218_v3, %v730_v6  ;;  %v1243_v12 = vsub.f32 %v219_v7, %v731_v8  ;;  %v220_v13 = vld [vmem:[#allocation2 + $0x5a0] sm:$0xff]  ;;  %v221_v15 = vld [vmem:[#allocation2 + $0x5a8] sm:$0xff]  ;;  %v222_v19 = vld [vmem:[#allocation2 + $0x5b0] sm:$0xff] }
  0xb3   :  { %v732_v14 = vld [vmem:[#allocation5 + $0x5a0] sm:$0xff]  ;;  %2262 = vst [vmem:[#allocation7 + $0x570] sm:$0xff] %v1750_v4  ;;  %v1753_v16 = vmul.f32 %v1241_v5, %v1241_v5  ;;  %v733_v18 = vld [vmem:[#allocation5 + $0x5a8] sm:$0xff]  ;;  %v734_v20 = vld [vmem:[#allocation5 + $0x5b0] sm:$0xff] }
  0xb4   :  { %v1244_v17 = vsub.f32 %v220_v13, %v732_v14  ;;  %2263 = vst [vmem:[#allocation7 + $0x578] sm:$0xff] %v1751_v9  ;;  %2264 = vst [vmem:[#allocation7 + $0x580] sm:$0xff] %v1752_v10  ;;  %v1754_v21 = vmul.f32 %v1242_v11, %v1242_v11  ;;  %v1755_v22 = vmul.f32 %v1243_v12, %v1243_v12  ;;  %v223_v25 = vld [vmem:[#allocation2 + $0x5b8] sm:$0xff]  ;;  %v224_v27 = vld [vmem:[#allocation2 + $0x5c0] sm:$0xff] }
  0xb5   :  { %v1245_v23 = vsub.f32 %v221_v15, %v733_v18  ;;  %v1246_v24 = vsub.f32 %v222_v19, %v734_v20  ;;  %v735_v26 = vld [vmem:[#allocation5 + $0x5b8] sm:$0xff]  ;;  %2265 = vst [vmem:[#allocation7 + $0x588] sm:$0xff] %v1753_v16  ;;  %v736_v30 = vld [vmem:[#allocation5 + $0x5c0] sm:$0xff]  ;;  %v225_v31 = vld [vmem:[#allocation2 + $0x5c8] sm:$0xff] }
  0xb6   :  { %v1756_v28 = vmul.f32 %v1244_v17, %v1244_v17  ;;  %v1247_v29 = vsub.f32 %v223_v25, %v735_v26  ;;  %v737_v32 = vld [vmem:[#allocation5 + $0x5c8] sm:$0xff]  ;;  %2266 = vst [vmem:[#allocation7 + $0x590] sm:$0xff] %v1754_v21  ;;  %2267 = vst [vmem:[#allocation7 + $0x598] sm:$0xff] %v1755_v22  ;;  %v1248_v35 = vsub.f32 %v224_v27, %v736_v30  ;;  %v226_v37 = vld [vmem:[#allocation2 + $0x5d0] sm:$0xff] }
  0xb7   :  { %v1757_v33 = vmul.f32 %v1245_v23, %v1245_v23  ;;  %v1758_v34 = vmul.f32 %v1246_v24, %v1246_v24  ;;  %v1249_v36 = vsub.f32 %v225_v31, %v737_v32  ;;  %v738_v38 = vld [vmem:[#allocation5 + $0x5d0] sm:$0xff]  ;;  %v227_v39 = vld [vmem:[#allocation2 + $0x5d8] sm:$0xff]  ;;  %v228_v43 = vld [vmem:[#allocation2 + $0x5e0] sm:$0xff] }
  0xb8   :  { %2268 = vst [vmem:[#allocation7 + $0x5a0] sm:$0xff] %v1756_v28  ;;  %v1759_v40 = vmul.f32 %v1247_v29, %v1247_v29  ;;  %v1250_v41 = vsub.f32 %v226_v37, %v738_v38  ;;  %v739_v42 = vld [vmem:[#allocation5 + $0x5d8] sm:$0xff]  ;;  %v740_v44 = vld [vmem:[#allocation5 + $0x5e0] sm:$0xff]  ;;  %v1760_v45 = vmul.f32 %v1248_v35, %v1248_v35  ;;  %v229_v49 = vld [vmem:[#allocation2 + $0x5e8] sm:$0xff] }
  0xb9   :  { %2269 = vst [vmem:[#allocation7 + $0x5a8] sm:$0xff] %v1757_v33  ;;  %2270 = vst [vmem:[#allocation7 + $0x5b0] sm:$0xff] %v1758_v34  ;;  %v1761_v46 = vmul.f32 %v1249_v36, %v1249_v36  ;;  %v1251_v47 = vsub.f32 %v227_v39, %v739_v42  ;;  %v1252_v48 = vsub.f32 %v228_v43, %v740_v44  ;;  %v741_v50 = vld [vmem:[#allocation5 + $0x5e8] sm:$0xff]  ;;  %v230_v51 = vld [vmem:[#allocation2 + $0x5f0] sm:$0xff] }
  0xba   :  { %2271 = vst [vmem:[#allocation7 + $0x5b8] sm:$0xff] %v1759_v40  ;;  %v1762_v52 = vmul.f32 %v1250_v41, %v1250_v41  ;;  %v1253_v53 = vsub.f32 %v229_v49, %v741_v50  ;;  %v742_v54 = vld [vmem:[#allocation5 + $0x5f0] sm:$0xff]  ;;  %v231_v55 = vld [vmem:[#allocation2 + $0x5f8] sm:$0xff]  ;;  %2272 = vst [vmem:[#allocation7 + $0x5c0] sm:$0xff] %v1760_v45 }
  0xbb   :  { %v743_v56 = vld [vmem:[#allocation5 + $0x5f8] sm:$0xff]  ;;  %2273 = vst [vmem:[#allocation7 + $0x5c8] sm:$0xff] %v1761_v46  ;;  %v1763_v57 = vmul.f32 %v1251_v47, %v1251_v47  ;;  %v1764_v58 = vmul.f32 %v1252_v48, %v1252_v48  ;;  %v1254_v59 = vsub.f32 %v230_v51, %v742_v54  ;;  %v232_v61 = vld [vmem:[#allocation2 + $0x600] sm:$0xff]  ;;  %v233_v63 = vld [vmem:[#allocation2 + $0x608] sm:$0xff] }
  0xbc   :  { %v1255_v60 = vsub.f32 %v231_v55, %v743_v56  ;;  %v744_v62 = vld [vmem:[#allocation5 + $0x600] sm:$0xff]  ;;  %2274 = vst [vmem:[#allocation7 + $0x5d0] sm:$0xff] %v1762_v52  ;;  %v1765_v0 = vmul.f32 %v1253_v53, %v1253_v53  ;;  %v745_v2 = vld [vmem:[#allocation5 + $0x608] sm:$0xff]  ;;  %v234_v3 = vld [vmem:[#allocation2 + $0x610] sm:$0xff] }
  0xbd   :  { %v1256_v1 = vsub.f32 %v232_v61, %v744_v62  ;;  %v746_v4 = vld [vmem:[#allocation5 + $0x610] sm:$0xff]  ;;  %2275 = vst [vmem:[#allocation7 + $0x5d8] sm:$0xff] %v1763_v57  ;;  %2276 = vst [vmem:[#allocation7 + $0x5e0] sm:$0xff] %v1764_v58  ;;  %v1766_v5 = vmul.f32 %v1254_v59, %v1254_v59  ;;  %v1257_v7 = vsub.f32 %v233_v63, %v745_v2  ;;  %v235_v9 = vld [vmem:[#allocation2 + $0x618] sm:$0xff] }
  0xbe   :  { %v1767_v6 = vmul.f32 %v1255_v60, %v1255_v60  ;;  %v1258_v8 = vsub.f32 %v234_v3, %v746_v4  ;;  %v747_v10 = vld [vmem:[#allocation5 + $0x618] sm:$0xff]  ;;  %v236_v11 = vld [vmem:[#allocation2 + $0x620] sm:$0xff]  ;;  %2277 = vst [vmem:[#allocation7 + $0x5e8] sm:$0xff] %v1765_v0  ;;  %v237_v15 = vld [vmem:[#allocation2 + $0x628] sm:$0xff] }
  0xbf   :  { %v1768_v12 = vmul.f32 %v1256_v1, %v1256_v1  ;;  %v1259_v13 = vsub.f32 %v235_v9, %v747_v10  ;;  %v748_v14 = vld [vmem:[#allocation5 + $0x620] sm:$0xff]  ;;  %v749_v16 = vld [vmem:[#allocation5 + $0x628] sm:$0xff]  ;;  %2278 = vst [vmem:[#allocation7 + $0x5f0] sm:$0xff] %v1766_v5  ;;  %v1769_v17 = vmul.f32 %v1257_v7, %v1257_v7  ;;  %v238_v21 = vld [vmem:[#allocation2 + $0x630] sm:$0xff] }
  0xc0   :  { %2279 = vst [vmem:[#allocation7 + $0x5f8] sm:$0xff] %v1767_v6  ;;  %v1770_v18 = vmul.f32 %v1258_v8, %v1258_v8  ;;  %v1260_v19 = vsub.f32 %v236_v11, %v748_v14  ;;  %v1261_v20 = vsub.f32 %v237_v15, %v749_v16  ;;  %v750_v22 = vld [vmem:[#allocation5 + $0x630] sm:$0xff]  ;;  %v239_v23 = vld [vmem:[#allocation2 + $0x638] sm:$0xff]  ;;  %v240_v27 = vld [vmem:[#allocation2 + $0x640] sm:$0xff] }
  0xc1   :  { %2280 = vst [vmem:[#allocation7 + $0x600] sm:$0xff] %v1768_v12  ;;  %v1771_v24 = vmul.f32 %v1259_v13, %v1259_v13  ;;  %v1262_v25 = vsub.f32 %v238_v21, %v750_v22  ;;  %v751_v26 = vld [vmem:[#allocation5 + $0x638] sm:$0xff]  ;;  %v752_v28 = vld [vmem:[#allocation5 + $0x640] sm:$0xff]  ;;  %2281 = vst [vmem:[#allocation7 + $0x608] sm:$0xff] %v1769_v17 }
  0xc2   :  { %2282 = vst [vmem:[#allocation7 + $0x610] sm:$0xff] %v1770_v18  ;;  %v1772_v29 = vmul.f32 %v1260_v19, %v1260_v19  ;;  %v1773_v30 = vmul.f32 %v1261_v20, %v1261_v20  ;;  %v1263_v31 = vsub.f32 %v239_v23, %v751_v26  ;;  %v1264_v32 = vsub.f32 %v240_v27, %v752_v28  ;;  %v241_v33 = vld [vmem:[#allocation2 + $0x648] sm:$0xff]  ;;  %v242_v35 = vld [vmem:[#allocation2 + $0x650] sm:$0xff]  ;;  %v243_v39 = vld [vmem:[#allocation2 + $0x658] sm:$0xff] }
  0xc3   :  { %v753_v34 = vld [vmem:[#allocation5 + $0x648] sm:$0xff]  ;;  %2283 = vst [vmem:[#allocation7 + $0x618] sm:$0xff] %v1771_v24  ;;  %v1774_v36 = vmul.f32 %v1262_v25, %v1262_v25  ;;  %v754_v38 = vld [vmem:[#allocation5 + $0x650] sm:$0xff]  ;;  %v755_v40 = vld [vmem:[#allocation5 + $0x658] sm:$0xff] }
  0xc4   :  { %v1265_v37 = vsub.f32 %v241_v33, %v753_v34  ;;  %2284 = vst [vmem:[#allocation7 + $0x620] sm:$0xff] %v1772_v29  ;;  %2285 = vst [vmem:[#allocation7 + $0x628] sm:$0xff] %v1773_v30  ;;  %v1775_v41 = vmul.f32 %v1263_v31, %v1263_v31  ;;  %v1776_v42 = vmul.f32 %v1264_v32, %v1264_v32  ;;  %v244_v45 = vld [vmem:[#allocation2 + $0x660] sm:$0xff]  ;;  %v245_v47 = vld [vmem:[#allocation2 + $0x668] sm:$0xff] }
  0xc5   :  { %v1266_v43 = vsub.f32 %v242_v35, %v754_v38  ;;  %v1267_v44 = vsub.f32 %v243_v39, %v755_v40  ;;  %v756_v46 = vld [vmem:[#allocation5 + $0x660] sm:$0xff]  ;;  %2286 = vst [vmem:[#allocation7 + $0x630] sm:$0xff] %v1774_v36  ;;  %v757_v50 = vld [vmem:[#allocation5 + $0x668] sm:$0xff]  ;;  %v246_v51 = vld [vmem:[#allocation2 + $0x670] sm:$0xff] }
  0xc6   :  { %v1777_v48 = vmul.f32 %v1265_v37, %v1265_v37  ;;  %v1268_v49 = vsub.f32 %v244_v45, %v756_v46  ;;  %v758_v52 = vld [vmem:[#allocation5 + $0x670] sm:$0xff]  ;;  %2287 = vst [vmem:[#allocation7 + $0x638] sm:$0xff] %v1775_v41  ;;  %2288 = vst [vmem:[#allocation7 + $0x640] sm:$0xff] %v1776_v42  ;;  %v1269_v55 = vsub.f32 %v245_v47, %v757_v50  ;;  %v247_v57 = vld [vmem:[#allocation2 + $0x678] sm:$0xff] }
  0xc7   :  { %v1778_v53 = vmul.f32 %v1266_v43, %v1266_v43  ;;  %v1779_v54 = vmul.f32 %v1267_v44, %v1267_v44  ;;  %v1270_v56 = vsub.f32 %v246_v51, %v758_v52  ;;  %v759_v58 = vld [vmem:[#allocation5 + $0x678] sm:$0xff]  ;;  %v248_v59 = vld [vmem:[#allocation2 + $0x680] sm:$0xff]  ;;  %v249_v63 = vld [vmem:[#allocation2 + $0x688] sm:$0xff] }
  0xc8   :  { %2289 = vst [vmem:[#allocation7 + $0x648] sm:$0xff] %v1777_v48  ;;  %v1780_v60 = vmul.f32 %v1268_v49, %v1268_v49  ;;  %v1271_v61 = vsub.f32 %v247_v57, %v759_v58  ;;  %v760_v62 = vld [vmem:[#allocation5 + $0x680] sm:$0xff]  ;;  %v761_v0 = vld [vmem:[#allocation5 + $0x688] sm:$0xff]  ;;  %v1781_v1 = vmul.f32 %v1269_v55, %v1269_v55  ;;  %v250_v5 = vld [vmem:[#allocation2 + $0x690] sm:$0xff] }
  0xc9   :  { %2290 = vst [vmem:[#allocation7 + $0x650] sm:$0xff] %v1778_v53  ;;  %2291 = vst [vmem:[#allocation7 + $0x658] sm:$0xff] %v1779_v54  ;;  %v1782_v2 = vmul.f32 %v1270_v56, %v1270_v56  ;;  %v1272_v3 = vsub.f32 %v248_v59, %v760_v62  ;;  %v1273_v4 = vsub.f32 %v249_v63, %v761_v0  ;;  %v762_v6 = vld [vmem:[#allocation5 + $0x690] sm:$0xff]  ;;  %v251_v7 = vld [vmem:[#allocation2 + $0x698] sm:$0xff] }
  0xca   :  { %2292 = vst [vmem:[#allocation7 + $0x660] sm:$0xff] %v1780_v60  ;;  %v1783_v8 = vmul.f32 %v1271_v61, %v1271_v61  ;;  %v1274_v9 = vsub.f32 %v250_v5, %v762_v6  ;;  %v763_v10 = vld [vmem:[#allocation5 + $0x698] sm:$0xff]  ;;  %v252_v11 = vld [vmem:[#allocation2 + $0x6a0] sm:$0xff]  ;;  %2293 = vst [vmem:[#allocation7 + $0x668] sm:$0xff] %v1781_v1 }
  0xcb   :  { %v764_v12 = vld [vmem:[#allocation5 + $0x6a0] sm:$0xff]  ;;  %2294 = vst [vmem:[#allocation7 + $0x670] sm:$0xff] %v1782_v2  ;;  %v1784_v13 = vmul.f32 %v1272_v3, %v1272_v3  ;;  %v1785_v14 = vmul.f32 %v1273_v4, %v1273_v4  ;;  %v1275_v15 = vsub.f32 %v251_v7, %v763_v10  ;;  %v253_v17 = vld [vmem:[#allocation2 + $0x6a8] sm:$0xff]  ;;  %v254_v19 = vld [vmem:[#allocation2 + $0x6b0] sm:$0xff] }
  0xcc   :  { %v1276_v16 = vsub.f32 %v252_v11, %v764_v12  ;;  %v765_v18 = vld [vmem:[#allocation5 + $0x6a8] sm:$0xff]  ;;  %2295 = vst [vmem:[#allocation7 + $0x678] sm:$0xff] %v1783_v8  ;;  %v1786_v20 = vmul.f32 %v1274_v9, %v1274_v9  ;;  %v766_v22 = vld [vmem:[#allocation5 + $0x6b0] sm:$0xff]  ;;  %v255_v23 = vld [vmem:[#allocation2 + $0x6b8] sm:$0xff] }
  0xcd   :  { %v1277_v21 = vsub.f32 %v253_v17, %v765_v18  ;;  %v767_v24 = vld [vmem:[#allocation5 + $0x6b8] sm:$0xff]  ;;  %2296 = vst [vmem:[#allocation7 + $0x680] sm:$0xff] %v1784_v13  ;;  %2297 = vst [vmem:[#allocation7 + $0x688] sm:$0xff] %v1785_v14  ;;  %v1787_v25 = vmul.f32 %v1275_v15, %v1275_v15  ;;  %v1278_v27 = vsub.f32 %v254_v19, %v766_v22  ;;  %v256_v29 = vld [vmem:[#allocation2 + $0x6c0] sm:$0xff] }
  0xce   :  { %v1788_v26 = vmul.f32 %v1276_v16, %v1276_v16  ;;  %v1279_v28 = vsub.f32 %v255_v23, %v767_v24  ;;  %v768_v30 = vld [vmem:[#allocation5 + $0x6c0] sm:$0xff]  ;;  %v257_v31 = vld [vmem:[#allocation2 + $0x6c8] sm:$0xff]  ;;  %2298 = vst [vmem:[#allocation7 + $0x690] sm:$0xff] %v1786_v20  ;;  %v258_v35 = vld [vmem:[#allocation2 + $0x6d0] sm:$0xff] }
  0xcf   :  { %v1789_v32 = vmul.f32 %v1277_v21, %v1277_v21  ;;  %v1280_v33 = vsub.f32 %v256_v29, %v768_v30  ;;  %v769_v34 = vld [vmem:[#allocation5 + $0x6c8] sm:$0xff]  ;;  %v770_v36 = vld [vmem:[#allocation5 + $0x6d0] sm:$0xff]  ;;  %2299 = vst [vmem:[#allocation7 + $0x698] sm:$0xff] %v1787_v25  ;;  %v1790_v37 = vmul.f32 %v1278_v27, %v1278_v27  ;;  %v259_v41 = vld [vmem:[#allocation2 + $0x6d8] sm:$0xff] }
  0xd0   :  { %2300 = vst [vmem:[#allocation7 + $0x6a0] sm:$0xff] %v1788_v26  ;;  %v1791_v38 = vmul.f32 %v1279_v28, %v1279_v28  ;;  %v1281_v39 = vsub.f32 %v257_v31, %v769_v34  ;;  %v1282_v40 = vsub.f32 %v258_v35, %v770_v36  ;;  %v771_v42 = vld [vmem:[#allocation5 + $0x6d8] sm:$0xff]  ;;  %v260_v43 = vld [vmem:[#allocation2 + $0x6e0] sm:$0xff]  ;;  %v261_v47 = vld [vmem:[#allocation2 + $0x6e8] sm:$0xff] }
  0xd1   :  { %2301 = vst [vmem:[#allocation7 + $0x6a8] sm:$0xff] %v1789_v32  ;;  %v1792_v44 = vmul.f32 %v1280_v33, %v1280_v33  ;;  %v1283_v45 = vsub.f32 %v259_v41, %v771_v42  ;;  %v772_v46 = vld [vmem:[#allocation5 + $0x6e0] sm:$0xff]  ;;  %v773_v48 = vld [vmem:[#allocation5 + $0x6e8] sm:$0xff]  ;;  %2302 = vst [vmem:[#allocation7 + $0x6b0] sm:$0xff] %v1790_v37 }
  0xd2   :  { %2303 = vst [vmem:[#allocation7 + $0x6b8] sm:$0xff] %v1791_v38  ;;  %v1793_v49 = vmul.f32 %v1281_v39, %v1281_v39  ;;  %v1794_v50 = vmul.f32 %v1282_v40, %v1282_v40  ;;  %v1284_v51 = vsub.f32 %v260_v43, %v772_v46  ;;  %v1285_v52 = vsub.f32 %v261_v47, %v773_v48  ;;  %v262_v53 = vld [vmem:[#allocation2 + $0x6f0] sm:$0xff]  ;;  %v263_v55 = vld [vmem:[#allocation2 + $0x6f8] sm:$0xff]  ;;  %v264_v59 = vld [vmem:[#allocation2 + $0x700] sm:$0xff] }
  0xd3   :  { %v774_v54 = vld [vmem:[#allocation5 + $0x6f0] sm:$0xff]  ;;  %2304 = vst [vmem:[#allocation7 + $0x6c0] sm:$0xff] %v1792_v44  ;;  %v1795_v56 = vmul.f32 %v1283_v45, %v1283_v45  ;;  %v775_v58 = vld [vmem:[#allocation5 + $0x6f8] sm:$0xff]  ;;  %v776_v60 = vld [vmem:[#allocation5 + $0x700] sm:$0xff] }
  0xd4   :  { %v1286_v57 = vsub.f32 %v262_v53, %v774_v54  ;;  %2305 = vst [vmem:[#allocation7 + $0x6c8] sm:$0xff] %v1793_v49  ;;  %2306 = vst [vmem:[#allocation7 + $0x6d0] sm:$0xff] %v1794_v50  ;;  %v1796_v61 = vmul.f32 %v1284_v51, %v1284_v51  ;;  %v1797_v62 = vmul.f32 %v1285_v52, %v1285_v52  ;;  %v265_v1 = vld [vmem:[#allocation2 + $0x708] sm:$0xff]  ;;  %v266_v3 = vld [vmem:[#allocation2 + $0x710] sm:$0xff] }
  0xd5   :  { %v1287_v63 = vsub.f32 %v263_v55, %v775_v58  ;;  %v1288_v0 = vsub.f32 %v264_v59, %v776_v60  ;;  %v777_v2 = vld [vmem:[#allocation5 + $0x708] sm:$0xff]  ;;  %2307 = vst [vmem:[#allocation7 + $0x6d8] sm:$0xff] %v1795_v56  ;;  %v778_v6 = vld [vmem:[#allocation5 + $0x710] sm:$0xff]  ;;  %v267_v7 = vld [vmem:[#allocation2 + $0x718] sm:$0xff] }
  0xd6   :  { %v1798_v4 = vmul.f32 %v1286_v57, %v1286_v57  ;;  %v1289_v5 = vsub.f32 %v265_v1, %v777_v2  ;;  %v779_v8 = vld [vmem:[#allocation5 + $0x718] sm:$0xff]  ;;  %2308 = vst [vmem:[#allocation7 + $0x6e0] sm:$0xff] %v1796_v61  ;;  %2309 = vst [vmem:[#allocation7 + $0x6e8] sm:$0xff] %v1797_v62  ;;  %v1290_v11 = vsub.f32 %v266_v3, %v778_v6  ;;  %v268_v13 = vld [vmem:[#allocation2 + $0x720] sm:$0xff] }
  0xd7   :  { %v1799_v9 = vmul.f32 %v1287_v63, %v1287_v63  ;;  %v1800_v10 = vmul.f32 %v1288_v0, %v1288_v0  ;;  %v1291_v12 = vsub.f32 %v267_v7, %v779_v8  ;;  %v780_v14 = vld [vmem:[#allocation5 + $0x720] sm:$0xff]  ;;  %v269_v15 = vld [vmem:[#allocation2 + $0x728] sm:$0xff]  ;;  %v270_v19 = vld [vmem:[#allocation2 + $0x730] sm:$0xff] }
  0xd8   :  { %2310 = vst [vmem:[#allocation7 + $0x6f0] sm:$0xff] %v1798_v4  ;;  %v1801_v16 = vmul.f32 %v1289_v5, %v1289_v5  ;;  %v1292_v17 = vsub.f32 %v268_v13, %v780_v14  ;;  %v781_v18 = vld [vmem:[#allocation5 + $0x728] sm:$0xff]  ;;  %v782_v20 = vld [vmem:[#allocation5 + $0x730] sm:$0xff]  ;;  %v1802_v21 = vmul.f32 %v1290_v11, %v1290_v11  ;;  %v271_v25 = vld [vmem:[#allocation2 + $0x738] sm:$0xff] }
  0xd9   :  { %2311 = vst [vmem:[#allocation7 + $0x6f8] sm:$0xff] %v1799_v9  ;;  %2312 = vst [vmem:[#allocation7 + $0x700] sm:$0xff] %v1800_v10  ;;  %v1803_v22 = vmul.f32 %v1291_v12, %v1291_v12  ;;  %v1293_v23 = vsub.f32 %v269_v15, %v781_v18  ;;  %v1294_v24 = vsub.f32 %v270_v19, %v782_v20  ;;  %v783_v26 = vld [vmem:[#allocation5 + $0x738] sm:$0xff]  ;;  %v272_v27 = vld [vmem:[#allocation2 + $0x740] sm:$0xff] }
  0xda   :  { %2313 = vst [vmem:[#allocation7 + $0x708] sm:$0xff] %v1801_v16  ;;  %v1804_v28 = vmul.f32 %v1292_v17, %v1292_v17  ;;  %v1295_v29 = vsub.f32 %v271_v25, %v783_v26  ;;  %v784_v30 = vld [vmem:[#allocation5 + $0x740] sm:$0xff]  ;;  %v273_v31 = vld [vmem:[#allocation2 + $0x748] sm:$0xff]  ;;  %2314 = vst [vmem:[#allocation7 + $0x710] sm:$0xff] %v1802_v21 }
  0xdb   :  { %v785_v32 = vld [vmem:[#allocation5 + $0x748] sm:$0xff]  ;;  %2315 = vst [vmem:[#allocation7 + $0x718] sm:$0xff] %v1803_v22  ;;  %v1805_v33 = vmul.f32 %v1293_v23, %v1293_v23  ;;  %v1806_v34 = vmul.f32 %v1294_v24, %v1294_v24  ;;  %v1296_v35 = vsub.f32 %v272_v27, %v784_v30  ;;  %v274_v37 = vld [vmem:[#allocation2 + $0x750] sm:$0xff]  ;;  %v275_v39 = vld [vmem:[#allocation2 + $0x758] sm:$0xff] }
  0xdc   :  { %v1297_v36 = vsub.f32 %v273_v31, %v785_v32  ;;  %v786_v38 = vld [vmem:[#allocation5 + $0x750] sm:$0xff]  ;;  %2316 = vst [vmem:[#allocation7 + $0x720] sm:$0xff] %v1804_v28  ;;  %v1807_v40 = vmul.f32 %v1295_v29, %v1295_v29  ;;  %v787_v42 = vld [vmem:[#allocation5 + $0x758] sm:$0xff]  ;;  %v276_v43 = vld [vmem:[#allocation2 + $0x760] sm:$0xff] }
  0xdd   :  { %v1298_v41 = vsub.f32 %v274_v37, %v786_v38  ;;  %v788_v44 = vld [vmem:[#allocation5 + $0x760] sm:$0xff]  ;;  %2317 = vst [vmem:[#allocation7 + $0x728] sm:$0xff] %v1805_v33  ;;  %2318 = vst [vmem:[#allocation7 + $0x730] sm:$0xff] %v1806_v34  ;;  %v1808_v45 = vmul.f32 %v1296_v35, %v1296_v35  ;;  %v1299_v47 = vsub.f32 %v275_v39, %v787_v42  ;;  %v277_v49 = vld [vmem:[#allocation2 + $0x768] sm:$0xff] }
  0xde   :  { %v1809_v46 = vmul.f32 %v1297_v36, %v1297_v36  ;;  %v1300_v48 = vsub.f32 %v276_v43, %v788_v44  ;;  %v789_v50 = vld [vmem:[#allocation5 + $0x768] sm:$0xff]  ;;  %v278_v51 = vld [vmem:[#allocation2 + $0x770] sm:$0xff]  ;;  %2319 = vst [vmem:[#allocation7 + $0x738] sm:$0xff] %v1807_v40  ;;  %v279_v55 = vld [vmem:[#allocation2 + $0x778] sm:$0xff] }
  0xdf   :  { %v1810_v52 = vmul.f32 %v1298_v41, %v1298_v41  ;;  %v1301_v53 = vsub.f32 %v277_v49, %v789_v50  ;;  %v790_v54 = vld [vmem:[#allocation5 + $0x770] sm:$0xff]  ;;  %v791_v56 = vld [vmem:[#allocation5 + $0x778] sm:$0xff]  ;;  %2320 = vst [vmem:[#allocation7 + $0x740] sm:$0xff] %v1808_v45  ;;  %v1811_v57 = vmul.f32 %v1299_v47, %v1299_v47  ;;  %v280_v61 = vld [vmem:[#allocation2 + $0x780] sm:$0xff] }
  0xe0   :  { %2321 = vst [vmem:[#allocation7 + $0x748] sm:$0xff] %v1809_v46  ;;  %v1812_v58 = vmul.f32 %v1300_v48, %v1300_v48  ;;  %v1302_v59 = vsub.f32 %v278_v51, %v790_v54  ;;  %v1303_v60 = vsub.f32 %v279_v55, %v791_v56  ;;  %v792_v62 = vld [vmem:[#allocation5 + $0x780] sm:$0xff]  ;;  %v281_v63 = vld [vmem:[#allocation2 + $0x788] sm:$0xff]  ;;  %v282_v3 = vld [vmem:[#allocation2 + $0x790] sm:$0xff] }
  0xe1   :  { %2322 = vst [vmem:[#allocation7 + $0x750] sm:$0xff] %v1810_v52  ;;  %v1813_v0 = vmul.f32 %v1301_v53, %v1301_v53  ;;  %v1304_v1 = vsub.f32 %v280_v61, %v792_v62  ;;  %v793_v2 = vld [vmem:[#allocation5 + $0x788] sm:$0xff]  ;;  %v794_v4 = vld [vmem:[#allocation5 + $0x790] sm:$0xff]  ;;  %2323 = vst [vmem:[#allocation7 + $0x758] sm:$0xff] %v1811_v57 }
  0xe2   :  { %2324 = vst [vmem:[#allocation7 + $0x760] sm:$0xff] %v1812_v58  ;;  %v1814_v5 = vmul.f32 %v1302_v59, %v1302_v59  ;;  %v1815_v6 = vmul.f32 %v1303_v60, %v1303_v60  ;;  %v1305_v7 = vsub.f32 %v281_v63, %v793_v2  ;;  %v1306_v8 = vsub.f32 %v282_v3, %v794_v4  ;;  %v283_v9 = vld [vmem:[#allocation2 + $0x798] sm:$0xff]  ;;  %v284_v11 = vld [vmem:[#allocation2 + $0x7a0] sm:$0xff]  ;;  %v285_v15 = vld [vmem:[#allocation2 + $0x7a8] sm:$0xff] }
  0xe3   :  { %v795_v10 = vld [vmem:[#allocation5 + $0x798] sm:$0xff]  ;;  %2325 = vst [vmem:[#allocation7 + $0x768] sm:$0xff] %v1813_v0  ;;  %v1816_v12 = vmul.f32 %v1304_v1, %v1304_v1  ;;  %v796_v14 = vld [vmem:[#allocation5 + $0x7a0] sm:$0xff]  ;;  %v797_v16 = vld [vmem:[#allocation5 + $0x7a8] sm:$0xff] }
  0xe4   :  { %v1307_v13 = vsub.f32 %v283_v9, %v795_v10  ;;  %2326 = vst [vmem:[#allocation7 + $0x770] sm:$0xff] %v1814_v5  ;;  %2327 = vst [vmem:[#allocation7 + $0x778] sm:$0xff] %v1815_v6  ;;  %v1817_v17 = vmul.f32 %v1305_v7, %v1305_v7  ;;  %v1818_v18 = vmul.f32 %v1306_v8, %v1306_v8  ;;  %v286_v21 = vld [vmem:[#allocation2 + $0x7b0] sm:$0xff]  ;;  %v287_v23 = vld [vmem:[#allocation2 + $0x7b8] sm:$0xff] }
  0xe5   :  { %v1308_v19 = vsub.f32 %v284_v11, %v796_v14  ;;  %v1309_v20 = vsub.f32 %v285_v15, %v797_v16  ;;  %v798_v22 = vld [vmem:[#allocation5 + $0x7b0] sm:$0xff]  ;;  %2328 = vst [vmem:[#allocation7 + $0x780] sm:$0xff] %v1816_v12  ;;  %v799_v26 = vld [vmem:[#allocation5 + $0x7b8] sm:$0xff]  ;;  %v288_v27 = vld [vmem:[#allocation2 + $0x7c0] sm:$0xff] }
  0xe6   :  { %v1819_v24 = vmul.f32 %v1307_v13, %v1307_v13  ;;  %v1310_v25 = vsub.f32 %v286_v21, %v798_v22  ;;  %v800_v28 = vld [vmem:[#allocation5 + $0x7c0] sm:$0xff]  ;;  %2329 = vst [vmem:[#allocation7 + $0x788] sm:$0xff] %v1817_v17  ;;  %2330 = vst [vmem:[#allocation7 + $0x790] sm:$0xff] %v1818_v18  ;;  %v1311_v31 = vsub.f32 %v287_v23, %v799_v26  ;;  %v289_v33 = vld [vmem:[#allocation2 + $0x7c8] sm:$0xff] }
  0xe7   :  { %v1820_v29 = vmul.f32 %v1308_v19, %v1308_v19  ;;  %v1821_v30 = vmul.f32 %v1309_v20, %v1309_v20  ;;  %v1312_v32 = vsub.f32 %v288_v27, %v800_v28  ;;  %v801_v34 = vld [vmem:[#allocation5 + $0x7c8] sm:$0xff]  ;;  %v290_v35 = vld [vmem:[#allocation2 + $0x7d0] sm:$0xff]  ;;  %v291_v39 = vld [vmem:[#allocation2 + $0x7d8] sm:$0xff] }
  0xe8   :  { %2331 = vst [vmem:[#allocation7 + $0x798] sm:$0xff] %v1819_v24  ;;  %v1822_v36 = vmul.f32 %v1310_v25, %v1310_v25  ;;  %v1313_v37 = vsub.f32 %v289_v33, %v801_v34  ;;  %v802_v38 = vld [vmem:[#allocation5 + $0x7d0] sm:$0xff]  ;;  %v803_v40 = vld [vmem:[#allocation5 + $0x7d8] sm:$0xff]  ;;  %v1823_v41 = vmul.f32 %v1311_v31, %v1311_v31  ;;  %v292_v45 = vld [vmem:[#allocation2 + $0x7e0] sm:$0xff] }
  0xe9   :  { %2332 = vst [vmem:[#allocation7 + $0x7a0] sm:$0xff] %v1820_v29  ;;  %2333 = vst [vmem:[#allocation7 + $0x7a8] sm:$0xff] %v1821_v30  ;;  %v1824_v42 = vmul.f32 %v1312_v32, %v1312_v32  ;;  %v1314_v43 = vsub.f32 %v290_v35, %v802_v38  ;;  %v1315_v44 = vsub.f32 %v291_v39, %v803_v40  ;;  %v804_v46 = vld [vmem:[#allocation5 + $0x7e0] sm:$0xff]  ;;  %v293_v47 = vld [vmem:[#allocation2 + $0x7e8] sm:$0xff] }
  0xea   :  { %2334 = vst [vmem:[#allocation7 + $0x7b0] sm:$0xff] %v1822_v36  ;;  %v1825_v48 = vmul.f32 %v1313_v37, %v1313_v37  ;;  %v1316_v49 = vsub.f32 %v292_v45, %v804_v46  ;;  %v805_v50 = vld [vmem:[#allocation5 + $0x7e8] sm:$0xff]  ;;  %v294_v51 = vld [vmem:[#allocation2 + $0x7f0] sm:$0xff]  ;;  %2335 = vst [vmem:[#allocation7 + $0x7b8] sm:$0xff] %v1823_v41 }
  0xeb   :  { %v806_v52 = vld [vmem:[#allocation5 + $0x7f0] sm:$0xff]  ;;  %2336 = vst [vmem:[#allocation7 + $0x7c0] sm:$0xff] %v1824_v42  ;;  %v1826_v53 = vmul.f32 %v1314_v43, %v1314_v43  ;;  %v1827_v54 = vmul.f32 %v1315_v44, %v1315_v44  ;;  %v1317_v55 = vsub.f32 %v293_v47, %v805_v50  ;;  %v295_v57 = vld [vmem:[#allocation2 + $0x7f8] sm:$0xff]  ;;  %v296_v59 = vld [vmem:[#allocation2 + $0x800] sm:$0xff] }
  0xec   :  { %v1318_v56 = vsub.f32 %v294_v51, %v806_v52  ;;  %v807_v58 = vld [vmem:[#allocation5 + $0x7f8] sm:$0xff]  ;;  %2337 = vst [vmem:[#allocation7 + $0x7c8] sm:$0xff] %v1825_v48  ;;  %v1828_v60 = vmul.f32 %v1316_v49, %v1316_v49  ;;  %v808_v62 = vld [vmem:[#allocation5 + $0x800] sm:$0xff]  ;;  %v297_v63 = vld [vmem:[#allocation2 + $0x808] sm:$0xff] }
  0xed   :  { %v1319_v61 = vsub.f32 %v295_v57, %v807_v58  ;;  %v809_v0 = vld [vmem:[#allocation5 + $0x808] sm:$0xff]  ;;  %2338 = vst [vmem:[#allocation7 + $0x7d0] sm:$0xff] %v1826_v53  ;;  %2339 = vst [vmem:[#allocation7 + $0x7d8] sm:$0xff] %v1827_v54  ;;  %v1829_v1 = vmul.f32 %v1317_v55, %v1317_v55  ;;  %v1320_v3 = vsub.f32 %v296_v59, %v808_v62  ;;  %v298_v5 = vld [vmem:[#allocation2 + $0x810] sm:$0xff] }
  0xee   :  { %v1830_v2 = vmul.f32 %v1318_v56, %v1318_v56  ;;  %v1321_v4 = vsub.f32 %v297_v63, %v809_v0  ;;  %v810_v6 = vld [vmem:[#allocation5 + $0x810] sm:$0xff]  ;;  %v299_v7 = vld [vmem:[#allocation2 + $0x818] sm:$0xff]  ;;  %2340 = vst [vmem:[#allocation7 + $0x7e0] sm:$0xff] %v1828_v60  ;;  %v300_v11 = vld [vmem:[#allocation2 + $0x820] sm:$0xff] }
  0xef   :  { %v1831_v8 = vmul.f32 %v1319_v61, %v1319_v61  ;;  %v1322_v9 = vsub.f32 %v298_v5, %v810_v6  ;;  %v811_v10 = vld [vmem:[#allocation5 + $0x818] sm:$0xff]  ;;  %v812_v12 = vld [vmem:[#allocation5 + $0x820] sm:$0xff]  ;;  %2341 = vst [vmem:[#allocation7 + $0x7e8] sm:$0xff] %v1829_v1  ;;  %v1832_v13 = vmul.f32 %v1320_v3, %v1320_v3  ;;  %v301_v17 = vld [vmem:[#allocation2 + $0x828] sm:$0xff] }
  0xf0   :  { %2342 = vst [vmem:[#allocation7 + $0x7f0] sm:$0xff] %v1830_v2  ;;  %v1833_v14 = vmul.f32 %v1321_v4, %v1321_v4  ;;  %v1323_v15 = vsub.f32 %v299_v7, %v811_v10  ;;  %v1324_v16 = vsub.f32 %v300_v11, %v812_v12  ;;  %v813_v18 = vld [vmem:[#allocation5 + $0x828] sm:$0xff]  ;;  %v302_v19 = vld [vmem:[#allocation2 + $0x830] sm:$0xff]  ;;  %v303_v23 = vld [vmem:[#allocation2 + $0x838] sm:$0xff] }
  0xf1   :  { %2343 = vst [vmem:[#allocation7 + $0x7f8] sm:$0xff] %v1831_v8  ;;  %v1834_v20 = vmul.f32 %v1322_v9, %v1322_v9  ;;  %v1325_v21 = vsub.f32 %v301_v17, %v813_v18  ;;  %v814_v22 = vld [vmem:[#allocation5 + $0x830] sm:$0xff]  ;;  %v815_v24 = vld [vmem:[#allocation5 + $0x838] sm:$0xff]  ;;  %2344 = vst [vmem:[#allocation7 + $0x800] sm:$0xff] %v1832_v13 }
  0xf2   :  { %2345 = vst [vmem:[#allocation7 + $0x808] sm:$0xff] %v1833_v14  ;;  %v1835_v25 = vmul.f32 %v1323_v15, %v1323_v15  ;;  %v1836_v26 = vmul.f32 %v1324_v16, %v1324_v16  ;;  %v1326_v27 = vsub.f32 %v302_v19, %v814_v22  ;;  %v1327_v28 = vsub.f32 %v303_v23, %v815_v24  ;;  %v304_v29 = vld [vmem:[#allocation2 + $0x840] sm:$0xff]  ;;  %v305_v31 = vld [vmem:[#allocation2 + $0x848] sm:$0xff]  ;;  %v306_v35 = vld [vmem:[#allocation2 + $0x850] sm:$0xff] }
  0xf3   :  { %v816_v30 = vld [vmem:[#allocation5 + $0x840] sm:$0xff]  ;;  %2346 = vst [vmem:[#allocation7 + $0x810] sm:$0xff] %v1834_v20  ;;  %v1837_v32 = vmul.f32 %v1325_v21, %v1325_v21  ;;  %v817_v34 = vld [vmem:[#allocation5 + $0x848] sm:$0xff]  ;;  %v818_v36 = vld [vmem:[#allocation5 + $0x850] sm:$0xff] }
  0xf4   :  { %v1328_v33 = vsub.f32 %v304_v29, %v816_v30  ;;  %2347 = vst [vmem:[#allocation7 + $0x818] sm:$0xff] %v1835_v25  ;;  %2348 = vst [vmem:[#allocation7 + $0x820] sm:$0xff] %v1836_v26  ;;  %v1838_v37 = vmul.f32 %v1326_v27, %v1326_v27  ;;  %v1839_v38 = vmul.f32 %v1327_v28, %v1327_v28  ;;  %v307_v41 = vld [vmem:[#allocation2 + $0x858] sm:$0xff]  ;;  %v308_v43 = vld [vmem:[#allocation2 + $0x860] sm:$0xff] }
  0xf5   :  { %v1329_v39 = vsub.f32 %v305_v31, %v817_v34  ;;  %v1330_v40 = vsub.f32 %v306_v35, %v818_v36  ;;  %v819_v42 = vld [vmem:[#allocation5 + $0x858] sm:$0xff]  ;;  %2349 = vst [vmem:[#allocation7 + $0x828] sm:$0xff] %v1837_v32  ;;  %v820_v46 = vld [vmem:[#allocation5 + $0x860] sm:$0xff]  ;;  %v309_v47 = vld [vmem:[#allocation2 + $0x868] sm:$0xff] }
  0xf6   :  { %v1840_v44 = vmul.f32 %v1328_v33, %v1328_v33  ;;  %v1331_v45 = vsub.f32 %v307_v41, %v819_v42  ;;  %v821_v48 = vld [vmem:[#allocation5 + $0x868] sm:$0xff]  ;;  %2350 = vst [vmem:[#allocation7 + $0x830] sm:$0xff] %v1838_v37  ;;  %2351 = vst [vmem:[#allocation7 + $0x838] sm:$0xff] %v1839_v38  ;;  %v1332_v51 = vsub.f32 %v308_v43, %v820_v46  ;;  %v310_v53 = vld [vmem:[#allocation2 + $0x870] sm:$0xff] }
  0xf7   :  { %v1841_v49 = vmul.f32 %v1329_v39, %v1329_v39  ;;  %v1842_v50 = vmul.f32 %v1330_v40, %v1330_v40  ;;  %v1333_v52 = vsub.f32 %v309_v47, %v821_v48  ;;  %v822_v54 = vld [vmem:[#allocation5 + $0x870] sm:$0xff]  ;;  %v311_v55 = vld [vmem:[#allocation2 + $0x878] sm:$0xff]  ;;  %v312_v59 = vld [vmem:[#allocation2 + $0x880] sm:$0xff] }
  0xf8   :  { %2352 = vst [vmem:[#allocation7 + $0x840] sm:$0xff] %v1840_v44  ;;  %v1843_v56 = vmul.f32 %v1331_v45, %v1331_v45  ;;  %v1334_v57 = vsub.f32 %v310_v53, %v822_v54  ;;  %v823_v58 = vld [vmem:[#allocation5 + $0x878] sm:$0xff]  ;;  %v824_v60 = vld [vmem:[#allocation5 + $0x880] sm:$0xff]  ;;  %v1844_v61 = vmul.f32 %v1332_v51, %v1332_v51  ;;  %v313_v1 = vld [vmem:[#allocation2 + $0x888] sm:$0xff] }
  0xf9   :  { %2353 = vst [vmem:[#allocation7 + $0x848] sm:$0xff] %v1841_v49  ;;  %2354 = vst [vmem:[#allocation7 + $0x850] sm:$0xff] %v1842_v50  ;;  %v1845_v62 = vmul.f32 %v1333_v52, %v1333_v52  ;;  %v1335_v63 = vsub.f32 %v311_v55, %v823_v58  ;;  %v1336_v0 = vsub.f32 %v312_v59, %v824_v60  ;;  %v825_v2 = vld [vmem:[#allocation5 + $0x888] sm:$0xff]  ;;  %v314_v3 = vld [vmem:[#allocation2 + $0x890] sm:$0xff] }
  0xfa   :  { %2355 = vst [vmem:[#allocation7 + $0x858] sm:$0xff] %v1843_v56  ;;  %v1846_v4 = vmul.f32 %v1334_v57, %v1334_v57  ;;  %v1337_v5 = vsub.f32 %v313_v1, %v825_v2  ;;  %v826_v6 = vld [vmem:[#allocation5 + $0x890] sm:$0xff]  ;;  %v315_v7 = vld [vmem:[#allocation2 + $0x898] sm:$0xff]  ;;  %2356 = vst [vmem:[#allocation7 + $0x860] sm:$0xff] %v1844_v61 }
  0xfb   :  { %v827_v8 = vld [vmem:[#allocation5 + $0x898] sm:$0xff]  ;;  %2357 = vst [vmem:[#allocation7 + $0x868] sm:$0xff] %v1845_v62  ;;  %v1847_v9 = vmul.f32 %v1335_v63, %v1335_v63  ;;  %v1848_v10 = vmul.f32 %v1336_v0, %v1336_v0  ;;  %v1338_v11 = vsub.f32 %v314_v3, %v826_v6  ;;  %v316_v13 = vld [vmem:[#allocation2 + $0x8a0] sm:$0xff]  ;;  %v317_v15 = vld [vmem:[#allocation2 + $0x8a8] sm:$0xff] }
  0xfc   :  { %v1339_v12 = vsub.f32 %v315_v7, %v827_v8  ;;  %v828_v14 = vld [vmem:[#allocation5 + $0x8a0] sm:$0xff]  ;;  %2358 = vst [vmem:[#allocation7 + $0x870] sm:$0xff] %v1846_v4  ;;  %v1849_v16 = vmul.f32 %v1337_v5, %v1337_v5  ;;  %v829_v18 = vld [vmem:[#allocation5 + $0x8a8] sm:$0xff]  ;;  %v318_v19 = vld [vmem:[#allocation2 + $0x8b0] sm:$0xff] }
  0xfd   :  { %v1340_v17 = vsub.f32 %v316_v13, %v828_v14  ;;  %v830_v20 = vld [vmem:[#allocation5 + $0x8b0] sm:$0xff]  ;;  %2359 = vst [vmem:[#allocation7 + $0x878] sm:$0xff] %v1847_v9  ;;  %2360 = vst [vmem:[#allocation7 + $0x880] sm:$0xff] %v1848_v10  ;;  %v1850_v21 = vmul.f32 %v1338_v11, %v1338_v11  ;;  %v1341_v23 = vsub.f32 %v317_v15, %v829_v18  ;;  %v319_v25 = vld [vmem:[#allocation2 + $0x8b8] sm:$0xff] }
  0xfe   :  { %v1851_v22 = vmul.f32 %v1339_v12, %v1339_v12  ;;  %v1342_v24 = vsub.f32 %v318_v19, %v830_v20  ;;  %v831_v26 = vld [vmem:[#allocation5 + $0x8b8] sm:$0xff]  ;;  %v320_v27 = vld [vmem:[#allocation2 + $0x8c0] sm:$0xff]  ;;  %2361 = vst [vmem:[#allocation7 + $0x888] sm:$0xff] %v1849_v16  ;;  %v321_v31 = vld [vmem:[#allocation2 + $0x8c8] sm:$0xff] }
  0xff   :  { %v1852_v28 = vmul.f32 %v1340_v17, %v1340_v17  ;;  %v1343_v29 = vsub.f32 %v319_v25, %v831_v26  ;;  %v832_v30 = vld [vmem:[#allocation5 + $0x8c0] sm:$0xff]  ;;  %v833_v32 = vld [vmem:[#allocation5 + $0x8c8] sm:$0xff]  ;;  %2362 = vst [vmem:[#allocation7 + $0x890] sm:$0xff] %v1850_v21  ;;  %v1853_v33 = vmul.f32 %v1341_v23, %v1341_v23  ;;  %v322_v37 = vld [vmem:[#allocation2 + $0x8d0] sm:$0xff] }
 0x100   :  { %2363 = vst [vmem:[#allocation7 + $0x898] sm:$0xff] %v1851_v22  ;;  %v1854_v34 = vmul.f32 %v1342_v24, %v1342_v24  ;;  %v1344_v35 = vsub.f32 %v320_v27, %v832_v30  ;;  %v1345_v36 = vsub.f32 %v321_v31, %v833_v32  ;;  %v834_v38 = vld [vmem:[#allocation5 + $0x8d0] sm:$0xff]  ;;  %v323_v39 = vld [vmem:[#allocation2 + $0x8d8] sm:$0xff]  ;;  %v324_v43 = vld [vmem:[#allocation2 + $0x8e0] sm:$0xff] }
 0x101   :  { %2364 = vst [vmem:[#allocation7 + $0x8a0] sm:$0xff] %v1852_v28  ;;  %v1855_v40 = vmul.f32 %v1343_v29, %v1343_v29  ;;  %v1346_v41 = vsub.f32 %v322_v37, %v834_v38  ;;  %v835_v42 = vld [vmem:[#allocation5 + $0x8d8] sm:$0xff]  ;;  %v836_v44 = vld [vmem:[#allocation5 + $0x8e0] sm:$0xff]  ;;  %2365 = vst [vmem:[#allocation7 + $0x8a8] sm:$0xff] %v1853_v33 }
 0x102   :  { %2366 = vst [vmem:[#allocation7 + $0x8b0] sm:$0xff] %v1854_v34  ;;  %v1856_v45 = vmul.f32 %v1344_v35, %v1344_v35  ;;  %v1857_v46 = vmul.f32 %v1345_v36, %v1345_v36  ;;  %v1347_v47 = vsub.f32 %v323_v39, %v835_v42  ;;  %v1348_v48 = vsub.f32 %v324_v43, %v836_v44  ;;  %v325_v49 = vld [vmem:[#allocation2 + $0x8e8] sm:$0xff]  ;;  %v326_v51 = vld [vmem:[#allocation2 + $0x8f0] sm:$0xff]  ;;  %v327_v55 = vld [vmem:[#allocation2 + $0x8f8] sm:$0xff] }
 0x103   :  { %v837_v50 = vld [vmem:[#allocation5 + $0x8e8] sm:$0xff]  ;;  %2367 = vst [vmem:[#allocation7 + $0x8b8] sm:$0xff] %v1855_v40  ;;  %v1858_v52 = vmul.f32 %v1346_v41, %v1346_v41  ;;  %v838_v54 = vld [vmem:[#allocation5 + $0x8f0] sm:$0xff]  ;;  %v839_v56 = vld [vmem:[#allocation5 + $0x8f8] sm:$0xff] }
 0x104   :  { %v1349_v53 = vsub.f32 %v325_v49, %v837_v50  ;;  %2368 = vst [vmem:[#allocation7 + $0x8c0] sm:$0xff] %v1856_v45  ;;  %2369 = vst [vmem:[#allocation7 + $0x8c8] sm:$0xff] %v1857_v46  ;;  %v1859_v57 = vmul.f32 %v1347_v47, %v1347_v47  ;;  %v1860_v58 = vmul.f32 %v1348_v48, %v1348_v48  ;;  %v328_v61 = vld [vmem:[#allocation2 + $0x900] sm:$0xff]  ;;  %v329_v63 = vld [vmem:[#allocation2 + $0x908] sm:$0xff] }
 0x105   :  { %v1350_v59 = vsub.f32 %v326_v51, %v838_v54  ;;  %v1351_v60 = vsub.f32 %v327_v55, %v839_v56  ;;  %v840_v62 = vld [vmem:[#allocation5 + $0x900] sm:$0xff]  ;;  %2370 = vst [vmem:[#allocation7 + $0x8d0] sm:$0xff] %v1858_v52  ;;  %v841_v2 = vld [vmem:[#allocation5 + $0x908] sm:$0xff]  ;;  %v330_v3 = vld [vmem:[#allocation2 + $0x910] sm:$0xff] }
 0x106   :  { %v1861_v0 = vmul.f32 %v1349_v53, %v1349_v53  ;;  %v1352_v1 = vsub.f32 %v328_v61, %v840_v62  ;;  %v842_v4 = vld [vmem:[#allocation5 + $0x910] sm:$0xff]  ;;  %2371 = vst [vmem:[#allocation7 + $0x8d8] sm:$0xff] %v1859_v57  ;;  %2372 = vst [vmem:[#allocation7 + $0x8e0] sm:$0xff] %v1860_v58  ;;  %v1353_v7 = vsub.f32 %v329_v63, %v841_v2  ;;  %v331_v9 = vld [vmem:[#allocation2 + $0x918] sm:$0xff] }
 0x107   :  { %v1862_v5 = vmul.f32 %v1350_v59, %v1350_v59  ;;  %v1863_v6 = vmul.f32 %v1351_v60, %v1351_v60  ;;  %v1354_v8 = vsub.f32 %v330_v3, %v842_v4  ;;  %v843_v10 = vld [vmem:[#allocation5 + $0x918] sm:$0xff]  ;;  %v332_v11 = vld [vmem:[#allocation2 + $0x920] sm:$0xff]  ;;  %v333_v15 = vld [vmem:[#allocation2 + $0x928] sm:$0xff] }
 0x108   :  { %2373 = vst [vmem:[#allocation7 + $0x8e8] sm:$0xff] %v1861_v0  ;;  %v1864_v12 = vmul.f32 %v1352_v1, %v1352_v1  ;;  %v1355_v13 = vsub.f32 %v331_v9, %v843_v10  ;;  %v844_v14 = vld [vmem:[#allocation5 + $0x920] sm:$0xff]  ;;  %v845_v16 = vld [vmem:[#allocation5 + $0x928] sm:$0xff]  ;;  %v1865_v17 = vmul.f32 %v1353_v7, %v1353_v7  ;;  %v334_v21 = vld [vmem:[#allocation2 + $0x930] sm:$0xff] }
 0x109   :  { %2374 = vst [vmem:[#allocation7 + $0x8f0] sm:$0xff] %v1862_v5  ;;  %2375 = vst [vmem:[#allocation7 + $0x8f8] sm:$0xff] %v1863_v6  ;;  %v1866_v18 = vmul.f32 %v1354_v8, %v1354_v8  ;;  %v1356_v19 = vsub.f32 %v332_v11, %v844_v14  ;;  %v1357_v20 = vsub.f32 %v333_v15, %v845_v16  ;;  %v846_v22 = vld [vmem:[#allocation5 + $0x930] sm:$0xff]  ;;  %v335_v23 = vld [vmem:[#allocation2 + $0x938] sm:$0xff] }
 0x10a   :  { %2376 = vst [vmem:[#allocation7 + $0x900] sm:$0xff] %v1864_v12  ;;  %v1867_v24 = vmul.f32 %v1355_v13, %v1355_v13  ;;  %v1358_v25 = vsub.f32 %v334_v21, %v846_v22  ;;  %v847_v26 = vld [vmem:[#allocation5 + $0x938] sm:$0xff]  ;;  %v336_v27 = vld [vmem:[#allocation2 + $0x940] sm:$0xff]  ;;  %2377 = vst [vmem:[#allocation7 + $0x908] sm:$0xff] %v1865_v17 }
 0x10b   :  { %v848_v28 = vld [vmem:[#allocation5 + $0x940] sm:$0xff]  ;;  %2378 = vst [vmem:[#allocation7 + $0x910] sm:$0xff] %v1866_v18  ;;  %v1868_v29 = vmul.f32 %v1356_v19, %v1356_v19  ;;  %v1869_v30 = vmul.f32 %v1357_v20, %v1357_v20  ;;  %v1359_v31 = vsub.f32 %v335_v23, %v847_v26  ;;  %v337_v33 = vld [vmem:[#allocation2 + $0x948] sm:$0xff]  ;;  %v338_v35 = vld [vmem:[#allocation2 + $0x950] sm:$0xff] }
 0x10c   :  { %v1360_v32 = vsub.f32 %v336_v27, %v848_v28  ;;  %v849_v34 = vld [vmem:[#allocation5 + $0x948] sm:$0xff]  ;;  %2379 = vst [vmem:[#allocation7 + $0x918] sm:$0xff] %v1867_v24  ;;  %v1870_v36 = vmul.f32 %v1358_v25, %v1358_v25  ;;  %v850_v38 = vld [vmem:[#allocation5 + $0x950] sm:$0xff]  ;;  %v339_v39 = vld [vmem:[#allocation2 + $0x958] sm:$0xff] }
 0x10d   :  { %v1361_v37 = vsub.f32 %v337_v33, %v849_v34  ;;  %v851_v40 = vld [vmem:[#allocation5 + $0x958] sm:$0xff]  ;;  %2380 = vst [vmem:[#allocation7 + $0x920] sm:$0xff] %v1868_v29  ;;  %2381 = vst [vmem:[#allocation7 + $0x928] sm:$0xff] %v1869_v30  ;;  %v1871_v41 = vmul.f32 %v1359_v31, %v1359_v31  ;;  %v1362_v43 = vsub.f32 %v338_v35, %v850_v38  ;;  %v340_v45 = vld [vmem:[#allocation2 + $0x960] sm:$0xff] }
 0x10e   :  { %v1872_v42 = vmul.f32 %v1360_v32, %v1360_v32  ;;  %v1363_v44 = vsub.f32 %v339_v39, %v851_v40  ;;  %v852_v46 = vld [vmem:[#allocation5 + $0x960] sm:$0xff]  ;;  %v341_v47 = vld [vmem:[#allocation2 + $0x968] sm:$0xff]  ;;  %2382 = vst [vmem:[#allocation7 + $0x930] sm:$0xff] %v1870_v36  ;;  %v342_v51 = vld [vmem:[#allocation2 + $0x970] sm:$0xff] }
 0x10f   :  { %v1873_v48 = vmul.f32 %v1361_v37, %v1361_v37  ;;  %v1364_v49 = vsub.f32 %v340_v45, %v852_v46  ;;  %v853_v50 = vld [vmem:[#allocation5 + $0x968] sm:$0xff]  ;;  %v854_v52 = vld [vmem:[#allocation5 + $0x970] sm:$0xff]  ;;  %2383 = vst [vmem:[#allocation7 + $0x938] sm:$0xff] %v1871_v41  ;;  %v1874_v53 = vmul.f32 %v1362_v43, %v1362_v43  ;;  %v343_v57 = vld [vmem:[#allocation2 + $0x978] sm:$0xff] }
 0x110   :  { %2384 = vst [vmem:[#allocation7 + $0x940] sm:$0xff] %v1872_v42  ;;  %v1875_v54 = vmul.f32 %v1363_v44, %v1363_v44  ;;  %v1365_v55 = vsub.f32 %v341_v47, %v853_v50  ;;  %v1366_v56 = vsub.f32 %v342_v51, %v854_v52  ;;  %v855_v58 = vld [vmem:[#allocation5 + $0x978] sm:$0xff]  ;;  %v344_v59 = vld [vmem:[#allocation2 + $0x980] sm:$0xff]  ;;  %v345_v63 = vld [vmem:[#allocation2 + $0x988] sm:$0xff] }
 0x111   :  { %2385 = vst [vmem:[#allocation7 + $0x948] sm:$0xff] %v1873_v48  ;;  %v1876_v60 = vmul.f32 %v1364_v49, %v1364_v49  ;;  %v1367_v61 = vsub.f32 %v343_v57, %v855_v58  ;;  %v856_v62 = vld [vmem:[#allocation5 + $0x980] sm:$0xff]  ;;  %v857_v0 = vld [vmem:[#allocation5 + $0x988] sm:$0xff]  ;;  %2386 = vst [vmem:[#allocation7 + $0x950] sm:$0xff] %v1874_v53 }
 0x112   :  { %2387 = vst [vmem:[#allocation7 + $0x958] sm:$0xff] %v1875_v54  ;;  %v1877_v1 = vmul.f32 %v1365_v55, %v1365_v55  ;;  %v1878_v2 = vmul.f32 %v1366_v56, %v1366_v56  ;;  %v1368_v3 = vsub.f32 %v344_v59, %v856_v62  ;;  %v1369_v4 = vsub.f32 %v345_v63, %v857_v0  ;;  %v346_v5 = vld [vmem:[#allocation2 + $0x990] sm:$0xff]  ;;  %v347_v7 = vld [vmem:[#allocation2 + $0x998] sm:$0xff]  ;;  %v348_v11 = vld [vmem:[#allocation2 + $0x9a0] sm:$0xff] }
 0x113   :  { %v858_v6 = vld [vmem:[#allocation5 + $0x990] sm:$0xff]  ;;  %2388 = vst [vmem:[#allocation7 + $0x960] sm:$0xff] %v1876_v60  ;;  %v1879_v8 = vmul.f32 %v1367_v61, %v1367_v61  ;;  %v859_v10 = vld [vmem:[#allocation5 + $0x998] sm:$0xff]  ;;  %v860_v12 = vld [vmem:[#allocation5 + $0x9a0] sm:$0xff] }
 0x114   :  { %v1370_v9 = vsub.f32 %v346_v5, %v858_v6  ;;  %2389 = vst [vmem:[#allocation7 + $0x968] sm:$0xff] %v1877_v1  ;;  %2390 = vst [vmem:[#allocation7 + $0x970] sm:$0xff] %v1878_v2  ;;  %v1880_v13 = vmul.f32 %v1368_v3, %v1368_v3  ;;  %v1881_v14 = vmul.f32 %v1369_v4, %v1369_v4  ;;  %v349_v17 = vld [vmem:[#allocation2 + $0x9a8] sm:$0xff]  ;;  %v350_v19 = vld [vmem:[#allocation2 + $0x9b0] sm:$0xff] }
 0x115   :  { %v1371_v15 = vsub.f32 %v347_v7, %v859_v10  ;;  %v1372_v16 = vsub.f32 %v348_v11, %v860_v12  ;;  %v861_v18 = vld [vmem:[#allocation5 + $0x9a8] sm:$0xff]  ;;  %2391 = vst [vmem:[#allocation7 + $0x978] sm:$0xff] %v1879_v8  ;;  %v862_v22 = vld [vmem:[#allocation5 + $0x9b0] sm:$0xff]  ;;  %v351_v23 = vld [vmem:[#allocation2 + $0x9b8] sm:$0xff] }
 0x116   :  { %v1882_v20 = vmul.f32 %v1370_v9, %v1370_v9  ;;  %v1373_v21 = vsub.f32 %v349_v17, %v861_v18  ;;  %v863_v24 = vld [vmem:[#allocation5 + $0x9b8] sm:$0xff]  ;;  %2392 = vst [vmem:[#allocation7 + $0x980] sm:$0xff] %v1880_v13  ;;  %2393 = vst [vmem:[#allocation7 + $0x988] sm:$0xff] %v1881_v14  ;;  %v1374_v27 = vsub.f32 %v350_v19, %v862_v22  ;;  %v352_v29 = vld [vmem:[#allocation2 + $0x9c0] sm:$0xff] }
 0x117   :  { %v1883_v25 = vmul.f32 %v1371_v15, %v1371_v15  ;;  %v1884_v26 = vmul.f32 %v1372_v16, %v1372_v16  ;;  %v1375_v28 = vsub.f32 %v351_v23, %v863_v24  ;;  %v864_v30 = vld [vmem:[#allocation5 + $0x9c0] sm:$0xff]  ;;  %v353_v31 = vld [vmem:[#allocation2 + $0x9c8] sm:$0xff]  ;;  %v354_v35 = vld [vmem:[#allocation2 + $0x9d0] sm:$0xff] }
 0x118   :  { %2394 = vst [vmem:[#allocation7 + $0x990] sm:$0xff] %v1882_v20  ;;  %v1885_v32 = vmul.f32 %v1373_v21, %v1373_v21  ;;  %v1376_v33 = vsub.f32 %v352_v29, %v864_v30  ;;  %v865_v34 = vld [vmem:[#allocation5 + $0x9c8] sm:$0xff]  ;;  %v866_v36 = vld [vmem:[#allocation5 + $0x9d0] sm:$0xff]  ;;  %v1886_v37 = vmul.f32 %v1374_v27, %v1374_v27  ;;  %v355_v41 = vld [vmem:[#allocation2 + $0x9d8] sm:$0xff] }
 0x119   :  { %2395 = vst [vmem:[#allocation7 + $0x998] sm:$0xff] %v1883_v25  ;;  %2396 = vst [vmem:[#allocation7 + $0x9a0] sm:$0xff] %v1884_v26  ;;  %v1887_v38 = vmul.f32 %v1375_v28, %v1375_v28  ;;  %v1377_v39 = vsub.f32 %v353_v31, %v865_v34  ;;  %v1378_v40 = vsub.f32 %v354_v35, %v866_v36  ;;  %v867_v42 = vld [vmem:[#allocation5 + $0x9d8] sm:$0xff]  ;;  %v356_v43 = vld [vmem:[#allocation2 + $0x9e0] sm:$0xff] }
 0x11a   :  { %2397 = vst [vmem:[#allocation7 + $0x9a8] sm:$0xff] %v1885_v32  ;;  %v1888_v44 = vmul.f32 %v1376_v33, %v1376_v33  ;;  %v1379_v45 = vsub.f32 %v355_v41, %v867_v42  ;;  %v868_v46 = vld [vmem:[#allocation5 + $0x9e0] sm:$0xff]  ;;  %v357_v47 = vld [vmem:[#allocation2 + $0x9e8] sm:$0xff]  ;;  %2398 = vst [vmem:[#allocation7 + $0x9b0] sm:$0xff] %v1886_v37 }
 0x11b   :  { %v869_v48 = vld [vmem:[#allocation5 + $0x9e8] sm:$0xff]  ;;  %2399 = vst [vmem:[#allocation7 + $0x9b8] sm:$0xff] %v1887_v38  ;;  %v1889_v49 = vmul.f32 %v1377_v39, %v1377_v39  ;;  %v1890_v50 = vmul.f32 %v1378_v40, %v1378_v40  ;;  %v1380_v51 = vsub.f32 %v356_v43, %v868_v46  ;;  %v358_v53 = vld [vmem:[#allocation2 + $0x9f0] sm:$0xff]  ;;  %v359_v55 = vld [vmem:[#allocation2 + $0x9f8] sm:$0xff] }
 0x11c   :  { %v1381_v52 = vsub.f32 %v357_v47, %v869_v48  ;;  %v870_v54 = vld [vmem:[#allocation5 + $0x9f0] sm:$0xff]  ;;  %2400 = vst [vmem:[#allocation7 + $0x9c0] sm:$0xff] %v1888_v44  ;;  %v1891_v56 = vmul.f32 %v1379_v45, %v1379_v45  ;;  %v871_v58 = vld [vmem:[#allocation5 + $0x9f8] sm:$0xff]  ;;  %v360_v59 = vld [vmem:[#allocation2 + $0xa00] sm:$0xff] }
 0x11d   :  { %v1382_v57 = vsub.f32 %v358_v53, %v870_v54  ;;  %v872_v60 = vld [vmem:[#allocation5 + $0xa00] sm:$0xff]  ;;  %2401 = vst [vmem:[#allocation7 + $0x9c8] sm:$0xff] %v1889_v49  ;;  %2402 = vst [vmem:[#allocation7 + $0x9d0] sm:$0xff] %v1890_v50  ;;  %v1892_v61 = vmul.f32 %v1380_v51, %v1380_v51  ;;  %v1383_v63 = vsub.f32 %v359_v55, %v871_v58  ;;  %v361_v1 = vld [vmem:[#allocation2 + $0xa08] sm:$0xff] }
 0x11e   :  { %v1893_v62 = vmul.f32 %v1381_v52, %v1381_v52  ;;  %v1384_v0 = vsub.f32 %v360_v59, %v872_v60  ;;  %v873_v2 = vld [vmem:[#allocation5 + $0xa08] sm:$0xff]  ;;  %v362_v3 = vld [vmem:[#allocation2 + $0xa10] sm:$0xff]  ;;  %2403 = vst [vmem:[#allocation7 + $0x9d8] sm:$0xff] %v1891_v56  ;;  %v363_v7 = vld [vmem:[#allocation2 + $0xa18] sm:$0xff] }
 0x11f   :  { %v1894_v4 = vmul.f32 %v1382_v57, %v1382_v57  ;;  %v1385_v5 = vsub.f32 %v361_v1, %v873_v2  ;;  %v874_v6 = vld [vmem:[#allocation5 + $0xa10] sm:$0xff]  ;;  %v875_v8 = vld [vmem:[#allocation5 + $0xa18] sm:$0xff]  ;;  %2404 = vst [vmem:[#allocation7 + $0x9e0] sm:$0xff] %v1892_v61  ;;  %v1895_v9 = vmul.f32 %v1383_v63, %v1383_v63  ;;  %v364_v13 = vld [vmem:[#allocation2 + $0xa20] sm:$0xff] }
 0x120   :  { %2405 = vst [vmem:[#allocation7 + $0x9e8] sm:$0xff] %v1893_v62  ;;  %v1896_v10 = vmul.f32 %v1384_v0, %v1384_v0  ;;  %v1386_v11 = vsub.f32 %v362_v3, %v874_v6  ;;  %v1387_v12 = vsub.f32 %v363_v7, %v875_v8  ;;  %v876_v14 = vld [vmem:[#allocation5 + $0xa20] sm:$0xff]  ;;  %v365_v15 = vld [vmem:[#allocation2 + $0xa28] sm:$0xff]  ;;  %v366_v19 = vld [vmem:[#allocation2 + $0xa30] sm:$0xff] }
 0x121   :  { %2406 = vst [vmem:[#allocation7 + $0x9f0] sm:$0xff] %v1894_v4  ;;  %v1897_v16 = vmul.f32 %v1385_v5, %v1385_v5  ;;  %v1388_v17 = vsub.f32 %v364_v13, %v876_v14  ;;  %v877_v18 = vld [vmem:[#allocation5 + $0xa28] sm:$0xff]  ;;  %v878_v20 = vld [vmem:[#allocation5 + $0xa30] sm:$0xff]  ;;  %2407 = vst [vmem:[#allocation7 + $0x9f8] sm:$0xff] %v1895_v9 }
 0x122   :  { %2408 = vst [vmem:[#allocation7 + $0xa00] sm:$0xff] %v1896_v10  ;;  %v1898_v21 = vmul.f32 %v1386_v11, %v1386_v11  ;;  %v1899_v22 = vmul.f32 %v1387_v12, %v1387_v12  ;;  %v1389_v23 = vsub.f32 %v365_v15, %v877_v18  ;;  %v1390_v24 = vsub.f32 %v366_v19, %v878_v20  ;;  %v367_v25 = vld [vmem:[#allocation2 + $0xa38] sm:$0xff]  ;;  %v368_v27 = vld [vmem:[#allocation2 + $0xa40] sm:$0xff]  ;;  %v369_v31 = vld [vmem:[#allocation2 + $0xa48] sm:$0xff] }
 0x123   :  { %v879_v26 = vld [vmem:[#allocation5 + $0xa38] sm:$0xff]  ;;  %2409 = vst [vmem:[#allocation7 + $0xa08] sm:$0xff] %v1897_v16  ;;  %v1900_v28 = vmul.f32 %v1388_v17, %v1388_v17  ;;  %v880_v30 = vld [vmem:[#allocation5 + $0xa40] sm:$0xff]  ;;  %v881_v32 = vld [vmem:[#allocation5 + $0xa48] sm:$0xff] }
 0x124   :  { %v1391_v29 = vsub.f32 %v367_v25, %v879_v26  ;;  %2410 = vst [vmem:[#allocation7 + $0xa10] sm:$0xff] %v1898_v21  ;;  %2411 = vst [vmem:[#allocation7 + $0xa18] sm:$0xff] %v1899_v22  ;;  %v1901_v33 = vmul.f32 %v1389_v23, %v1389_v23  ;;  %v1902_v34 = vmul.f32 %v1390_v24, %v1390_v24  ;;  %v370_v37 = vld [vmem:[#allocation2 + $0xa50] sm:$0xff]  ;;  %v371_v39 = vld [vmem:[#allocation2 + $0xa58] sm:$0xff] }
 0x125   :  { %v1392_v35 = vsub.f32 %v368_v27, %v880_v30  ;;  %v1393_v36 = vsub.f32 %v369_v31, %v881_v32  ;;  %v882_v38 = vld [vmem:[#allocation5 + $0xa50] sm:$0xff]  ;;  %2412 = vst [vmem:[#allocation7 + $0xa20] sm:$0xff] %v1900_v28  ;;  %v883_v42 = vld [vmem:[#allocation5 + $0xa58] sm:$0xff]  ;;  %v372_v43 = vld [vmem:[#allocation2 + $0xa60] sm:$0xff] }
 0x126   :  { %v1903_v40 = vmul.f32 %v1391_v29, %v1391_v29  ;;  %v1394_v41 = vsub.f32 %v370_v37, %v882_v38  ;;  %v884_v44 = vld [vmem:[#allocation5 + $0xa60] sm:$0xff]  ;;  %2413 = vst [vmem:[#allocation7 + $0xa28] sm:$0xff] %v1901_v33  ;;  %2414 = vst [vmem:[#allocation7 + $0xa30] sm:$0xff] %v1902_v34  ;;  %v1395_v47 = vsub.f32 %v371_v39, %v883_v42  ;;  %v373_v49 = vld [vmem:[#allocation2 + $0xa68] sm:$0xff] }
 0x127   :  { %v1904_v45 = vmul.f32 %v1392_v35, %v1392_v35  ;;  %v1905_v46 = vmul.f32 %v1393_v36, %v1393_v36  ;;  %v1396_v48 = vsub.f32 %v372_v43, %v884_v44  ;;  %v885_v50 = vld [vmem:[#allocation5 + $0xa68] sm:$0xff]  ;;  %v374_v51 = vld [vmem:[#allocation2 + $0xa70] sm:$0xff]  ;;  %v375_v55 = vld [vmem:[#allocation2 + $0xa78] sm:$0xff] }
 0x128   :  { %2415 = vst [vmem:[#allocation7 + $0xa38] sm:$0xff] %v1903_v40  ;;  %v1906_v52 = vmul.f32 %v1394_v41, %v1394_v41  ;;  %v1397_v53 = vsub.f32 %v373_v49, %v885_v50  ;;  %v886_v54 = vld [vmem:[#allocation5 + $0xa70] sm:$0xff]  ;;  %v887_v56 = vld [vmem:[#allocation5 + $0xa78] sm:$0xff]  ;;  %v1907_v57 = vmul.f32 %v1395_v47, %v1395_v47  ;;  %v376_v61 = vld [vmem:[#allocation2 + $0xa80] sm:$0xff] }
 0x129   :  { %2416 = vst [vmem:[#allocation7 + $0xa40] sm:$0xff] %v1904_v45  ;;  %2417 = vst [vmem:[#allocation7 + $0xa48] sm:$0xff] %v1905_v46  ;;  %v1908_v58 = vmul.f32 %v1396_v48, %v1396_v48  ;;  %v1398_v59 = vsub.f32 %v374_v51, %v886_v54  ;;  %v1399_v60 = vsub.f32 %v375_v55, %v887_v56  ;;  %v888_v62 = vld [vmem:[#allocation5 + $0xa80] sm:$0xff]  ;;  %v377_v63 = vld [vmem:[#allocation2 + $0xa88] sm:$0xff] }
 0x12a   :  { %2418 = vst [vmem:[#allocation7 + $0xa50] sm:$0xff] %v1906_v52  ;;  %v1909_v0 = vmul.f32 %v1397_v53, %v1397_v53  ;;  %v1400_v1 = vsub.f32 %v376_v61, %v888_v62  ;;  %v889_v2 = vld [vmem:[#allocation5 + $0xa88] sm:$0xff]  ;;  %v378_v3 = vld [vmem:[#allocation2 + $0xa90] sm:$0xff]  ;;  %2419 = vst [vmem:[#allocation7 + $0xa58] sm:$0xff] %v1907_v57 }
 0x12b   :  { %v890_v4 = vld [vmem:[#allocation5 + $0xa90] sm:$0xff]  ;;  %2420 = vst [vmem:[#allocation7 + $0xa60] sm:$0xff] %v1908_v58  ;;  %v1910_v5 = vmul.f32 %v1398_v59, %v1398_v59  ;;  %v1911_v6 = vmul.f32 %v1399_v60, %v1399_v60  ;;  %v1401_v7 = vsub.f32 %v377_v63, %v889_v2  ;;  %v379_v9 = vld [vmem:[#allocation2 + $0xa98] sm:$0xff]  ;;  %v380_v11 = vld [vmem:[#allocation2 + $0xaa0] sm:$0xff] }
 0x12c   :  { %v1402_v8 = vsub.f32 %v378_v3, %v890_v4  ;;  %v891_v10 = vld [vmem:[#allocation5 + $0xa98] sm:$0xff]  ;;  %2421 = vst [vmem:[#allocation7 + $0xa68] sm:$0xff] %v1909_v0  ;;  %v1912_v12 = vmul.f32 %v1400_v1, %v1400_v1  ;;  %v892_v14 = vld [vmem:[#allocation5 + $0xaa0] sm:$0xff]  ;;  %v381_v15 = vld [vmem:[#allocation2 + $0xaa8] sm:$0xff] }
 0x12d   :  { %v1403_v13 = vsub.f32 %v379_v9, %v891_v10  ;;  %v893_v16 = vld [vmem:[#allocation5 + $0xaa8] sm:$0xff]  ;;  %2422 = vst [vmem:[#allocation7 + $0xa70] sm:$0xff] %v1910_v5  ;;  %2423 = vst [vmem:[#allocation7 + $0xa78] sm:$0xff] %v1911_v6  ;;  %v1913_v17 = vmul.f32 %v1401_v7, %v1401_v7  ;;  %v1404_v19 = vsub.f32 %v380_v11, %v892_v14  ;;  %v382_v21 = vld [vmem:[#allocation2 + $0xab0] sm:$0xff] }
 0x12e   :  { %v1914_v18 = vmul.f32 %v1402_v8, %v1402_v8  ;;  %v1405_v20 = vsub.f32 %v381_v15, %v893_v16  ;;  %v894_v22 = vld [vmem:[#allocation5 + $0xab0] sm:$0xff]  ;;  %v383_v23 = vld [vmem:[#allocation2 + $0xab8] sm:$0xff]  ;;  %2424 = vst [vmem:[#allocation7 + $0xa80] sm:$0xff] %v1912_v12  ;;  %v384_v27 = vld [vmem:[#allocation2 + $0xac0] sm:$0xff] }
 0x12f   :  { %v1915_v24 = vmul.f32 %v1403_v13, %v1403_v13  ;;  %v1406_v25 = vsub.f32 %v382_v21, %v894_v22  ;;  %v895_v26 = vld [vmem:[#allocation5 + $0xab8] sm:$0xff]  ;;  %v896_v28 = vld [vmem:[#allocation5 + $0xac0] sm:$0xff]  ;;  %2425 = vst [vmem:[#allocation7 + $0xa88] sm:$0xff] %v1913_v17  ;;  %v1916_v29 = vmul.f32 %v1404_v19, %v1404_v19  ;;  %v385_v33 = vld [vmem:[#allocation2 + $0xac8] sm:$0xff] }
 0x130   :  { %2426 = vst [vmem:[#allocation7 + $0xa90] sm:$0xff] %v1914_v18  ;;  %v1917_v30 = vmul.f32 %v1405_v20, %v1405_v20  ;;  %v1407_v31 = vsub.f32 %v383_v23, %v895_v26  ;;  %v1408_v32 = vsub.f32 %v384_v27, %v896_v28  ;;  %v897_v34 = vld [vmem:[#allocation5 + $0xac8] sm:$0xff]  ;;  %v386_v35 = vld [vmem:[#allocation2 + $0xad0] sm:$0xff]  ;;  %v387_v39 = vld [vmem:[#allocation2 + $0xad8] sm:$0xff] }
 0x131   :  { %2427 = vst [vmem:[#allocation7 + $0xa98] sm:$0xff] %v1915_v24  ;;  %v1918_v36 = vmul.f32 %v1406_v25, %v1406_v25  ;;  %v1409_v37 = vsub.f32 %v385_v33, %v897_v34  ;;  %v898_v38 = vld [vmem:[#allocation5 + $0xad0] sm:$0xff]  ;;  %v899_v40 = vld [vmem:[#allocation5 + $0xad8] sm:$0xff]  ;;  %2428 = vst [vmem:[#allocation7 + $0xaa0] sm:$0xff] %v1916_v29 }
 0x132   :  { %2429 = vst [vmem:[#allocation7 + $0xaa8] sm:$0xff] %v1917_v30  ;;  %v1919_v41 = vmul.f32 %v1407_v31, %v1407_v31  ;;  %v1920_v42 = vmul.f32 %v1408_v32, %v1408_v32  ;;  %v1410_v43 = vsub.f32 %v386_v35, %v898_v38  ;;  %v1411_v44 = vsub.f32 %v387_v39, %v899_v40  ;;  %v388_v45 = vld [vmem:[#allocation2 + $0xae0] sm:$0xff]  ;;  %v389_v47 = vld [vmem:[#allocation2 + $0xae8] sm:$0xff]  ;;  %v390_v51 = vld [vmem:[#allocation2 + $0xaf0] sm:$0xff] }
 0x133   :  { %v900_v46 = vld [vmem:[#allocation5 + $0xae0] sm:$0xff]  ;;  %2430 = vst [vmem:[#allocation7 + $0xab0] sm:$0xff] %v1918_v36  ;;  %v1921_v48 = vmul.f32 %v1409_v37, %v1409_v37  ;;  %v901_v50 = vld [vmem:[#allocation5 + $0xae8] sm:$0xff]  ;;  %v902_v52 = vld [vmem:[#allocation5 + $0xaf0] sm:$0xff] }
 0x134   :  { %v1412_v49 = vsub.f32 %v388_v45, %v900_v46  ;;  %2431 = vst [vmem:[#allocation7 + $0xab8] sm:$0xff] %v1919_v41  ;;  %2432 = vst [vmem:[#allocation7 + $0xac0] sm:$0xff] %v1920_v42  ;;  %v1922_v53 = vmul.f32 %v1410_v43, %v1410_v43  ;;  %v1923_v54 = vmul.f32 %v1411_v44, %v1411_v44  ;;  %v391_v57 = vld [vmem:[#allocation2 + $0xaf8] sm:$0xff]  ;;  %v392_v59 = vld [vmem:[#allocation2 + $0xb00] sm:$0xff] }
 0x135   :  { %v1413_v55 = vsub.f32 %v389_v47, %v901_v50  ;;  %v1414_v56 = vsub.f32 %v390_v51, %v902_v52  ;;  %v903_v58 = vld [vmem:[#allocation5 + $0xaf8] sm:$0xff]  ;;  %2433 = vst [vmem:[#allocation7 + $0xac8] sm:$0xff] %v1921_v48  ;;  %v904_v62 = vld [vmem:[#allocation5 + $0xb00] sm:$0xff]  ;;  %v393_v63 = vld [vmem:[#allocation2 + $0xb08] sm:$0xff] }
 0x136   :  { %v1924_v60 = vmul.f32 %v1412_v49, %v1412_v49  ;;  %v1415_v61 = vsub.f32 %v391_v57, %v903_v58  ;;  %v905_v0 = vld [vmem:[#allocation5 + $0xb08] sm:$0xff]  ;;  %2434 = vst [vmem:[#allocation7 + $0xad0] sm:$0xff] %v1922_v53  ;;  %2435 = vst [vmem:[#allocation7 + $0xad8] sm:$0xff] %v1923_v54  ;;  %v1416_v3 = vsub.f32 %v392_v59, %v904_v62  ;;  %v394_v5 = vld [vmem:[#allocation2 + $0xb10] sm:$0xff] }
 0x137   :  { %v1925_v1 = vmul.f32 %v1413_v55, %v1413_v55  ;;  %v1926_v2 = vmul.f32 %v1414_v56, %v1414_v56  ;;  %v1417_v4 = vsub.f32 %v393_v63, %v905_v0  ;;  %v906_v6 = vld [vmem:[#allocation5 + $0xb10] sm:$0xff]  ;;  %v395_v7 = vld [vmem:[#allocation2 + $0xb18] sm:$0xff]  ;;  %v396_v11 = vld [vmem:[#allocation2 + $0xb20] sm:$0xff] }
 0x138   :  { %2436 = vst [vmem:[#allocation7 + $0xae0] sm:$0xff] %v1924_v60  ;;  %v1927_v8 = vmul.f32 %v1415_v61, %v1415_v61  ;;  %v1418_v9 = vsub.f32 %v394_v5, %v906_v6  ;;  %v907_v10 = vld [vmem:[#allocation5 + $0xb18] sm:$0xff]  ;;  %v908_v12 = vld [vmem:[#allocation5 + $0xb20] sm:$0xff]  ;;  %v1928_v13 = vmul.f32 %v1416_v3, %v1416_v3  ;;  %v397_v17 = vld [vmem:[#allocation2 + $0xb28] sm:$0xff] }
 0x139   :  { %2437 = vst [vmem:[#allocation7 + $0xae8] sm:$0xff] %v1925_v1  ;;  %2438 = vst [vmem:[#allocation7 + $0xaf0] sm:$0xff] %v1926_v2  ;;  %v1929_v14 = vmul.f32 %v1417_v4, %v1417_v4  ;;  %v1419_v15 = vsub.f32 %v395_v7, %v907_v10  ;;  %v1420_v16 = vsub.f32 %v396_v11, %v908_v12  ;;  %v909_v18 = vld [vmem:[#allocation5 + $0xb28] sm:$0xff]  ;;  %v398_v19 = vld [vmem:[#allocation2 + $0xb30] sm:$0xff] }
 0x13a   :  { %2439 = vst [vmem:[#allocation7 + $0xaf8] sm:$0xff] %v1927_v8  ;;  %v1930_v20 = vmul.f32 %v1418_v9, %v1418_v9  ;;  %v1421_v21 = vsub.f32 %v397_v17, %v909_v18  ;;  %v910_v22 = vld [vmem:[#allocation5 + $0xb30] sm:$0xff]  ;;  %v399_v23 = vld [vmem:[#allocation2 + $0xb38] sm:$0xff]  ;;  %2440 = vst [vmem:[#allocation7 + $0xb00] sm:$0xff] %v1928_v13 }
 0x13b   :  { %v911_v24 = vld [vmem:[#allocation5 + $0xb38] sm:$0xff]  ;;  %2441 = vst [vmem:[#allocation7 + $0xb08] sm:$0xff] %v1929_v14  ;;  %v1931_v25 = vmul.f32 %v1419_v15, %v1419_v15  ;;  %v1932_v26 = vmul.f32 %v1420_v16, %v1420_v16  ;;  %v1422_v27 = vsub.f32 %v398_v19, %v910_v22  ;;  %v400_v29 = vld [vmem:[#allocation2 + $0xb40] sm:$0xff]  ;;  %v401_v31 = vld [vmem:[#allocation2 + $0xb48] sm:$0xff] }
 0x13c   :  { %v1423_v28 = vsub.f32 %v399_v23, %v911_v24  ;;  %v912_v30 = vld [vmem:[#allocation5 + $0xb40] sm:$0xff]  ;;  %2442 = vst [vmem:[#allocation7 + $0xb10] sm:$0xff] %v1930_v20  ;;  %v1933_v32 = vmul.f32 %v1421_v21, %v1421_v21  ;;  %v913_v34 = vld [vmem:[#allocation5 + $0xb48] sm:$0xff]  ;;  %v402_v35 = vld [vmem:[#allocation2 + $0xb50] sm:$0xff] }
 0x13d   :  { %v1424_v33 = vsub.f32 %v400_v29, %v912_v30  ;;  %v914_v36 = vld [vmem:[#allocation5 + $0xb50] sm:$0xff]  ;;  %2443 = vst [vmem:[#allocation7 + $0xb18] sm:$0xff] %v1931_v25  ;;  %2444 = vst [vmem:[#allocation7 + $0xb20] sm:$0xff] %v1932_v26  ;;  %v1934_v37 = vmul.f32 %v1422_v27, %v1422_v27  ;;  %v1425_v39 = vsub.f32 %v401_v31, %v913_v34  ;;  %v403_v41 = vld [vmem:[#allocation2 + $0xb58] sm:$0xff] }
 0x13e   :  { %v1935_v38 = vmul.f32 %v1423_v28, %v1423_v28  ;;  %v1426_v40 = vsub.f32 %v402_v35, %v914_v36  ;;  %v915_v42 = vld [vmem:[#allocation5 + $0xb58] sm:$0xff]  ;;  %v404_v43 = vld [vmem:[#allocation2 + $0xb60] sm:$0xff]  ;;  %2445 = vst [vmem:[#allocation7 + $0xb28] sm:$0xff] %v1933_v32  ;;  %v405_v47 = vld [vmem:[#allocation2 + $0xb68] sm:$0xff] }
 0x13f   :  { %v1936_v44 = vmul.f32 %v1424_v33, %v1424_v33  ;;  %v1427_v45 = vsub.f32 %v403_v41, %v915_v42  ;;  %v916_v46 = vld [vmem:[#allocation5 + $0xb60] sm:$0xff]  ;;  %v917_v48 = vld [vmem:[#allocation5 + $0xb68] sm:$0xff]  ;;  %2446 = vst [vmem:[#allocation7 + $0xb30] sm:$0xff] %v1934_v37  ;;  %v1937_v49 = vmul.f32 %v1425_v39, %v1425_v39  ;;  %v406_v53 = vld [vmem:[#allocation2 + $0xb70] sm:$0xff] }
 0x140   :  { %2447 = vst [vmem:[#allocation7 + $0xb38] sm:$0xff] %v1935_v38  ;;  %v1938_v50 = vmul.f32 %v1426_v40, %v1426_v40  ;;  %v1428_v51 = vsub.f32 %v404_v43, %v916_v46  ;;  %v1429_v52 = vsub.f32 %v405_v47, %v917_v48  ;;  %v918_v54 = vld [vmem:[#allocation5 + $0xb70] sm:$0xff]  ;;  %v407_v55 = vld [vmem:[#allocation2 + $0xb78] sm:$0xff]  ;;  %v408_v59 = vld [vmem:[#allocation2 + $0xb80] sm:$0xff] }
 0x141   :  { %2448 = vst [vmem:[#allocation7 + $0xb40] sm:$0xff] %v1936_v44  ;;  %v1939_v56 = vmul.f32 %v1427_v45, %v1427_v45  ;;  %v1430_v57 = vsub.f32 %v406_v53, %v918_v54  ;;  %v919_v58 = vld [vmem:[#allocation5 + $0xb78] sm:$0xff]  ;;  %v920_v60 = vld [vmem:[#allocation5 + $0xb80] sm:$0xff]  ;;  %2449 = vst [vmem:[#allocation7 + $0xb48] sm:$0xff] %v1937_v49 }
 0x142   :  { %2450 = vst [vmem:[#allocation7 + $0xb50] sm:$0xff] %v1938_v50  ;;  %v1940_v61 = vmul.f32 %v1428_v51, %v1428_v51  ;;  %v1941_v62 = vmul.f32 %v1429_v52, %v1429_v52  ;;  %v1431_v63 = vsub.f32 %v407_v55, %v919_v58  ;;  %v1432_v0 = vsub.f32 %v408_v59, %v920_v60  ;;  %v409_v1 = vld [vmem:[#allocation2 + $0xb88] sm:$0xff]  ;;  %v410_v3 = vld [vmem:[#allocation2 + $0xb90] sm:$0xff]  ;;  %v411_v7 = vld [vmem:[#allocation2 + $0xb98] sm:$0xff] }
 0x143   :  { %v921_v2 = vld [vmem:[#allocation5 + $0xb88] sm:$0xff]  ;;  %2451 = vst [vmem:[#allocation7 + $0xb58] sm:$0xff] %v1939_v56  ;;  %v1942_v4 = vmul.f32 %v1430_v57, %v1430_v57  ;;  %v922_v6 = vld [vmem:[#allocation5 + $0xb90] sm:$0xff]  ;;  %v923_v8 = vld [vmem:[#allocation5 + $0xb98] sm:$0xff] }
 0x144   :  { %v1433_v5 = vsub.f32 %v409_v1, %v921_v2  ;;  %2452 = vst [vmem:[#allocation7 + $0xb60] sm:$0xff] %v1940_v61  ;;  %2453 = vst [vmem:[#allocation7 + $0xb68] sm:$0xff] %v1941_v62  ;;  %v1943_v9 = vmul.f32 %v1431_v63, %v1431_v63  ;;  %v1944_v10 = vmul.f32 %v1432_v0, %v1432_v0  ;;  %v412_v13 = vld [vmem:[#allocation2 + $0xba0] sm:$0xff]  ;;  %v413_v15 = vld [vmem:[#allocation2 + $0xba8] sm:$0xff] }
 0x145   :  { %v1434_v11 = vsub.f32 %v410_v3, %v922_v6  ;;  %v1435_v12 = vsub.f32 %v411_v7, %v923_v8  ;;  %v924_v14 = vld [vmem:[#allocation5 + $0xba0] sm:$0xff]  ;;  %2454 = vst [vmem:[#allocation7 + $0xb70] sm:$0xff] %v1942_v4  ;;  %v925_v18 = vld [vmem:[#allocation5 + $0xba8] sm:$0xff]  ;;  %v414_v19 = vld [vmem:[#allocation2 + $0xbb0] sm:$0xff] }
 0x146   :  { %v1945_v16 = vmul.f32 %v1433_v5, %v1433_v5  ;;  %v1436_v17 = vsub.f32 %v412_v13, %v924_v14  ;;  %v926_v20 = vld [vmem:[#allocation5 + $0xbb0] sm:$0xff]  ;;  %2455 = vst [vmem:[#allocation7 + $0xb78] sm:$0xff] %v1943_v9  ;;  %2456 = vst [vmem:[#allocation7 + $0xb80] sm:$0xff] %v1944_v10  ;;  %v1437_v23 = vsub.f32 %v413_v15, %v925_v18  ;;  %v415_v25 = vld [vmem:[#allocation2 + $0xbb8] sm:$0xff] }
 0x147   :  { %v1946_v21 = vmul.f32 %v1434_v11, %v1434_v11  ;;  %v1947_v22 = vmul.f32 %v1435_v12, %v1435_v12  ;;  %v1438_v24 = vsub.f32 %v414_v19, %v926_v20  ;;  %v927_v26 = vld [vmem:[#allocation5 + $0xbb8] sm:$0xff]  ;;  %v416_v27 = vld [vmem:[#allocation2 + $0xbc0] sm:$0xff]  ;;  %v417_v31 = vld [vmem:[#allocation2 + $0xbc8] sm:$0xff] }
 0x148   :  { %2457 = vst [vmem:[#allocation7 + $0xb88] sm:$0xff] %v1945_v16  ;;  %v1948_v28 = vmul.f32 %v1436_v17, %v1436_v17  ;;  %v1439_v29 = vsub.f32 %v415_v25, %v927_v26  ;;  %v928_v30 = vld [vmem:[#allocation5 + $0xbc0] sm:$0xff]  ;;  %v929_v32 = vld [vmem:[#allocation5 + $0xbc8] sm:$0xff]  ;;  %v1949_v33 = vmul.f32 %v1437_v23, %v1437_v23  ;;  %v418_v37 = vld [vmem:[#allocation2 + $0xbd0] sm:$0xff] }
 0x149   :  { %2458 = vst [vmem:[#allocation7 + $0xb90] sm:$0xff] %v1946_v21  ;;  %2459 = vst [vmem:[#allocation7 + $0xb98] sm:$0xff] %v1947_v22  ;;  %v1950_v34 = vmul.f32 %v1438_v24, %v1438_v24  ;;  %v1440_v35 = vsub.f32 %v416_v27, %v928_v30  ;;  %v1441_v36 = vsub.f32 %v417_v31, %v929_v32  ;;  %v930_v38 = vld [vmem:[#allocation5 + $0xbd0] sm:$0xff]  ;;  %v419_v39 = vld [vmem:[#allocation2 + $0xbd8] sm:$0xff] }
 0x14a   :  { %2460 = vst [vmem:[#allocation7 + $0xba0] sm:$0xff] %v1948_v28  ;;  %v1951_v40 = vmul.f32 %v1439_v29, %v1439_v29  ;;  %v1442_v41 = vsub.f32 %v418_v37, %v930_v38  ;;  %v931_v42 = vld [vmem:[#allocation5 + $0xbd8] sm:$0xff]  ;;  %v420_v43 = vld [vmem:[#allocation2 + $0xbe0] sm:$0xff]  ;;  %2461 = vst [vmem:[#allocation7 + $0xba8] sm:$0xff] %v1949_v33 }
 0x14b   :  { %v932_v44 = vld [vmem:[#allocation5 + $0xbe0] sm:$0xff]  ;;  %2462 = vst [vmem:[#allocation7 + $0xbb0] sm:$0xff] %v1950_v34  ;;  %v1952_v45 = vmul.f32 %v1440_v35, %v1440_v35  ;;  %v1953_v46 = vmul.f32 %v1441_v36, %v1441_v36  ;;  %v1443_v47 = vsub.f32 %v419_v39, %v931_v42  ;;  %v421_v49 = vld [vmem:[#allocation2 + $0xbe8] sm:$0xff]  ;;  %v422_v51 = vld [vmem:[#allocation2 + $0xbf0] sm:$0xff] }
 0x14c   :  { %v1444_v48 = vsub.f32 %v420_v43, %v932_v44  ;;  %v933_v50 = vld [vmem:[#allocation5 + $0xbe8] sm:$0xff]  ;;  %2463 = vst [vmem:[#allocation7 + $0xbb8] sm:$0xff] %v1951_v40  ;;  %v1954_v52 = vmul.f32 %v1442_v41, %v1442_v41  ;;  %v934_v54 = vld [vmem:[#allocation5 + $0xbf0] sm:$0xff]  ;;  %v423_v55 = vld [vmem:[#allocation2 + $0xbf8] sm:$0xff] }
 0x14d   :  { %v1445_v53 = vsub.f32 %v421_v49, %v933_v50  ;;  %v935_v56 = vld [vmem:[#allocation5 + $0xbf8] sm:$0xff]  ;;  %2464 = vst [vmem:[#allocation7 + $0xbc0] sm:$0xff] %v1952_v45  ;;  %2465 = vst [vmem:[#allocation7 + $0xbc8] sm:$0xff] %v1953_v46  ;;  %v1955_v57 = vmul.f32 %v1443_v47, %v1443_v47  ;;  %v1446_v59 = vsub.f32 %v422_v51, %v934_v54  ;;  %v424_v61 = vld [vmem:[#allocation2 + $0xc00] sm:$0xff] }
 0x14e   :  { %v1956_v58 = vmul.f32 %v1444_v48, %v1444_v48  ;;  %v1447_v60 = vsub.f32 %v423_v55, %v935_v56  ;;  %v936_v62 = vld [vmem:[#allocation5 + $0xc00] sm:$0xff]  ;;  %v425_v63 = vld [vmem:[#allocation2 + $0xc08] sm:$0xff]  ;;  %2466 = vst [vmem:[#allocation7 + $0xbd0] sm:$0xff] %v1954_v52  ;;  %v426_v3 = vld [vmem:[#allocation2 + $0xc10] sm:$0xff] }
 0x14f   :  { %v1957_v0 = vmul.f32 %v1445_v53, %v1445_v53  ;;  %v1448_v1 = vsub.f32 %v424_v61, %v936_v62  ;;  %v937_v2 = vld [vmem:[#allocation5 + $0xc08] sm:$0xff]  ;;  %v938_v4 = vld [vmem:[#allocation5 + $0xc10] sm:$0xff]  ;;  %2467 = vst [vmem:[#allocation7 + $0xbd8] sm:$0xff] %v1955_v57  ;;  %v1958_v5 = vmul.f32 %v1446_v59, %v1446_v59  ;;  %v427_v9 = vld [vmem:[#allocation2 + $0xc18] sm:$0xff] }
 0x150   :  { %2468 = vst [vmem:[#allocation7 + $0xbe0] sm:$0xff] %v1956_v58  ;;  %v1959_v6 = vmul.f32 %v1447_v60, %v1447_v60  ;;  %v1449_v7 = vsub.f32 %v425_v63, %v937_v2  ;;  %v1450_v8 = vsub.f32 %v426_v3, %v938_v4  ;;  %v939_v10 = vld [vmem:[#allocation5 + $0xc18] sm:$0xff]  ;;  %v428_v11 = vld [vmem:[#allocation2 + $0xc20] sm:$0xff]  ;;  %v429_v15 = vld [vmem:[#allocation2 + $0xc28] sm:$0xff] }
 0x151   :  { %2469 = vst [vmem:[#allocation7 + $0xbe8] sm:$0xff] %v1957_v0  ;;  %v1960_v12 = vmul.f32 %v1448_v1, %v1448_v1  ;;  %v1451_v13 = vsub.f32 %v427_v9, %v939_v10  ;;  %v940_v14 = vld [vmem:[#allocation5 + $0xc20] sm:$0xff]  ;;  %v941_v16 = vld [vmem:[#allocation5 + $0xc28] sm:$0xff]  ;;  %2470 = vst [vmem:[#allocation7 + $0xbf0] sm:$0xff] %v1958_v5 }
 0x152   :  { %2471 = vst [vmem:[#allocation7 + $0xbf8] sm:$0xff] %v1959_v6  ;;  %v1961_v17 = vmul.f32 %v1449_v7, %v1449_v7  ;;  %v1962_v18 = vmul.f32 %v1450_v8, %v1450_v8  ;;  %v1452_v19 = vsub.f32 %v428_v11, %v940_v14  ;;  %v1453_v20 = vsub.f32 %v429_v15, %v941_v16  ;;  %v430_v21 = vld [vmem:[#allocation2 + $0xc30] sm:$0xff]  ;;  %v431_v23 = vld [vmem:[#allocation2 + $0xc38] sm:$0xff]  ;;  %v432_v27 = vld [vmem:[#allocation2 + $0xc40] sm:$0xff] }
 0x153   :  { %v942_v22 = vld [vmem:[#allocation5 + $0xc30] sm:$0xff]  ;;  %2472 = vst [vmem:[#allocation7 + $0xc00] sm:$0xff] %v1960_v12  ;;  %v1963_v24 = vmul.f32 %v1451_v13, %v1451_v13  ;;  %v943_v26 = vld [vmem:[#allocation5 + $0xc38] sm:$0xff]  ;;  %v944_v28 = vld [vmem:[#allocation5 + $0xc40] sm:$0xff] }
 0x154   :  { %v1454_v25 = vsub.f32 %v430_v21, %v942_v22  ;;  %2473 = vst [vmem:[#allocation7 + $0xc08] sm:$0xff] %v1961_v17  ;;  %2474 = vst [vmem:[#allocation7 + $0xc10] sm:$0xff] %v1962_v18  ;;  %v1964_v29 = vmul.f32 %v1452_v19, %v1452_v19  ;;  %v1965_v30 = vmul.f32 %v1453_v20, %v1453_v20  ;;  %v433_v33 = vld [vmem:[#allocation2 + $0xc48] sm:$0xff]  ;;  %v434_v35 = vld [vmem:[#allocation2 + $0xc50] sm:$0xff] }
 0x155   :  { %v1455_v31 = vsub.f32 %v431_v23, %v943_v26  ;;  %v1456_v32 = vsub.f32 %v432_v27, %v944_v28  ;;  %v945_v34 = vld [vmem:[#allocation5 + $0xc48] sm:$0xff]  ;;  %2475 = vst [vmem:[#allocation7 + $0xc18] sm:$0xff] %v1963_v24  ;;  %v946_v38 = vld [vmem:[#allocation5 + $0xc50] sm:$0xff]  ;;  %v435_v39 = vld [vmem:[#allocation2 + $0xc58] sm:$0xff] }
 0x156   :  { %v1966_v36 = vmul.f32 %v1454_v25, %v1454_v25  ;;  %v1457_v37 = vsub.f32 %v433_v33, %v945_v34  ;;  %v947_v40 = vld [vmem:[#allocation5 + $0xc58] sm:$0xff]  ;;  %2476 = vst [vmem:[#allocation7 + $0xc20] sm:$0xff] %v1964_v29  ;;  %2477 = vst [vmem:[#allocation7 + $0xc28] sm:$0xff] %v1965_v30  ;;  %v1458_v43 = vsub.f32 %v434_v35, %v946_v38  ;;  %v436_v45 = vld [vmem:[#allocation2 + $0xc60] sm:$0xff] }
 0x157   :  { %v1967_v41 = vmul.f32 %v1455_v31, %v1455_v31  ;;  %v1968_v42 = vmul.f32 %v1456_v32, %v1456_v32  ;;  %v1459_v44 = vsub.f32 %v435_v39, %v947_v40  ;;  %v948_v46 = vld [vmem:[#allocation5 + $0xc60] sm:$0xff]  ;;  %v437_v47 = vld [vmem:[#allocation2 + $0xc68] sm:$0xff]  ;;  %v438_v51 = vld [vmem:[#allocation2 + $0xc70] sm:$0xff] }
 0x158   :  { %2478 = vst [vmem:[#allocation7 + $0xc30] sm:$0xff] %v1966_v36  ;;  %v1969_v48 = vmul.f32 %v1457_v37, %v1457_v37  ;;  %v1460_v49 = vsub.f32 %v436_v45, %v948_v46  ;;  %v949_v50 = vld [vmem:[#allocation5 + $0xc68] sm:$0xff]  ;;  %v950_v52 = vld [vmem:[#allocation5 + $0xc70] sm:$0xff]  ;;  %v1970_v53 = vmul.f32 %v1458_v43, %v1458_v43  ;;  %v439_v57 = vld [vmem:[#allocation2 + $0xc78] sm:$0xff] }
 0x159   :  { %2479 = vst [vmem:[#allocation7 + $0xc38] sm:$0xff] %v1967_v41  ;;  %2480 = vst [vmem:[#allocation7 + $0xc40] sm:$0xff] %v1968_v42  ;;  %v1971_v54 = vmul.f32 %v1459_v44, %v1459_v44  ;;  %v1461_v55 = vsub.f32 %v437_v47, %v949_v50  ;;  %v1462_v56 = vsub.f32 %v438_v51, %v950_v52  ;;  %v951_v58 = vld [vmem:[#allocation5 + $0xc78] sm:$0xff]  ;;  %v440_v59 = vld [vmem:[#allocation2 + $0xc80] sm:$0xff] }
 0x15a   :  { %2481 = vst [vmem:[#allocation7 + $0xc48] sm:$0xff] %v1969_v48  ;;  %v1972_v60 = vmul.f32 %v1460_v49, %v1460_v49  ;;  %v1463_v61 = vsub.f32 %v439_v57, %v951_v58  ;;  %v952_v62 = vld [vmem:[#allocation5 + $0xc80] sm:$0xff]  ;;  %v441_v63 = vld [vmem:[#allocation2 + $0xc88] sm:$0xff]  ;;  %2482 = vst [vmem:[#allocation7 + $0xc50] sm:$0xff] %v1970_v53 }
 0x15b   :  { %v953_v0 = vld [vmem:[#allocation5 + $0xc88] sm:$0xff]  ;;  %2483 = vst [vmem:[#allocation7 + $0xc58] sm:$0xff] %v1971_v54  ;;  %v1973_v1 = vmul.f32 %v1461_v55, %v1461_v55  ;;  %v1974_v2 = vmul.f32 %v1462_v56, %v1462_v56  ;;  %v1464_v3 = vsub.f32 %v440_v59, %v952_v62  ;;  %v442_v5 = vld [vmem:[#allocation2 + $0xc90] sm:$0xff]  ;;  %v443_v7 = vld [vmem:[#allocation2 + $0xc98] sm:$0xff] }
 0x15c   :  { %v1465_v4 = vsub.f32 %v441_v63, %v953_v0  ;;  %v954_v6 = vld [vmem:[#allocation5 + $0xc90] sm:$0xff]  ;;  %2484 = vst [vmem:[#allocation7 + $0xc60] sm:$0xff] %v1972_v60  ;;  %v1975_v8 = vmul.f32 %v1463_v61, %v1463_v61  ;;  %v955_v10 = vld [vmem:[#allocation5 + $0xc98] sm:$0xff]  ;;  %v444_v11 = vld [vmem:[#allocation2 + $0xca0] sm:$0xff] }
 0x15d   :  { %v1466_v9 = vsub.f32 %v442_v5, %v954_v6  ;;  %v956_v12 = vld [vmem:[#allocation5 + $0xca0] sm:$0xff]  ;;  %2485 = vst [vmem:[#allocation7 + $0xc68] sm:$0xff] %v1973_v1  ;;  %2486 = vst [vmem:[#allocation7 + $0xc70] sm:$0xff] %v1974_v2  ;;  %v1976_v13 = vmul.f32 %v1464_v3, %v1464_v3  ;;  %v1467_v15 = vsub.f32 %v443_v7, %v955_v10  ;;  %v445_v17 = vld [vmem:[#allocation2 + $0xca8] sm:$0xff] }
 0x15e   :  { %v1977_v14 = vmul.f32 %v1465_v4, %v1465_v4  ;;  %v1468_v16 = vsub.f32 %v444_v11, %v956_v12  ;;  %v957_v18 = vld [vmem:[#allocation5 + $0xca8] sm:$0xff]  ;;  %v446_v19 = vld [vmem:[#allocation2 + $0xcb0] sm:$0xff]  ;;  %2487 = vst [vmem:[#allocation7 + $0xc78] sm:$0xff] %v1975_v8  ;;  %v447_v23 = vld [vmem:[#allocation2 + $0xcb8] sm:$0xff] }
 0x15f   :  { %v1978_v20 = vmul.f32 %v1466_v9, %v1466_v9  ;;  %v1469_v21 = vsub.f32 %v445_v17, %v957_v18  ;;  %v958_v22 = vld [vmem:[#allocation5 + $0xcb0] sm:$0xff]  ;;  %v959_v24 = vld [vmem:[#allocation5 + $0xcb8] sm:$0xff]  ;;  %2488 = vst [vmem:[#allocation7 + $0xc80] sm:$0xff] %v1976_v13  ;;  %v1979_v25 = vmul.f32 %v1467_v15, %v1467_v15  ;;  %v448_v29 = vld [vmem:[#allocation2 + $0xcc0] sm:$0xff] }
 0x160   :  { %2489 = vst [vmem:[#allocation7 + $0xc88] sm:$0xff] %v1977_v14  ;;  %v1980_v26 = vmul.f32 %v1468_v16, %v1468_v16  ;;  %v1470_v27 = vsub.f32 %v446_v19, %v958_v22  ;;  %v1471_v28 = vsub.f32 %v447_v23, %v959_v24  ;;  %v960_v30 = vld [vmem:[#allocation5 + $0xcc0] sm:$0xff]  ;;  %v449_v31 = vld [vmem:[#allocation2 + $0xcc8] sm:$0xff]  ;;  %v450_v35 = vld [vmem:[#allocation2 + $0xcd0] sm:$0xff] }
 0x161   :  { %2490 = vst [vmem:[#allocation7 + $0xc90] sm:$0xff] %v1978_v20  ;;  %v1981_v32 = vmul.f32 %v1469_v21, %v1469_v21  ;;  %v1472_v33 = vsub.f32 %v448_v29, %v960_v30  ;;  %v961_v34 = vld [vmem:[#allocation5 + $0xcc8] sm:$0xff]  ;;  %v962_v36 = vld [vmem:[#allocation5 + $0xcd0] sm:$0xff]  ;;  %2491 = vst [vmem:[#allocation7 + $0xc98] sm:$0xff] %v1979_v25 }
 0x162   :  { %2492 = vst [vmem:[#allocation7 + $0xca0] sm:$0xff] %v1980_v26  ;;  %v1982_v37 = vmul.f32 %v1470_v27, %v1470_v27  ;;  %v1983_v38 = vmul.f32 %v1471_v28, %v1471_v28  ;;  %v1473_v39 = vsub.f32 %v449_v31, %v961_v34  ;;  %v1474_v40 = vsub.f32 %v450_v35, %v962_v36  ;;  %v451_v41 = vld [vmem:[#allocation2 + $0xcd8] sm:$0xff]  ;;  %v452_v43 = vld [vmem:[#allocation2 + $0xce0] sm:$0xff]  ;;  %v453_v47 = vld [vmem:[#allocation2 + $0xce8] sm:$0xff] }
 0x163   :  { %v963_v42 = vld [vmem:[#allocation5 + $0xcd8] sm:$0xff]  ;;  %2493 = vst [vmem:[#allocation7 + $0xca8] sm:$0xff] %v1981_v32  ;;  %v1984_v44 = vmul.f32 %v1472_v33, %v1472_v33  ;;  %v964_v46 = vld [vmem:[#allocation5 + $0xce0] sm:$0xff]  ;;  %v965_v48 = vld [vmem:[#allocation5 + $0xce8] sm:$0xff] }
 0x164   :  { %v1475_v45 = vsub.f32 %v451_v41, %v963_v42  ;;  %2494 = vst [vmem:[#allocation7 + $0xcb0] sm:$0xff] %v1982_v37  ;;  %2495 = vst [vmem:[#allocation7 + $0xcb8] sm:$0xff] %v1983_v38  ;;  %v1985_v49 = vmul.f32 %v1473_v39, %v1473_v39  ;;  %v1986_v50 = vmul.f32 %v1474_v40, %v1474_v40  ;;  %v454_v53 = vld [vmem:[#allocation2 + $0xcf0] sm:$0xff]  ;;  %v455_v55 = vld [vmem:[#allocation2 + $0xcf8] sm:$0xff] }
 0x165   :  { %v1476_v51 = vsub.f32 %v452_v43, %v964_v46  ;;  %v1477_v52 = vsub.f32 %v453_v47, %v965_v48  ;;  %v966_v54 = vld [vmem:[#allocation5 + $0xcf0] sm:$0xff]  ;;  %2496 = vst [vmem:[#allocation7 + $0xcc0] sm:$0xff] %v1984_v44  ;;  %v967_v58 = vld [vmem:[#allocation5 + $0xcf8] sm:$0xff]  ;;  %v456_v59 = vld [vmem:[#allocation2 + $0xd00] sm:$0xff] }
 0x166   :  { %v1987_v56 = vmul.f32 %v1475_v45, %v1475_v45  ;;  %v1478_v57 = vsub.f32 %v454_v53, %v966_v54  ;;  %v968_v60 = vld [vmem:[#allocation5 + $0xd00] sm:$0xff]  ;;  %2497 = vst [vmem:[#allocation7 + $0xcc8] sm:$0xff] %v1985_v49  ;;  %2498 = vst [vmem:[#allocation7 + $0xcd0] sm:$0xff] %v1986_v50  ;;  %v1479_v63 = vsub.f32 %v455_v55, %v967_v58  ;;  %v457_v1 = vld [vmem:[#allocation2 + $0xd08] sm:$0xff] }
 0x167   :  { %v1988_v61 = vmul.f32 %v1476_v51, %v1476_v51  ;;  %v1989_v62 = vmul.f32 %v1477_v52, %v1477_v52  ;;  %v1480_v0 = vsub.f32 %v456_v59, %v968_v60  ;;  %v969_v2 = vld [vmem:[#allocation5 + $0xd08] sm:$0xff]  ;;  %v458_v3 = vld [vmem:[#allocation2 + $0xd10] sm:$0xff]  ;;  %v459_v7 = vld [vmem:[#allocation2 + $0xd18] sm:$0xff] }
 0x168   :  { %2499 = vst [vmem:[#allocation7 + $0xcd8] sm:$0xff] %v1987_v56  ;;  %v1990_v4 = vmul.f32 %v1478_v57, %v1478_v57  ;;  %v1481_v5 = vsub.f32 %v457_v1, %v969_v2  ;;  %v970_v6 = vld [vmem:[#allocation5 + $0xd10] sm:$0xff]  ;;  %v971_v8 = vld [vmem:[#allocation5 + $0xd18] sm:$0xff]  ;;  %v1991_v9 = vmul.f32 %v1479_v63, %v1479_v63  ;;  %v460_v13 = vld [vmem:[#allocation2 + $0xd20] sm:$0xff] }
 0x169   :  { %2500 = vst [vmem:[#allocation7 + $0xce0] sm:$0xff] %v1988_v61  ;;  %2501 = vst [vmem:[#allocation7 + $0xce8] sm:$0xff] %v1989_v62  ;;  %v1992_v10 = vmul.f32 %v1480_v0, %v1480_v0  ;;  %v1482_v11 = vsub.f32 %v458_v3, %v970_v6  ;;  %v1483_v12 = vsub.f32 %v459_v7, %v971_v8  ;;  %v972_v14 = vld [vmem:[#allocation5 + $0xd20] sm:$0xff]  ;;  %v461_v15 = vld [vmem:[#allocation2 + $0xd28] sm:$0xff] }
 0x16a   :  { %2502 = vst [vmem:[#allocation7 + $0xcf0] sm:$0xff] %v1990_v4  ;;  %v1993_v16 = vmul.f32 %v1481_v5, %v1481_v5  ;;  %v1484_v17 = vsub.f32 %v460_v13, %v972_v14  ;;  %v973_v18 = vld [vmem:[#allocation5 + $0xd28] sm:$0xff]  ;;  %v462_v19 = vld [vmem:[#allocation2 + $0xd30] sm:$0xff]  ;;  %2503 = vst [vmem:[#allocation7 + $0xcf8] sm:$0xff] %v1991_v9 }
 0x16b   :  { %v974_v20 = vld [vmem:[#allocation5 + $0xd30] sm:$0xff]  ;;  %2504 = vst [vmem:[#allocation7 + $0xd00] sm:$0xff] %v1992_v10  ;;  %v1994_v21 = vmul.f32 %v1482_v11, %v1482_v11  ;;  %v1995_v22 = vmul.f32 %v1483_v12, %v1483_v12  ;;  %v1485_v23 = vsub.f32 %v461_v15, %v973_v18  ;;  %v463_v25 = vld [vmem:[#allocation2 + $0xd38] sm:$0xff]  ;;  %v464_v27 = vld [vmem:[#allocation2 + $0xd40] sm:$0xff] }
 0x16c   :  { %v1486_v24 = vsub.f32 %v462_v19, %v974_v20  ;;  %v975_v26 = vld [vmem:[#allocation5 + $0xd38] sm:$0xff]  ;;  %2505 = vst [vmem:[#allocation7 + $0xd08] sm:$0xff] %v1993_v16  ;;  %v1996_v28 = vmul.f32 %v1484_v17, %v1484_v17  ;;  %v976_v30 = vld [vmem:[#allocation5 + $0xd40] sm:$0xff]  ;;  %v465_v31 = vld [vmem:[#allocation2 + $0xd48] sm:$0xff] }
 0x16d   :  { %v1487_v29 = vsub.f32 %v463_v25, %v975_v26  ;;  %v977_v32 = vld [vmem:[#allocation5 + $0xd48] sm:$0xff]  ;;  %2506 = vst [vmem:[#allocation7 + $0xd10] sm:$0xff] %v1994_v21  ;;  %2507 = vst [vmem:[#allocation7 + $0xd18] sm:$0xff] %v1995_v22  ;;  %v1997_v33 = vmul.f32 %v1485_v23, %v1485_v23  ;;  %v1488_v35 = vsub.f32 %v464_v27, %v976_v30  ;;  %v466_v37 = vld [vmem:[#allocation2 + $0xd50] sm:$0xff] }
 0x16e   :  { %v1998_v34 = vmul.f32 %v1486_v24, %v1486_v24  ;;  %v1489_v36 = vsub.f32 %v465_v31, %v977_v32  ;;  %v978_v38 = vld [vmem:[#allocation5 + $0xd50] sm:$0xff]  ;;  %v467_v39 = vld [vmem:[#allocation2 + $0xd58] sm:$0xff]  ;;  %2508 = vst [vmem:[#allocation7 + $0xd20] sm:$0xff] %v1996_v28  ;;  %v468_v43 = vld [vmem:[#allocation2 + $0xd60] sm:$0xff] }
 0x16f   :  { %v1999_v40 = vmul.f32 %v1487_v29, %v1487_v29  ;;  %v1490_v41 = vsub.f32 %v466_v37, %v978_v38  ;;  %v979_v42 = vld [vmem:[#allocation5 + $0xd58] sm:$0xff]  ;;  %v980_v44 = vld [vmem:[#allocation5 + $0xd60] sm:$0xff]  ;;  %2509 = vst [vmem:[#allocation7 + $0xd28] sm:$0xff] %v1997_v33  ;;  %v2000_v45 = vmul.f32 %v1488_v35, %v1488_v35  ;;  %v469_v49 = vld [vmem:[#allocation2 + $0xd68] sm:$0xff] }
 0x170   :  { %2510 = vst [vmem:[#allocation7 + $0xd30] sm:$0xff] %v1998_v34  ;;  %v2001_v46 = vmul.f32 %v1489_v36, %v1489_v36  ;;  %v1491_v47 = vsub.f32 %v467_v39, %v979_v42  ;;  %v1492_v48 = vsub.f32 %v468_v43, %v980_v44  ;;  %v981_v50 = vld [vmem:[#allocation5 + $0xd68] sm:$0xff]  ;;  %v470_v51 = vld [vmem:[#allocation2 + $0xd70] sm:$0xff]  ;;  %v471_v55 = vld [vmem:[#allocation2 + $0xd78] sm:$0xff] }
 0x171   :  { %2511 = vst [vmem:[#allocation7 + $0xd38] sm:$0xff] %v1999_v40  ;;  %v2002_v52 = vmul.f32 %v1490_v41, %v1490_v41  ;;  %v1493_v53 = vsub.f32 %v469_v49, %v981_v50  ;;  %v982_v54 = vld [vmem:[#allocation5 + $0xd70] sm:$0xff]  ;;  %v983_v56 = vld [vmem:[#allocation5 + $0xd78] sm:$0xff]  ;;  %2512 = vst [vmem:[#allocation7 + $0xd40] sm:$0xff] %v2000_v45 }
 0x172   :  { %2513 = vst [vmem:[#allocation7 + $0xd48] sm:$0xff] %v2001_v46  ;;  %v2003_v57 = vmul.f32 %v1491_v47, %v1491_v47  ;;  %v2004_v58 = vmul.f32 %v1492_v48, %v1492_v48  ;;  %v1494_v59 = vsub.f32 %v470_v51, %v982_v54  ;;  %v1495_v60 = vsub.f32 %v471_v55, %v983_v56  ;;  %v472_v61 = vld [vmem:[#allocation2 + $0xd80] sm:$0xff]  ;;  %v473_v63 = vld [vmem:[#allocation2 + $0xd88] sm:$0xff]  ;;  %v474_v3 = vld [vmem:[#allocation2 + $0xd90] sm:$0xff] }
 0x173   :  { %v984_v62 = vld [vmem:[#allocation5 + $0xd80] sm:$0xff]  ;;  %2514 = vst [vmem:[#allocation7 + $0xd50] sm:$0xff] %v2002_v52  ;;  %v2005_v0 = vmul.f32 %v1493_v53, %v1493_v53  ;;  %v985_v2 = vld [vmem:[#allocation5 + $0xd88] sm:$0xff]  ;;  %v986_v4 = vld [vmem:[#allocation5 + $0xd90] sm:$0xff] }
 0x174   :  { %v1496_v1 = vsub.f32 %v472_v61, %v984_v62  ;;  %2515 = vst [vmem:[#allocation7 + $0xd58] sm:$0xff] %v2003_v57  ;;  %2516 = vst [vmem:[#allocation7 + $0xd60] sm:$0xff] %v2004_v58  ;;  %v2006_v5 = vmul.f32 %v1494_v59, %v1494_v59  ;;  %v2007_v6 = vmul.f32 %v1495_v60, %v1495_v60  ;;  %v475_v9 = vld [vmem:[#allocation2 + $0xd98] sm:$0xff]  ;;  %v476_v11 = vld [vmem:[#allocation2 + $0xda0] sm:$0xff] }
 0x175   :  { %v1497_v7 = vsub.f32 %v473_v63, %v985_v2  ;;  %v1498_v8 = vsub.f32 %v474_v3, %v986_v4  ;;  %v987_v10 = vld [vmem:[#allocation5 + $0xd98] sm:$0xff]  ;;  %2517 = vst [vmem:[#allocation7 + $0xd68] sm:$0xff] %v2005_v0  ;;  %v988_v14 = vld [vmem:[#allocation5 + $0xda0] sm:$0xff]  ;;  %v477_v15 = vld [vmem:[#allocation2 + $0xda8] sm:$0xff] }
 0x176   :  { %v2008_v12 = vmul.f32 %v1496_v1, %v1496_v1  ;;  %v1499_v13 = vsub.f32 %v475_v9, %v987_v10  ;;  %v989_v16 = vld [vmem:[#allocation5 + $0xda8] sm:$0xff]  ;;  %2518 = vst [vmem:[#allocation7 + $0xd70] sm:$0xff] %v2006_v5  ;;  %2519 = vst [vmem:[#allocation7 + $0xd78] sm:$0xff] %v2007_v6  ;;  %v1500_v19 = vsub.f32 %v476_v11, %v988_v14  ;;  %v478_v21 = vld [vmem:[#allocation2 + $0xdb0] sm:$0xff] }
 0x177   :  { %v2009_v17 = vmul.f32 %v1497_v7, %v1497_v7  ;;  %v2010_v18 = vmul.f32 %v1498_v8, %v1498_v8  ;;  %v1501_v20 = vsub.f32 %v477_v15, %v989_v16  ;;  %v990_v22 = vld [vmem:[#allocation5 + $0xdb0] sm:$0xff]  ;;  %v479_v23 = vld [vmem:[#allocation2 + $0xdb8] sm:$0xff]  ;;  %v480_v27 = vld [vmem:[#allocation2 + $0xdc0] sm:$0xff] }
 0x178   :  { %2520 = vst [vmem:[#allocation7 + $0xd80] sm:$0xff] %v2008_v12  ;;  %v2011_v24 = vmul.f32 %v1499_v13, %v1499_v13  ;;  %v1502_v25 = vsub.f32 %v478_v21, %v990_v22  ;;  %v991_v26 = vld [vmem:[#allocation5 + $0xdb8] sm:$0xff]  ;;  %v992_v28 = vld [vmem:[#allocation5 + $0xdc0] sm:$0xff]  ;;  %v2012_v29 = vmul.f32 %v1500_v19, %v1500_v19  ;;  %v481_v33 = vld [vmem:[#allocation2 + $0xdc8] sm:$0xff] }
 0x179   :  { %2521 = vst [vmem:[#allocation7 + $0xd88] sm:$0xff] %v2009_v17  ;;  %2522 = vst [vmem:[#allocation7 + $0xd90] sm:$0xff] %v2010_v18  ;;  %v2013_v30 = vmul.f32 %v1501_v20, %v1501_v20  ;;  %v1503_v31 = vsub.f32 %v479_v23, %v991_v26  ;;  %v1504_v32 = vsub.f32 %v480_v27, %v992_v28  ;;  %v993_v34 = vld [vmem:[#allocation5 + $0xdc8] sm:$0xff]  ;;  %v482_v35 = vld [vmem:[#allocation2 + $0xdd0] sm:$0xff] }
 0x17a   :  { %2523 = vst [vmem:[#allocation7 + $0xd98] sm:$0xff] %v2011_v24  ;;  %v2014_v36 = vmul.f32 %v1502_v25, %v1502_v25  ;;  %v1505_v37 = vsub.f32 %v481_v33, %v993_v34  ;;  %v994_v38 = vld [vmem:[#allocation5 + $0xdd0] sm:$0xff]  ;;  %v483_v39 = vld [vmem:[#allocation2 + $0xdd8] sm:$0xff]  ;;  %2524 = vst [vmem:[#allocation7 + $0xda0] sm:$0xff] %v2012_v29 }
 0x17b   :  { %v995_v40 = vld [vmem:[#allocation5 + $0xdd8] sm:$0xff]  ;;  %2525 = vst [vmem:[#allocation7 + $0xda8] sm:$0xff] %v2013_v30  ;;  %v2015_v41 = vmul.f32 %v1503_v31, %v1503_v31  ;;  %v2016_v42 = vmul.f32 %v1504_v32, %v1504_v32  ;;  %v1506_v43 = vsub.f32 %v482_v35, %v994_v38  ;;  %v484_v45 = vld [vmem:[#allocation2 + $0xde0] sm:$0xff]  ;;  %v485_v47 = vld [vmem:[#allocation2 + $0xde8] sm:$0xff] }
 0x17c   :  { %v1507_v44 = vsub.f32 %v483_v39, %v995_v40  ;;  %v996_v46 = vld [vmem:[#allocation5 + $0xde0] sm:$0xff]  ;;  %2526 = vst [vmem:[#allocation7 + $0xdb0] sm:$0xff] %v2014_v36  ;;  %v2017_v48 = vmul.f32 %v1505_v37, %v1505_v37  ;;  %v997_v50 = vld [vmem:[#allocation5 + $0xde8] sm:$0xff]  ;;  %v486_v51 = vld [vmem:[#allocation2 + $0xdf0] sm:$0xff] }
 0x17d   :  { %v1508_v49 = vsub.f32 %v484_v45, %v996_v46  ;;  %v998_v52 = vld [vmem:[#allocation5 + $0xdf0] sm:$0xff]  ;;  %2527 = vst [vmem:[#allocation7 + $0xdb8] sm:$0xff] %v2015_v41  ;;  %2528 = vst [vmem:[#allocation7 + $0xdc0] sm:$0xff] %v2016_v42  ;;  %v2018_v53 = vmul.f32 %v1506_v43, %v1506_v43  ;;  %v1509_v55 = vsub.f32 %v485_v47, %v997_v50  ;;  %v487_v57 = vld [vmem:[#allocation2 + $0xdf8] sm:$0xff] }
 0x17e   :  { %v2019_v54 = vmul.f32 %v1507_v44, %v1507_v44  ;;  %v1510_v56 = vsub.f32 %v486_v51, %v998_v52  ;;  %v999_v58 = vld [vmem:[#allocation5 + $0xdf8] sm:$0xff]  ;;  %v488_v59 = vld [vmem:[#allocation2 + $0xe00] sm:$0xff]  ;;  %2529 = vst [vmem:[#allocation7 + $0xdc8] sm:$0xff] %v2017_v48  ;;  %v489_v63 = vld [vmem:[#allocation2 + $0xe08] sm:$0xff] }
 0x17f   :  { %v2020_v60 = vmul.f32 %v1508_v49, %v1508_v49  ;;  %v1511_v61 = vsub.f32 %v487_v57, %v999_v58  ;;  %v1000_v62 = vld [vmem:[#allocation5 + $0xe00] sm:$0xff]  ;;  %v1001_v0 = vld [vmem:[#allocation5 + $0xe08] sm:$0xff]  ;;  %2530 = vst [vmem:[#allocation7 + $0xdd0] sm:$0xff] %v2018_v53  ;;  %v2021_v1 = vmul.f32 %v1509_v55, %v1509_v55  ;;  %v490_v5 = vld [vmem:[#allocation2 + $0xe10] sm:$0xff] }
 0x180   :  { %2531 = vst [vmem:[#allocation7 + $0xdd8] sm:$0xff] %v2019_v54  ;;  %v2022_v2 = vmul.f32 %v1510_v56, %v1510_v56  ;;  %v1512_v3 = vsub.f32 %v488_v59, %v1000_v62  ;;  %v1513_v4 = vsub.f32 %v489_v63, %v1001_v0  ;;  %v1002_v6 = vld [vmem:[#allocation5 + $0xe10] sm:$0xff]  ;;  %v491_v7 = vld [vmem:[#allocation2 + $0xe18] sm:$0xff]  ;;  %v492_v11 = vld [vmem:[#allocation2 + $0xe20] sm:$0xff] }
 0x181   :  { %2532 = vst [vmem:[#allocation7 + $0xde0] sm:$0xff] %v2020_v60  ;;  %v2023_v8 = vmul.f32 %v1511_v61, %v1511_v61  ;;  %v1514_v9 = vsub.f32 %v490_v5, %v1002_v6  ;;  %v1003_v10 = vld [vmem:[#allocation5 + $0xe18] sm:$0xff]  ;;  %v1004_v12 = vld [vmem:[#allocation5 + $0xe20] sm:$0xff]  ;;  %2533 = vst [vmem:[#allocation7 + $0xde8] sm:$0xff] %v2021_v1 }
 0x182   :  { %2534 = vst [vmem:[#allocation7 + $0xdf0] sm:$0xff] %v2022_v2  ;;  %v2024_v13 = vmul.f32 %v1512_v3, %v1512_v3  ;;  %v2025_v14 = vmul.f32 %v1513_v4, %v1513_v4  ;;  %v1515_v15 = vsub.f32 %v491_v7, %v1003_v10  ;;  %v1516_v16 = vsub.f32 %v492_v11, %v1004_v12  ;;  %v493_v17 = vld [vmem:[#allocation2 + $0xe28] sm:$0xff]  ;;  %v494_v19 = vld [vmem:[#allocation2 + $0xe30] sm:$0xff]  ;;  %v495_v23 = vld [vmem:[#allocation2 + $0xe38] sm:$0xff] }
 0x183   :  { %v1005_v18 = vld [vmem:[#allocation5 + $0xe28] sm:$0xff]  ;;  %2535 = vst [vmem:[#allocation7 + $0xdf8] sm:$0xff] %v2023_v8  ;;  %v2026_v20 = vmul.f32 %v1514_v9, %v1514_v9  ;;  %v1006_v22 = vld [vmem:[#allocation5 + $0xe30] sm:$0xff]  ;;  %v1007_v24 = vld [vmem:[#allocation5 + $0xe38] sm:$0xff] }
 0x184   :  { %v1517_v21 = vsub.f32 %v493_v17, %v1005_v18  ;;  %2536 = vst [vmem:[#allocation7 + $0xe00] sm:$0xff] %v2024_v13  ;;  %2537 = vst [vmem:[#allocation7 + $0xe08] sm:$0xff] %v2025_v14  ;;  %v2027_v25 = vmul.f32 %v1515_v15, %v1515_v15  ;;  %v2028_v26 = vmul.f32 %v1516_v16, %v1516_v16  ;;  %v496_v29 = vld [vmem:[#allocation2 + $0xe40] sm:$0xff]  ;;  %v497_v31 = vld [vmem:[#allocation2 + $0xe48] sm:$0xff] }
 0x185   :  { %v1518_v27 = vsub.f32 %v494_v19, %v1006_v22  ;;  %v1519_v28 = vsub.f32 %v495_v23, %v1007_v24  ;;  %v1008_v30 = vld [vmem:[#allocation5 + $0xe40] sm:$0xff]  ;;  %2538 = vst [vmem:[#allocation7 + $0xe10] sm:$0xff] %v2026_v20  ;;  %v1009_v34 = vld [vmem:[#allocation5 + $0xe48] sm:$0xff]  ;;  %v498_v35 = vld [vmem:[#allocation2 + $0xe50] sm:$0xff] }
 0x186   :  { %v2029_v32 = vmul.f32 %v1517_v21, %v1517_v21  ;;  %v1520_v33 = vsub.f32 %v496_v29, %v1008_v30  ;;  %v1010_v36 = vld [vmem:[#allocation5 + $0xe50] sm:$0xff]  ;;  %2539 = vst [vmem:[#allocation7 + $0xe18] sm:$0xff] %v2027_v25  ;;  %2540 = vst [vmem:[#allocation7 + $0xe20] sm:$0xff] %v2028_v26  ;;  %v1521_v39 = vsub.f32 %v497_v31, %v1009_v34  ;;  %v499_v41 = vld [vmem:[#allocation2 + $0xe58] sm:$0xff] }
 0x187   :  { %v2030_v37 = vmul.f32 %v1518_v27, %v1518_v27  ;;  %v2031_v38 = vmul.f32 %v1519_v28, %v1519_v28  ;;  %v1522_v40 = vsub.f32 %v498_v35, %v1010_v36  ;;  %v1011_v42 = vld [vmem:[#allocation5 + $0xe58] sm:$0xff]  ;;  %v500_v43 = vld [vmem:[#allocation2 + $0xe60] sm:$0xff]  ;;  %v501_v47 = vld [vmem:[#allocation2 + $0xe68] sm:$0xff] }
 0x188   :  { %2541 = vst [vmem:[#allocation7 + $0xe28] sm:$0xff] %v2029_v32  ;;  %v2032_v44 = vmul.f32 %v1520_v33, %v1520_v33  ;;  %v1523_v45 = vsub.f32 %v499_v41, %v1011_v42  ;;  %v1012_v46 = vld [vmem:[#allocation5 + $0xe60] sm:$0xff]  ;;  %v1013_v48 = vld [vmem:[#allocation5 + $0xe68] sm:$0xff]  ;;  %v2033_v49 = vmul.f32 %v1521_v39, %v1521_v39  ;;  %v502_v53 = vld [vmem:[#allocation2 + $0xe70] sm:$0xff] }
 0x189   :  { %2542 = vst [vmem:[#allocation7 + $0xe30] sm:$0xff] %v2030_v37  ;;  %2543 = vst [vmem:[#allocation7 + $0xe38] sm:$0xff] %v2031_v38  ;;  %v2034_v50 = vmul.f32 %v1522_v40, %v1522_v40  ;;  %v1524_v51 = vsub.f32 %v500_v43, %v1012_v46  ;;  %v1525_v52 = vsub.f32 %v501_v47, %v1013_v48  ;;  %v1014_v54 = vld [vmem:[#allocation5 + $0xe70] sm:$0xff]  ;;  %v503_v55 = vld [vmem:[#allocation2 + $0xe78] sm:$0xff] }
 0x18a   :  { %2544 = vst [vmem:[#allocation7 + $0xe40] sm:$0xff] %v2032_v44  ;;  %v2035_v56 = vmul.f32 %v1523_v45, %v1523_v45  ;;  %v1526_v57 = vsub.f32 %v502_v53, %v1014_v54  ;;  %v1015_v58 = vld [vmem:[#allocation5 + $0xe78] sm:$0xff]  ;;  %v504_v59 = vld [vmem:[#allocation2 + $0xe80] sm:$0xff]  ;;  %2545 = vst [vmem:[#allocation7 + $0xe48] sm:$0xff] %v2033_v49 }
 0x18b   :  { %v1016_v60 = vld [vmem:[#allocation5 + $0xe80] sm:$0xff]  ;;  %2546 = vst [vmem:[#allocation7 + $0xe50] sm:$0xff] %v2034_v50  ;;  %v2036_v61 = vmul.f32 %v1524_v51, %v1524_v51  ;;  %v2037_v62 = vmul.f32 %v1525_v52, %v1525_v52  ;;  %v1527_v63 = vsub.f32 %v503_v55, %v1015_v58  ;;  %v505_v1 = vld [vmem:[#allocation2 + $0xe88] sm:$0xff]  ;;  %v506_v3 = vld [vmem:[#allocation2 + $0xe90] sm:$0xff] }
 0x18c   :  { %v1528_v0 = vsub.f32 %v504_v59, %v1016_v60  ;;  %v1017_v2 = vld [vmem:[#allocation5 + $0xe88] sm:$0xff]  ;;  %2547 = vst [vmem:[#allocation7 + $0xe58] sm:$0xff] %v2035_v56  ;;  %v2038_v4 = vmul.f32 %v1526_v57, %v1526_v57  ;;  %v1018_v6 = vld [vmem:[#allocation5 + $0xe90] sm:$0xff]  ;;  %v507_v7 = vld [vmem:[#allocation2 + $0xe98] sm:$0xff] }
 0x18d   :  { %v1529_v5 = vsub.f32 %v505_v1, %v1017_v2  ;;  %v1019_v8 = vld [vmem:[#allocation5 + $0xe98] sm:$0xff]  ;;  %2548 = vst [vmem:[#allocation7 + $0xe60] sm:$0xff] %v2036_v61  ;;  %2549 = vst [vmem:[#allocation7 + $0xe68] sm:$0xff] %v2037_v62  ;;  %v2039_v9 = vmul.f32 %v1527_v63, %v1527_v63  ;;  %v1530_v11 = vsub.f32 %v506_v3, %v1018_v6  ;;  %v508_v13 = vld [vmem:[#allocation2 + $0xea0] sm:$0xff] }
 0x18e   :  { %v2040_v10 = vmul.f32 %v1528_v0, %v1528_v0  ;;  %v1531_v12 = vsub.f32 %v507_v7, %v1019_v8  ;;  %v1020_v14 = vld [vmem:[#allocation5 + $0xea0] sm:$0xff]  ;;  %v509_v15 = vld [vmem:[#allocation2 + $0xea8] sm:$0xff]  ;;  %2550 = vst [vmem:[#allocation7 + $0xe70] sm:$0xff] %v2038_v4  ;;  %v510_v19 = vld [vmem:[#allocation2 + $0xeb0] sm:$0xff] }
 0x18f   :  { %v2041_v16 = vmul.f32 %v1529_v5, %v1529_v5  ;;  %v1532_v17 = vsub.f32 %v508_v13, %v1020_v14  ;;  %v1021_v18 = vld [vmem:[#allocation5 + $0xea8] sm:$0xff]  ;;  %v1022_v20 = vld [vmem:[#allocation5 + $0xeb0] sm:$0xff]  ;;  %2551 = vst [vmem:[#allocation7 + $0xe78] sm:$0xff] %v2039_v9  ;;  %v2042_v21 = vmul.f32 %v1530_v11, %v1530_v11  ;;  %v511_v25 = vld [vmem:[#allocation2 + $0xeb8] sm:$0xff] }
 0x190   :  { %2552 = vst [vmem:[#allocation7 + $0xe80] sm:$0xff] %v2040_v10  ;;  %v2043_v22 = vmul.f32 %v1531_v12, %v1531_v12  ;;  %v1533_v23 = vsub.f32 %v509_v15, %v1021_v18  ;;  %v1534_v24 = vsub.f32 %v510_v19, %v1022_v20  ;;  %v1023_v26 = vld [vmem:[#allocation5 + $0xeb8] sm:$0xff]  ;;  %v512_v27 = vld [vmem:[#allocation2 + $0xec0] sm:$0xff]  ;;  %v513_v31 = vld [vmem:[#allocation2 + $0xec8] sm:$0xff] }
 0x191   :  { %2553 = vst [vmem:[#allocation7 + $0xe88] sm:$0xff] %v2041_v16  ;;  %v2044_v28 = vmul.f32 %v1532_v17, %v1532_v17  ;;  %v1535_v29 = vsub.f32 %v511_v25, %v1023_v26  ;;  %v1024_v30 = vld [vmem:[#allocation5 + $0xec0] sm:$0xff]  ;;  %v1025_v32 = vld [vmem:[#allocation5 + $0xec8] sm:$0xff]  ;;  %2554 = vst [vmem:[#allocation7 + $0xe90] sm:$0xff] %v2042_v21 }
 0x192   :  { %2555 = vst [vmem:[#allocation7 + $0xe98] sm:$0xff] %v2043_v22  ;;  %v2045_v33 = vmul.f32 %v1533_v23, %v1533_v23  ;;  %v2046_v34 = vmul.f32 %v1534_v24, %v1534_v24  ;;  %v1536_v35 = vsub.f32 %v512_v27, %v1024_v30  ;;  %v1537_v36 = vsub.f32 %v513_v31, %v1025_v32  ;;  %v514_v37 = vld [vmem:[#allocation2 + $0xed0] sm:$0xff]  ;;  %v515_v39 = vld [vmem:[#allocation2 + $0xed8] sm:$0xff]  ;;  %v516_v43 = vld [vmem:[#allocation2 + $0xee0] sm:$0xff] }
 0x193   :  { %v1026_v38 = vld [vmem:[#allocation5 + $0xed0] sm:$0xff]  ;;  %2556 = vst [vmem:[#allocation7 + $0xea0] sm:$0xff] %v2044_v28  ;;  %v2047_v40 = vmul.f32 %v1535_v29, %v1535_v29  ;;  %v1027_v42 = vld [vmem:[#allocation5 + $0xed8] sm:$0xff]  ;;  %v1028_v44 = vld [vmem:[#allocation5 + $0xee0] sm:$0xff] }
 0x194   :  { %v1538_v41 = vsub.f32 %v514_v37, %v1026_v38  ;;  %2557 = vst [vmem:[#allocation7 + $0xea8] sm:$0xff] %v2045_v33  ;;  %2558 = vst [vmem:[#allocation7 + $0xeb0] sm:$0xff] %v2046_v34  ;;  %v2048_v45 = vmul.f32 %v1536_v35, %v1536_v35  ;;  %v2049_v46 = vmul.f32 %v1537_v36, %v1537_v36  ;;  %v517_v49 = vld [vmem:[#allocation2 + $0xee8] sm:$0xff]  ;;  %v518_v51 = vld [vmem:[#allocation2 + $0xef0] sm:$0xff] }
 0x195   :  { %v1539_v47 = vsub.f32 %v515_v39, %v1027_v42  ;;  %v1540_v48 = vsub.f32 %v516_v43, %v1028_v44  ;;  %v1029_v50 = vld [vmem:[#allocation5 + $0xee8] sm:$0xff]  ;;  %2559 = vst [vmem:[#allocation7 + $0xeb8] sm:$0xff] %v2047_v40  ;;  %v1030_v54 = vld [vmem:[#allocation5 + $0xef0] sm:$0xff]  ;;  %v519_v55 = vld [vmem:[#allocation2 + $0xef8] sm:$0xff] }
 0x196   :  { %v2050_v52 = vmul.f32 %v1538_v41, %v1538_v41  ;;  %v1541_v53 = vsub.f32 %v517_v49, %v1029_v50  ;;  %v1031_v56 = vld [vmem:[#allocation5 + $0xef8] sm:$0xff]  ;;  %2560 = vst [vmem:[#allocation7 + $0xec0] sm:$0xff] %v2048_v45  ;;  %2561 = vst [vmem:[#allocation7 + $0xec8] sm:$0xff] %v2049_v46  ;;  %v1542_v59 = vsub.f32 %v518_v51, %v1030_v54  ;;  %v520_v61 = vld [vmem:[#allocation2 + $0xf00] sm:$0xff] }
 0x197   :  { %v2051_v57 = vmul.f32 %v1539_v47, %v1539_v47  ;;  %v2052_v58 = vmul.f32 %v1540_v48, %v1540_v48  ;;  %v1543_v60 = vsub.f32 %v519_v55, %v1031_v56  ;;  %v1032_v62 = vld [vmem:[#allocation5 + $0xf00] sm:$0xff]  ;;  %v521_v63 = vld [vmem:[#allocation2 + $0xf08] sm:$0xff]  ;;  %v522_v3 = vld [vmem:[#allocation2 + $0xf10] sm:$0xff] }
 0x198   :  { %2562 = vst [vmem:[#allocation7 + $0xed0] sm:$0xff] %v2050_v52  ;;  %v2053_v0 = vmul.f32 %v1541_v53, %v1541_v53  ;;  %v1544_v1 = vsub.f32 %v520_v61, %v1032_v62  ;;  %v1033_v2 = vld [vmem:[#allocation5 + $0xf08] sm:$0xff]  ;;  %v1034_v4 = vld [vmem:[#allocation5 + $0xf10] sm:$0xff]  ;;  %v2054_v5 = vmul.f32 %v1542_v59, %v1542_v59  ;;  %v523_v9 = vld [vmem:[#allocation2 + $0xf18] sm:$0xff] }
 0x199   :  { %2563 = vst [vmem:[#allocation7 + $0xed8] sm:$0xff] %v2051_v57  ;;  %2564 = vst [vmem:[#allocation7 + $0xee0] sm:$0xff] %v2052_v58  ;;  %v2055_v6 = vmul.f32 %v1543_v60, %v1543_v60  ;;  %v1545_v7 = vsub.f32 %v521_v63, %v1033_v2  ;;  %v1546_v8 = vsub.f32 %v522_v3, %v1034_v4  ;;  %v1035_v10 = vld [vmem:[#allocation5 + $0xf18] sm:$0xff]  ;;  %v524_v11 = vld [vmem:[#allocation2 + $0xf20] sm:$0xff] }
 0x19a   :  { %2565 = vst [vmem:[#allocation7 + $0xee8] sm:$0xff] %v2053_v0  ;;  %v2056_v12 = vmul.f32 %v1544_v1, %v1544_v1  ;;  %v1547_v13 = vsub.f32 %v523_v9, %v1035_v10  ;;  %v1036_v14 = vld [vmem:[#allocation5 + $0xf20] sm:$0xff]  ;;  %v525_v15 = vld [vmem:[#allocation2 + $0xf28] sm:$0xff]  ;;  %2566 = vst [vmem:[#allocation7 + $0xef0] sm:$0xff] %v2054_v5 }
 0x19b   :  { %v1037_v16 = vld [vmem:[#allocation5 + $0xf28] sm:$0xff]  ;;  %2567 = vst [vmem:[#allocation7 + $0xef8] sm:$0xff] %v2055_v6  ;;  %v2057_v17 = vmul.f32 %v1545_v7, %v1545_v7  ;;  %v2058_v18 = vmul.f32 %v1546_v8, %v1546_v8  ;;  %v1548_v19 = vsub.f32 %v524_v11, %v1036_v14  ;;  %v526_v21 = vld [vmem:[#allocation2 + $0xf30] sm:$0xff]  ;;  %v527_v23 = vld [vmem:[#allocation2 + $0xf38] sm:$0xff] }
 0x19c   :  { %v1549_v20 = vsub.f32 %v525_v15, %v1037_v16  ;;  %v1038_v22 = vld [vmem:[#allocation5 + $0xf30] sm:$0xff]  ;;  %2568 = vst [vmem:[#allocation7 + $0xf00] sm:$0xff] %v2056_v12  ;;  %v2059_v24 = vmul.f32 %v1547_v13, %v1547_v13  ;;  %v1039_v26 = vld [vmem:[#allocation5 + $0xf38] sm:$0xff]  ;;  %v528_v27 = vld [vmem:[#allocation2 + $0xf40] sm:$0xff] }
 0x19d   :  { %v1550_v25 = vsub.f32 %v526_v21, %v1038_v22  ;;  %v1040_v28 = vld [vmem:[#allocation5 + $0xf40] sm:$0xff]  ;;  %2569 = vst [vmem:[#allocation7 + $0xf08] sm:$0xff] %v2057_v17  ;;  %2570 = vst [vmem:[#allocation7 + $0xf10] sm:$0xff] %v2058_v18  ;;  %v2060_v29 = vmul.f32 %v1548_v19, %v1548_v19  ;;  %v1551_v31 = vsub.f32 %v527_v23, %v1039_v26  ;;  %v529_v33 = vld [vmem:[#allocation2 + $0xf48] sm:$0xff] }
 0x19e   :  { %v2061_v30 = vmul.f32 %v1549_v20, %v1549_v20  ;;  %v1552_v32 = vsub.f32 %v528_v27, %v1040_v28  ;;  %v1041_v34 = vld [vmem:[#allocation5 + $0xf48] sm:$0xff]  ;;  %v530_v35 = vld [vmem:[#allocation2 + $0xf50] sm:$0xff]  ;;  %2571 = vst [vmem:[#allocation7 + $0xf18] sm:$0xff] %v2059_v24  ;;  %v531_v39 = vld [vmem:[#allocation2 + $0xf58] sm:$0xff] }
 0x19f   :  { %v2062_v36 = vmul.f32 %v1550_v25, %v1550_v25  ;;  %v1553_v37 = vsub.f32 %v529_v33, %v1041_v34  ;;  %v1042_v38 = vld [vmem:[#allocation5 + $0xf50] sm:$0xff]  ;;  %v1043_v40 = vld [vmem:[#allocation5 + $0xf58] sm:$0xff]  ;;  %2572 = vst [vmem:[#allocation7 + $0xf20] sm:$0xff] %v2060_v29  ;;  %v2063_v41 = vmul.f32 %v1551_v31, %v1551_v31  ;;  %v532_v45 = vld [vmem:[#allocation2 + $0xf60] sm:$0xff] }
 0x1a0   :  { %2573 = vst [vmem:[#allocation7 + $0xf28] sm:$0xff] %v2061_v30  ;;  %v2064_v42 = vmul.f32 %v1552_v32, %v1552_v32  ;;  %v1554_v43 = vsub.f32 %v530_v35, %v1042_v38  ;;  %v1555_v44 = vsub.f32 %v531_v39, %v1043_v40  ;;  %v1044_v46 = vld [vmem:[#allocation5 + $0xf60] sm:$0xff]  ;;  %v533_v47 = vld [vmem:[#allocation2 + $0xf68] sm:$0xff]  ;;  %v534_v51 = vld [vmem:[#allocation2 + $0xf70] sm:$0xff] }
 0x1a1   :  { %2574 = vst [vmem:[#allocation7 + $0xf30] sm:$0xff] %v2062_v36  ;;  %v2065_v48 = vmul.f32 %v1553_v37, %v1553_v37  ;;  %v1556_v49 = vsub.f32 %v532_v45, %v1044_v46  ;;  %v1045_v50 = vld [vmem:[#allocation5 + $0xf68] sm:$0xff]  ;;  %v1046_v52 = vld [vmem:[#allocation5 + $0xf70] sm:$0xff]  ;;  %2575 = vst [vmem:[#allocation7 + $0xf38] sm:$0xff] %v2063_v41 }
 0x1a2   :  { %2576 = vst [vmem:[#allocation7 + $0xf40] sm:$0xff] %v2064_v42  ;;  %v2066_v53 = vmul.f32 %v1554_v43, %v1554_v43  ;;  %v2067_v54 = vmul.f32 %v1555_v44, %v1555_v44  ;;  %v1557_v55 = vsub.f32 %v533_v47, %v1045_v50  ;;  %v1558_v56 = vsub.f32 %v534_v51, %v1046_v52  ;;  %v535_v57 = vld [vmem:[#allocation2 + $0xf78] sm:$0xff]  ;;  %v536_v59 = vld [vmem:[#allocation2 + $0xf80] sm:$0xff]  ;;  %v537_v63 = vld [vmem:[#allocation2 + $0xf88] sm:$0xff] }
 0x1a3   :  { %v1047_v58 = vld [vmem:[#allocation5 + $0xf78] sm:$0xff]  ;;  %2577 = vst [vmem:[#allocation7 + $0xf48] sm:$0xff] %v2065_v48  ;;  %v2068_v60 = vmul.f32 %v1556_v49, %v1556_v49  ;;  %v1048_v62 = vld [vmem:[#allocation5 + $0xf80] sm:$0xff]  ;;  %v1049_v0 = vld [vmem:[#allocation5 + $0xf88] sm:$0xff] }
 0x1a4   :  { %v1559_v61 = vsub.f32 %v535_v57, %v1047_v58  ;;  %2578 = vst [vmem:[#allocation7 + $0xf50] sm:$0xff] %v2066_v53  ;;  %2579 = vst [vmem:[#allocation7 + $0xf58] sm:$0xff] %v2067_v54  ;;  %v2069_v1 = vmul.f32 %v1557_v55, %v1557_v55  ;;  %v2070_v2 = vmul.f32 %v1558_v56, %v1558_v56  ;;  %v538_v5 = vld [vmem:[#allocation2 + $0xf90] sm:$0xff]  ;;  %v539_v7 = vld [vmem:[#allocation2 + $0xf98] sm:$0xff] }
 0x1a5   :  { %v1560_v3 = vsub.f32 %v536_v59, %v1048_v62  ;;  %v1561_v4 = vsub.f32 %v537_v63, %v1049_v0  ;;  %v1050_v6 = vld [vmem:[#allocation5 + $0xf90] sm:$0xff]  ;;  %2580 = vst [vmem:[#allocation7 + $0xf60] sm:$0xff] %v2068_v60  ;;  %v1051_v10 = vld [vmem:[#allocation5 + $0xf98] sm:$0xff]  ;;  %v540_v11 = vld [vmem:[#allocation2 + $0xfa0] sm:$0xff] }
 0x1a6   :  { %v2071_v8 = vmul.f32 %v1559_v61, %v1559_v61  ;;  %v1562_v9 = vsub.f32 %v538_v5, %v1050_v6  ;;  %v1052_v12 = vld [vmem:[#allocation5 + $0xfa0] sm:$0xff]  ;;  %2581 = vst [vmem:[#allocation7 + $0xf68] sm:$0xff] %v2069_v1  ;;  %2582 = vst [vmem:[#allocation7 + $0xf70] sm:$0xff] %v2070_v2  ;;  %v1563_v15 = vsub.f32 %v539_v7, %v1051_v10  ;;  %v541_v17 = vld [vmem:[#allocation2 + $0xfa8] sm:$0xff] }
 0x1a7   :  { %v2072_v13 = vmul.f32 %v1560_v3, %v1560_v3  ;;  %v2073_v14 = vmul.f32 %v1561_v4, %v1561_v4  ;;  %v1564_v16 = vsub.f32 %v540_v11, %v1052_v12  ;;  %v1053_v18 = vld [vmem:[#allocation5 + $0xfa8] sm:$0xff]  ;;  %v542_v19 = vld [vmem:[#allocation2 + $0xfb0] sm:$0xff]  ;;  %v543_v23 = vld [vmem:[#allocation2 + $0xfb8] sm:$0xff] }
 0x1a8   :  { %2583 = vst [vmem:[#allocation7 + $0xf78] sm:$0xff] %v2071_v8  ;;  %v2074_v20 = vmul.f32 %v1562_v9, %v1562_v9  ;;  %v1565_v21 = vsub.f32 %v541_v17, %v1053_v18  ;;  %v1054_v22 = vld [vmem:[#allocation5 + $0xfb0] sm:$0xff]  ;;  %v1055_v24 = vld [vmem:[#allocation5 + $0xfb8] sm:$0xff]  ;;  %v2075_v25 = vmul.f32 %v1563_v15, %v1563_v15  ;;  %v544_v29 = vld [vmem:[#allocation2 + $0xfc0] sm:$0xff] }
 0x1a9   :  { %2584 = vst [vmem:[#allocation7 + $0xf80] sm:$0xff] %v2072_v13  ;;  %2585 = vst [vmem:[#allocation7 + $0xf88] sm:$0xff] %v2073_v14  ;;  %v2076_v26 = vmul.f32 %v1564_v16, %v1564_v16  ;;  %v1566_v27 = vsub.f32 %v542_v19, %v1054_v22  ;;  %v1567_v28 = vsub.f32 %v543_v23, %v1055_v24  ;;  %v1056_v30 = vld [vmem:[#allocation5 + $0xfc0] sm:$0xff]  ;;  %v545_v31 = vld [vmem:[#allocation2 + $0xfc8] sm:$0xff] }
 0x1aa   :  { %2586 = vst [vmem:[#allocation7 + $0xf90] sm:$0xff] %v2074_v20  ;;  %v2077_v32 = vmul.f32 %v1565_v21, %v1565_v21  ;;  %v1568_v33 = vsub.f32 %v544_v29, %v1056_v30  ;;  %v1057_v34 = vld [vmem:[#allocation5 + $0xfc8] sm:$0xff]  ;;  %v546_v35 = vld [vmem:[#allocation2 + $0xfd0] sm:$0xff]  ;;  %2587 = vst [vmem:[#allocation7 + $0xf98] sm:$0xff] %v2075_v25 }
 0x1ab   :  { %v1058_v36 = vld [vmem:[#allocation5 + $0xfd0] sm:$0xff]  ;;  %2588 = vst [vmem:[#allocation7 + $0xfa0] sm:$0xff] %v2076_v26  ;;  %v2078_v37 = vmul.f32 %v1566_v27, %v1566_v27  ;;  %v2079_v38 = vmul.f32 %v1567_v28, %v1567_v28  ;;  %v1569_v39 = vsub.f32 %v545_v31, %v1057_v34  ;;  %v547_v41 = vld [vmem:[#allocation2 + $0xfd8] sm:$0xff]  ;;  %v548_v43 = vld [vmem:[#allocation2 + $0xfe0] sm:$0xff] }
 0x1ac   :  { %v1570_v40 = vsub.f32 %v546_v35, %v1058_v36  ;;  %v1059_v42 = vld [vmem:[#allocation5 + $0xfd8] sm:$0xff]  ;;  %2589 = vst [vmem:[#allocation7 + $0xfa8] sm:$0xff] %v2077_v32  ;;  %v2080_v44 = vmul.f32 %v1568_v33, %v1568_v33  ;;  %v1060_v46 = vld [vmem:[#allocation5 + $0xfe0] sm:$0xff]  ;;  %v549_v47 = vld [vmem:[#allocation2 + $0xfe8] sm:$0xff] }
 0x1ad   :  { %v1571_v45 = vsub.f32 %v547_v41, %v1059_v42  ;;  %v1061_v48 = vld [vmem:[#allocation5 + $0xfe8] sm:$0xff]  ;;  %2590 = vst [vmem:[#allocation7 + $0xfb0] sm:$0xff] %v2078_v37  ;;  %2591 = vst [vmem:[#allocation7 + $0xfb8] sm:$0xff] %v2079_v38  ;;  %v2081_v49 = vmul.f32 %v1569_v39, %v1569_v39  ;;  %v1572_v51 = vsub.f32 %v548_v43, %v1060_v46  ;;  %v550_v53 = vld [vmem:[#allocation2 + $0xff0] sm:$0xff] }
 0x1ae   :  { %v2082_v50 = vmul.f32 %v1570_v40, %v1570_v40  ;;  %v1573_v52 = vsub.f32 %v549_v47, %v1061_v48  ;;  %v1062_v54 = vld [vmem:[#allocation5 + $0xff0] sm:$0xff]  ;;  %v551_v55 = vld [vmem:[#allocation2 + $0xff8] sm:$0xff]  ;;  %2592 = vst [vmem:[#allocation7 + $0xfc0] sm:$0xff] %v2080_v44 }
 0x1af   :  { %v2083_v56 = vmul.f32 %v1571_v45, %v1571_v45  ;;  %v1574_v57 = vsub.f32 %v550_v53, %v1062_v54  ;;  %v1063_v58 = vld [vmem:[#allocation5 + $0xff8] sm:$0xff]  ;;  %2593 = vst [vmem:[#allocation7 + $0xfc8] sm:$0xff] %v2081_v49  ;;  %v2084_v59 = vmul.f32 %v1572_v51, %v1572_v51 }
 0x1b0   :  { %2594 = vst [vmem:[#allocation7 + $0xfd0] sm:$0xff] %v2082_v50  ;;  %v2085_v60 = vmul.f32 %v1573_v52, %v1573_v52  ;;  %v1575_v61 = vsub.f32 %v551_v55, %v1063_v58 }
 0x1b1   :  { %2595 = vst [vmem:[#allocation7 + $0xfd8] sm:$0xff] %v2083_v56  ;;  %v2086_v62 = vmul.f32 %v1574_v57, %v1574_v57  ;;  %2596 = vst [vmem:[#allocation7 + $0xfe0] sm:$0xff] %v2084_v59 }
 0x1b2   :  { %2597 = vst [vmem:[#allocation7 + $0xfe8] sm:$0xff] %v2085_v60  ;;  %v2087_v63 = vmul.f32 %v1575_v61, %v1575_v61 }
 0x1b3   :  { %2598 = vst [vmem:[#allocation7 + $0xff0] sm:$0xff] %v2086_v62 }
 0x1b4   :  { %2599 = vst [vmem:[#allocation7 + $0xff8] sm:$0xff] %v2087_v63 }
 0x1b5   :  { %2604 = vsyncadd [#allocation4], 59392  ;;  %s2699_s1 = smov [#allocation7]  }
 0x1b6   :  { %s2605_s8 = sshll.u32 %s2699_s1, 4  ;;  %s2606_s8 = int_to_ptr.vmem [resolvable:$true] %s2605_s8 }
 0x1b7   :  { %s2667_s9 = scalar_lea.vmem %s2606_s8, 6144  ;;  %s2671_s10 = scalar_lea.vmem %s2606_s8, 65536 }
 0x1b8   :  { %p2668_p2 = scmp.ne.s32.totalorder %s2606_s8, %s2667_s9  ;;  %p2672_p3 = scmp.lt.s32.totalorder %s2606_s8, %s2606_s8 }
 0x1b9   :  { %p2673_p4 = scmp.lt.s32.totalorder %s2671_s10, %s2667_s9 }
 0x1bb   :  { %p2674_p5 = por %p2673_p4, %p2672_p3 }
 0x1bd   :  { %p2675_p6 = pnand %p2674_p5, %p2668_p2 }
 0x1bf   :  { %2678 = shalt.err (!%p2675_p6)
}
 0x1c0   :  { %s2679_s13 = scalar_lea.hbm %s2762_s2, 6144 }
 0x1c1   :  { %p2680_p7 = scmp.ne.s32.totalorder %s2762_s2, %s2679_s13  ;;  %p2683_p8 = scmp.lt.u32.totalorder %s2679_s13, %s2762_s2 }
 0x1c3   :  { %p2685_p9 = pnand %p2683_p8, %p2680_p7 }
 0x1c5   :  { %2688 = shalt.err (!%p2685_p9)
}
 0x1c6   :  { %2611 = dma.vmem_to_hbm [thread:$0]  %s2606_s8, 6144, %s2762_s2, [#allocation4], %s2696_s20, %s2696_s20, %s2697_s21  }
 0x1c7   :  { %2693 = dma.done.wait [#allocation4], 65536  }
 0x1c8   :  { %2694 = vsyncadd [#allocation4], 4294901760 }
 0x1c9   :  { %2615 = vsyncpa [#allocation3], 1 }
 0x1ca   :  { %2616 = vsyncpa [#allocation6], 1 }
 0x1cb   :  { %2617 = vsyncpa [#allocation4], 1 }

</bundles_post_ra>
